<compile_context>
chip_gen: v7x
topology: tpu7x:2x2x1
jax: 0.10.0
libtpu: 0.0.40
codegen_flags: <defaults>
</compile_context>

<pallas_src>
import jax
import jax.numpy as jnp
from jax import lax
from jax.experimental import pallas as pl
from jax.experimental.pallas import tpu as pltpu

K = 9  # knn_num (the knn_num == 9 branch of the module)


def dgcnn_block_kernel(x_ref, w1_ref, b1_ref, w2_ref, b2_ref, o_ref):
    # x_ref:  (BB, N, C)   points block (BB batch elements per grid step)
    # w1_ref: (C, 4C)      fused conv1 weight [Wc_sum + Wd_sum | Wd_0 | Wd_1 | Wd_2]
    # b1_ref: (1, C)       folded conv1+BN1 bias
    # w2_ref: (3C, C)      conv2 weights, taps stacked along rows
    # b2_ref: (1, C)       folded conv2+BN2 bias
    # o_ref:  (BB, N, C)
    xb = x_ref[...]                                    # (BB, N, C) f32
    bb, n, c = xb.shape
    x2d = xb.reshape(bb * n, c)                        # (M, C), M = BB*N

    # ---- conv1: ONE fused (M,C)@(C,4C) matmul (center+diff sums | 3 diff taps)
    h1 = jnp.dot(x2d, w1_ref[...], preferred_element_type=jnp.float32)   # (M, 4C)
    base = b1_ref[...] + h1[:, :c]                     # (M, C); bias broadcast hoisted
    xd_b = h1[:, c:].reshape(bb, n, 3 * c)             # per-batch gather source

    # ---- pairwise ranking score (f32, rank-equivalent to the reference) -----
    # reference score is -||x_i||^2 + 2 x_i.x_j - ||x_j||^2; drop the
    # row-constant term and fold the 2x scale (exact) into the small term.
    inner = jnp.einsum('bnc,bmc->bnm', xb, xb,
                       preferred_element_type=jnp.float32)               # (BB,N,N)
    sq_j = 0.5 * jnp.sum(xb * xb, axis=-1)[:, None, :]                   # (BB,1,N)
    d = inner - sq_j

    # column index as f32 (exact for N < 2^24), for lowest-index tie-break
    col = lax.broadcasted_iota(jnp.int32, (bb, n, n), 2).astype(jnp.float32)
    neg_inf = jnp.float32(-jnp.inf)

    # ---- top-K neighbor selection fused with the edge-feature gather --------
    # K is static -> unrolled; only ONE (BB, N, N) one-hot mask is live at any
    # time (the gather consumes it immediately).
    neigh = [None, None, None]
    for kk in range(K):
        p, t = kk // 3, kk % 3
        m = jnp.max(d, axis=-1, keepdims=True)                           # (BB,N,1)
        idx = jnp.min(jnp.where(d == m, col, jnp.float32(n)),
                      axis=-1, keepdims=True)                            # (BB,N,1)
        sel = col == idx                                                 # one-hot
        g = jnp.einsum('bnm,bmc->bnc', sel.astype(jnp.float32),
                       xd_b[..., t * c:(t + 1) * c],
                       preferred_element_type=jnp.float32)               # (BB,N,C)
        neigh[p] = g if t == 0 else neigh[p] + g       # first tap assigns (no zeros)
        d = jnp.where(sel, neg_inf, d)

    # ---- conv1 ReLU + conv2 (single fat matmul, K = 3C) + ReLU ---------------
    h = jnp.concatenate(
        [jnp.maximum(base - neigh[p].reshape(bb * n, c), 0.0) for p in range(3)],
        axis=-1)                                                         # (M, 3C)
    out = jnp.dot(h, w2_ref[...], preferred_element_type=jnp.float32) + b2_ref[...]
    o_ref[...] = jnp.maximum(out, 0.0).reshape(bb, n, c)


# ------------------------- block-size / VMEM heuristics -------------------------

def _vmem_capacity_bytes():
    """Per-core VMEM capacity; conservative fallback = v7x's 64 MiB/TC."""
    try:
        info = pltpu.get_tpu_info()
        cap = getattr(info, "vmem_capacity_bytes", None)
        if cap:
            return int(cap)
    except Exception:
        pass
    return 64 * 1024 * 1024


def _working_set_bytes(bb, N, C):
    """Honest per-grid-step live-set estimate for the kernel above."""
    f32 = 4
    n2 = bb * N * N * f32
    nc = bb * N * C * f32
    # selection loop: d + col + ~2 transient mask / where temporaries
    sel_part = 4 * n2
    # xb + fused conv1 out (4C) + base + 3 neigh / h slab (3C) + conv2 out (C)
    # + double-buffered input and output blocks (2x each)
    mlp_part = (1 + 4 + 1 + 3 + 1 + 4) * nc
    # double-buffered constant weights/biases
    const_part = 2 * (C * 4 * C + 3 * C * C + 2 * C) * f32
    return sel_part + mlp_part + const_part


def _pick_block_b(B, N, C, budget):
    """Largest divisor of B that fits the VMEM budget, keeping >= 2 grid steps
    (so the 'parallel' batch axis can shard across v7x's two TensorCores) and,
    subject to that, maximising M = bb*N for the 256-wide v6e/v7x MXU."""
    feasible = [bb for bb in range(1, B + 1)
                if B % bb == 0 and _working_set_bytes(bb, N, C) <= budget]
    if not feasible:
        # TODO(synk): even bb=1 overflows for very large N; needs the
        #             query-row tiling of the selection loop noted above.
        return 1
    multi_step = [bb for bb in feasible if B // bb >= 2]
    pool = multi_step if multi_step else feasible
    return max(pool)


# ------------------------------------ wrapper ------------------------------------

def dgcnn_block(features, w1f, b1f, w2f, b2f, block_b=None):
    """features: (B, C, N, 1) f32  ->  (B, C, N, 1) f32 (knn_num == 9 branch)."""
    B, C, N, _ = features.shape
    assert N >= K, f"DGCNN_Block needs N >= knn_num ({N} < {K})"
    x = jnp.transpose(features[..., 0], (0, 2, 1))                    # (B, N, C)

    # fused conv1 weight: [sum_t Wc_t + sum_t Wd_t | Wd_0 | Wd_1 | Wd_2]  (C, 4C)
    w1c_sum = w1f[0, :C, :] + w1f[1, :C, :] + w1f[2, :C, :]
    w1d = [w1f[t, C:, :] for t in range(3)]
    w1_fat = jnp.concatenate([w1c_sum + w1d[0] + w1d[1] + w1d[2],
                              w1d[0], w1d[1], w1d[2]], axis=1)        # (C, 4C)
    w2_stack = w2f.reshape(3 * C, C)                                  # (3C, C)

    cap = _vmem_capacity_bytes()
    budget = cap // 3                         # headroom for pipelining + scratch
    bb = block_b if block_b is not None else _pick_block_b(B, N, C, budget)
    assert B % bb == 0

    out = pl.pallas_call(
        dgcnn_block_kernel,
        out_shape=jax.ShapeDtypeStruct((B, N, C), jnp.float32),
        grid_spec=pltpu.PrefetchScalarGridSpec(
            num_scalar_prefetch=0,
            grid=(B // bb,),
            in_specs=[
                pl.BlockSpec((bb, N, C), lambda g: (g, 0, 0)),
                # constant operands: index maps never change, so they are not
                # re-DMA'd across grid steps; their double-buffer cost is
                # charged in _working_set_bytes.
                pl.BlockSpec((C, 4 * C), lambda g: (0, 0)),
                pl.BlockSpec((1, C), lambda g: (0, 0)),
                pl.BlockSpec((3 * C, C), lambda g: (0, 0)),
                pl.BlockSpec((1, C), lambda g: (0, 0)),
            ],
            out_specs=pl.BlockSpec((bb, N, C), lambda g: (g, 0, 0)),
        ),
        compiler_params=pltpu.CompilerParams(
            dimension_semantics=("parallel",),
            vmem_limit_bytes=int(cap * 3 // 4)),
    )(x, w1_fat, b1f, w2_stack, b2f)
    return jnp.transpose(out, (0, 2, 1))[..., None]                   # (B, C, N, 1)


# --------------------------- parameter construction ---------------------------

def fold_bn(w, b, gamma, beta, mean, var, eps=1e-5):
    """Fold eval-mode BatchNorm2d into conv weight (Co, Ci, 1, kw) and bias."""
    scale = gamma / jnp.sqrt(var + eps)
    return w * scale[:, None, None, None], (b - mean) * scale + beta


def make_params(key, in_channel):
    c = in_channel
    ks = jax.random.split(key, 12)
    w1 = 0.05 * jax.random.normal(ks[0], (c, 2 * c, 1, 3), jnp.float32)
    b1 = 0.05 * jax.random.normal(ks[1], (c,), jnp.float32)
    w2 = 0.05 * jax.random.normal(ks[2], (c, c, 1, 3), jnp.float32)
    b2 = 0.05 * jax.random.normal(ks[3], (c,), jnp.float32)
    g1 = 1.0 + 0.1 * jax.random.normal(ks[4], (c,), jnp.float32)
    be1 = 0.1 * jax.random.normal(ks[5], (c,), jnp.float32)
    m1 = 0.1 * jax.random.normal(ks[6], (c,), jnp.float32)
    v1 = 1.0 + 0.5 * jax.random.uniform(ks[7], (c,), jnp.float32)
    g2 = 1.0 + 0.1 * jax.random.normal(ks[8], (c,), jnp.float32)
    be2 = 0.1 * jax.random.normal(ks[9], (c,), jnp.float32)
    m2 = 0.1 * jax.random.normal(ks[10], (c,), jnp.float32)
    v2 = 1.0 + 0.5 * jax.random.uniform(ks[11], (c,), jnp.float32)

    w1f, b1f = fold_bn(w1, b1, g1, be1, m1, v1)
    w2f, b2f = fold_bn(w2, b2, g2, be2, m2, v2)
    # reorder to matmul layout: (tap, Cin, Cout)
    w1f = jnp.transpose(w1f[:, :, 0, :], (2, 1, 0))                   # (3, 2C, C)
    w2f = jnp.transpose(w2f[:, :, 0, :], (2, 1, 0))                   # (3, C, C)
    return w1f, b1f[None, :], w2f, b2f[None, :]


# ------------------------------ pure-JAX reference -----------------------------

def reference_forward(features, w1f, b1f, w2f, b2f, k=K):
    B, C, N, _ = features.shape
    x = features[:, :, :, 0]                                          # (B, C, N)
    hp = jax.lax.Precision.HIGHEST
    xx = jnp.sum(x * x, axis=1, keepdims=True)                        # (B, 1, N)
    inner = -2.0 * jnp.einsum("bcn,bcm->bnm", x, x, precision=hp)
    pd = -xx - inner - jnp.swapaxes(xx, 1, 2)                         # (B, N, N)
    idx = jax.lax.top_k(pd, k)[1]                                     # (B, N, k)
    xt = jnp.swapaxes(x, 1, 2)                                        # (B, N, C)
    feat = jax.vmap(lambda xb, ib: xb[ib])(xt, idx)                   # (B, N, k, C)
    center = jnp.broadcast_to(xt[:, :, None, :], (B, N, k, C))
    edge = jnp.concatenate([center, center - feat], axis=-1)          # (B, N, k, 2C)
    edge = edge.reshape(B, N, 3, 3, 2 * C)                            # (p, t) split
    h = jnp.einsum("bnptc,tcd->bnpd", edge, w1f, precision=hp) + b1f[0]
    h = jnp.maximum(h, 0.0)
    out = jnp.einsum("bnpc,pcd->bnd", h, w2f, precision=hp) + b2f[0]
    out = jnp.maximum(out, 0.0)                                       # (B, N, C)
    return jnp.transpose(out, (0, 2, 1))[..., None]                   # (B, C, N, 1)


if __name__ == "__main__":
    # module default in_channel=128 keeps the lane axis dense; with B=2 the
    # heuristic picks bb=1 -> grid=(2,) so both v7x TensorCores get a step.
    B, C, N = 2, 128, 64
    key = jax.random.PRNGKey(0)
    k_x, k_p = jax.random.split(key)
    features = jax.random.normal(k_x, (B, C, N, 1), jnp.float32)
    w1f, b1f, w2f, b2f = make_params(k_p, C)

    out = dgcnn_block(features, w1f, b1f, w2f, b2f)
    out = jax.block_until_ready(out)

    ref = jax.block_until_ready(reference_forward(features, w1f, b1f, w2f, b2f))
    assert out.shape == (B, C, N, 1)
    assert jnp.allclose(out, ref, rtol=1e-3, atol=1e-3)
    print("KERNEL_OK")
</pallas_src>

<mosaic_0001>
module attributes {stable_mosaic.version = 11 : i64} {
  func.func @dgcnn_block_kernel(%arg0: i32, %arg1: memref<1x64x128xf32, #tpu.memory_space<vmem>>, %arg2: memref<128x512xf32, #tpu.memory_space<vmem>>, %arg3: memref<1x128xf32, #tpu.memory_space<vmem>>, %arg4: memref<384x128xf32, #tpu.memory_space<vmem>>, %arg5: memref<1x128xf32, #tpu.memory_space<vmem>>, %arg6: memref<1x64x128xf32, #tpu.memory_space<vmem>>) attributes {dimension_semantics = [#tpu.dimension_semantics<parallel>], iteration_bounds = array<i64: 2>, scalar_prefetch = 0 : i64, scratch_operands = 0 : i64, tpu.core_type = #tpu.core_type<tc>, window_params = [{transform_indices = @transform_0, window_bounds = array<i64: 1, 64, 128>}, {pipeline_mode = #tpu.pipeline_mode<synchronous>, transform_indices = @transform_1, window_bounds = array<i64: 128, 512>}, {pipeline_mode = #tpu.pipeline_mode<synchronous>, transform_indices = @transform_2, window_bounds = array<i64: 1, 128>}, {pipeline_mode = #tpu.pipeline_mode<synchronous>, transform_indices = @transform_3, window_bounds = array<i64: 384, 128>}, {pipeline_mode = #tpu.pipeline_mode<synchronous>, transform_indices = @transform_4, window_bounds = array<i64: 1, 128>}, {transform_indices = @transform_5, window_bounds = array<i64: 1, 64, 128>}]} {
    %c0 = arith.constant 0 : index
    %c0_0 = arith.constant 0 : index
    %c0_1 = arith.constant 0 : index
    %0 = vector.load %arg1[%c0, %c0_0, %c0_1] : memref<1x64x128xf32, #tpu.memory_space<vmem>>, vector<1x64x128xf32>
    %1 = vector.shape_cast %0 : vector<1x64x128xf32> to vector<64x128xf32>
    %c0_2 = arith.constant 0 : index
    %c0_3 = arith.constant 0 : index
    %2 = vector.load %arg2[%c0_2, %c0_3] : memref<128x512xf32, #tpu.memory_space<vmem>>, vector<128x512xf32>
    %cst = arith.constant dense<0.000000e+00> : vector<64x512xf32>
    %3 = tpu.matmul %1, %2, %cst {dimension_numbers = #tpu.dot_dimension_numbers<[1], [0], [0], [1], [0, 0, 1, 1], [], []>} : vector<64x128xf32>, vector<128x512xf32>, vector<64x512xf32> -> vector<64x512xf32>
    %c0_4 = arith.constant 0 : index
    %c0_5 = arith.constant 0 : index
    %4 = vector.load %arg3[%c0_4, %c0_5] : memref<1x128xf32, #tpu.memory_space<vmem>>, vector<1x128xf32>
    %5 = vector.extract_strided_slice %3 {offsets = [0, 0], sizes = [64, 128], strides = [1, 1]} : vector<64x512xf32> to vector<64x128xf32>
    %6 = vector.broadcast %4 : vector<1x128xf32> to vector<64x128xf32>
    %7 = arith.addf %6, %5 : vector<64x128xf32>
    %8 = vector.extract_strided_slice %3 {offsets = [0, 128], sizes = [64, 384], strides = [1, 1]} : vector<64x512xf32> to vector<64x384xf32>
    %9 = vector.shape_cast %8 : vector<64x384xf32> to vector<1x64x384xf32>
    "tpu.trace_start"() <{level = 10 : i32, message = "bnc,bmc->bnm"}> : () -> ()
    %cst_6 = arith.constant dense<0.000000e+00> : vector<1x64x64xf32>
    %10 = tpu.matmul %0, %0, %cst_6 {dimension_numbers = #tpu.dot_dimension_numbers<[2], [2], [1], [1], [0, 0, 0, 1, 1, 1], [0], [0]>} : vector<1x64x128xf32>, vector<1x64x128xf32>, vector<1x64x64xf32> -> vector<1x64x64xf32>
    "tpu.trace_stop"() : () -> ()
    %11 = arith.mulf %0, %0 : vector<1x64x128xf32>
    %cst_7 = arith.constant dense<0.000000e+00> : vector<1x64xf32>
    %12 = vector.multi_reduction <add>, %11, %cst_7 [2] : vector<1x64x128xf32> to vector<1x64xf32>
    %13 = vector.shape_cast %12 : vector<1x64xf32> to vector<1x1x64xf32>
    %cst_8 = arith.constant 5.000000e-01 : f32
    %14 = vector.broadcast %cst_8 : f32 to vector<1x1x64xf32>
    %15 = arith.mulf %14, %13 : vector<1x1x64xf32>
    %16 = vector.broadcast %15 : vector<1x1x64xf32> to vector<1x64x64xf32>
    %17 = arith.subf %10, %16 : vector<1x64x64xf32>
    %18 = tpu.iota {dimensions = array<i32: 2>} : vector<1x64x64xi32>
    %19 = arith.sitofp %18 : vector<1x64x64xi32> to vector<1x64x64xf32>
    %cst_9 = arith.constant dense<0xFF800000> : vector<1x64xf32>
    %20 = vector.multi_reduction <maximumf>, %17, %cst_9 [2] : vector<1x64x64xf32> to vector<1x64xf32>
    %21 = vector.shape_cast %20 : vector<1x64xf32> to vector<1x64x1xf32>
    %22 = vector.broadcast %21 : vector<1x64x1xf32> to vector<1x64x64xf32>
    %23 = arith.cmpf oeq, %17, %22 : vector<1x64x64xf32>
    %cst_10 = arith.constant 6.400000e+01 : f32
    %24 = vector.broadcast %cst_10 : f32 to vector<1x64x64xf32>
    %25 = arith.select %23, %19, %24 : vector<1x64x64xi1>, vector<1x64x64xf32>
    %cst_11 = arith.constant dense<0x7F800000> : vector<1x64xf32>
    %26 = vector.multi_reduction <minimumf>, %25, %cst_11 [2] : vector<1x64x64xf32> to vector<1x64xf32>
    %27 = vector.shape_cast %26 : vector<1x64xf32> to vector<1x64x1xf32>
    %28 = vector.broadcast %27 : vector<1x64x1xf32> to vector<1x64x64xf32>
    %29 = arith.cmpf oeq, %19, %28 : vector<1x64x64xf32>
    %30 = arith.extui %29 : vector<1x64x64xi1> to vector<1x64x64xi32>
    %31 = arith.sitofp %30 : vector<1x64x64xi32> to vector<1x64x64xf32>
    %32 = vector.extract_strided_slice %9 {offsets = [0, 0, 0], sizes = [1, 64, 128], strides = [1, 1, 1]} : vector<1x64x384xf32> to vector<1x64x128xf32>
    "tpu.trace_start"() <{level = 10 : i32, message = "bnm,bmc->bnc"}> : () -> ()
    %cst_12 = arith.constant dense<0.000000e+00> : vector<1x64x128xf32>
    %33 = tpu.matmul %31, %32, %cst_12 {dimension_numbers = #tpu.dot_dimension_numbers<[2], [1], [1], [2], [0, 0, 0, 1, 1, 2], [0], [0]>} : vector<1x64x64xf32>, vector<1x64x128xf32>, vector<1x64x128xf32> -> vector<1x64x128xf32>
    %cst_13 = arith.constant 0xFF800000 : f32
    "tpu.trace_stop"() : () -> ()
    %34 = vector.broadcast %cst_13 : f32 to vector<1x64x64xf32>
    %35 = arith.select %29, %34, %17 : vector<1x64x64xi1>, vector<1x64x64xf32>
    %cst_14 = arith.constant dense<0xFF800000> : vector<1x64xf32>
    %36 = vector.multi_reduction <maximumf>, %35, %cst_14 [2] : vector<1x64x64xf32> to vector<1x64xf32>
    %37 = vector.shape_cast %36 : vector<1x64xf32> to vector<1x64x1xf32>
    %38 = vector.broadcast %37 : vector<1x64x1xf32> to vector<1x64x64xf32>
    %39 = arith.cmpf oeq, %35, %38 : vector<1x64x64xf32>
    %cst_15 = arith.constant 6.400000e+01 : f32
    %40 = vector.broadcast %cst_15 : f32 to vector<1x64x64xf32>
    %41 = arith.select %39, %19, %40 : vector<1x64x64xi1>, vector<1x64x64xf32>
    %cst_16 = arith.constant dense<0x7F800000> : vector<1x64xf32>
    %42 = vector.multi_reduction <minimumf>, %41, %cst_16 [2] : vector<1x64x64xf32> to vector<1x64xf32>
    %43 = vector.shape_cast %42 : vector<1x64xf32> to vector<1x64x1xf32>
    %44 = vector.broadcast %43 : vector<1x64x1xf32> to vector<1x64x64xf32>
    %45 = arith.cmpf oeq, %19, %44 : vector<1x64x64xf32>
    %46 = arith.extui %45 : vector<1x64x64xi1> to vector<1x64x64xi32>
    %47 = arith.sitofp %46 : vector<1x64x64xi32> to vector<1x64x64xf32>
    %48 = vector.extract_strided_slice %9 {offsets = [0, 0, 128], sizes = [1, 64, 128], strides = [1, 1, 1]} : vector<1x64x384xf32> to vector<1x64x128xf32>
    "tpu.trace_start"() <{level = 10 : i32, message = "bnm,bmc->bnc"}> : () -> ()
    %cst_17 = arith.constant dense<0.000000e+00> : vector<1x64x128xf32>
    %49 = tpu.matmul %47, %48, %cst_17 {dimension_numbers = #tpu.dot_dimension_numbers<[2], [1], [1], [2], [0, 0, 0, 1, 1, 2], [0], [0]>} : vector<1x64x64xf32>, vector<1x64x128xf32>, vector<1x64x128xf32> -> vector<1x64x128xf32>
    "tpu.trace_stop"() : () -> ()
    %50 = arith.addf %33, %49 : vector<1x64x128xf32>
    %cst_18 = arith.constant 0xFF800000 : f32
    %51 = vector.broadcast %cst_18 : f32 to vector<1x64x64xf32>
    %52 = arith.select %45, %51, %35 : vector<1x64x64xi1>, vector<1x64x64xf32>
    %cst_19 = arith.constant dense<0xFF800000> : vector<1x64xf32>
    %53 = vector.multi_reduction <maximumf>, %52, %cst_19 [2] : vector<1x64x64xf32> to vector<1x64xf32>
    %54 = vector.shape_cast %53 : vector<1x64xf32> to vector<1x64x1xf32>
    %55 = vector.broadcast %54 : vector<1x64x1xf32> to vector<1x64x64xf32>
    %56 = arith.cmpf oeq, %52, %55 : vector<1x64x64xf32>
    %cst_20 = arith.constant 6.400000e+01 : f32
    %57 = vector.broadcast %cst_20 : f32 to vector<1x64x64xf32>
    %58 = arith.select %56, %19, %57 : vector<1x64x64xi1>, vector<1x64x64xf32>
    %cst_21 = arith.constant dense<0x7F800000> : vector<1x64xf32>
    %59 = vector.multi_reduction <minimumf>, %58, %cst_21 [2] : vector<1x64x64xf32> to vector<1x64xf32>
    %60 = vector.shape_cast %59 : vector<1x64xf32> to vector<1x64x1xf32>
    %61 = vector.broadcast %60 : vector<1x64x1xf32> to vector<1x64x64xf32>
    %62 = arith.cmpf oeq, %19, %61 : vector<1x64x64xf32>
    %63 = arith.extui %62 : vector<1x64x64xi1> to vector<1x64x64xi32>
    %64 = arith.sitofp %63 : vector<1x64x64xi32> to vector<1x64x64xf32>
    %65 = vector.extract_strided_slice %9 {offsets = [0, 0, 256], sizes = [1, 64, 128], strides = [1, 1, 1]} : vector<1x64x384xf32> to vector<1x64x128xf32>
    "tpu.trace_start"() <{level = 10 : i32, message = "bnm,bmc->bnc"}> : () -> ()
    %cst_22 = arith.constant dense<0.000000e+00> : vector<1x64x128xf32>
    %66 = tpu.matmul %64, %65, %cst_22 {dimension_numbers = #tpu.dot_dimension_numbers<[2], [1], [1], [2], [0, 0, 0, 1, 1, 2], [0], [0]>} : vector<1x64x64xf32>, vector<1x64x128xf32>, vector<1x64x128xf32> -> vector<1x64x128xf32>
    "tpu.trace_stop"() : () -> ()
    %67 = arith.addf %50, %66 : vector<1x64x128xf32>
    %cst_23 = arith.constant 0xFF800000 : f32
    %68 = vector.broadcast %cst_23 : f32 to vector<1x64x64xf32>
    %69 = arith.select %62, %68, %52 : vector<1x64x64xi1>, vector<1x64x64xf32>
    %cst_24 = arith.constant dense<0xFF800000> : vector<1x64xf32>
    %70 = vector.multi_reduction <maximumf>, %69, %cst_24 [2] : vector<1x64x64xf32> to vector<1x64xf32>
    %71 = vector.shape_cast %70 : vector<1x64xf32> to vector<1x64x1xf32>
    %72 = vector.broadcast %71 : vector<1x64x1xf32> to vector<1x64x64xf32>
    %73 = arith.cmpf oeq, %69, %72 : vector<1x64x64xf32>
    %cst_25 = arith.constant 6.400000e+01 : f32
    %74 = vector.broadcast %cst_25 : f32 to vector<1x64x64xf32>
    %75 = arith.select %73, %19, %74 : vector<1x64x64xi1>, vector<1x64x64xf32>
    %cst_26 = arith.constant dense<0x7F800000> : vector<1x64xf32>
    %76 = vector.multi_reduction <minimumf>, %75, %cst_26 [2] : vector<1x64x64xf32> to vector<1x64xf32>
    %77 = vector.shape_cast %76 : vector<1x64xf32> to vector<1x64x1xf32>
    %78 = vector.broadcast %77 : vector<1x64x1xf32> to vector<1x64x64xf32>
    %79 = arith.cmpf oeq, %19, %78 : vector<1x64x64xf32>
    %80 = arith.extui %79 : vector<1x64x64xi1> to vector<1x64x64xi32>
    %81 = arith.sitofp %80 : vector<1x64x64xi32> to vector<1x64x64xf32>
    %82 = vector.extract_strided_slice %9 {offsets = [0, 0, 0], sizes = [1, 64, 128], strides = [1, 1, 1]} : vector<1x64x384xf32> to vector<1x64x128xf32>
    "tpu.trace_start"() <{level = 10 : i32, message = "bnm,bmc->bnc"}> : () -> ()
    %cst_27 = arith.constant dense<0.000000e+00> : vector<1x64x128xf32>
    %83 = tpu.matmul %81, %82, %cst_27 {dimension_numbers = #tpu.dot_dimension_numbers<[2], [1], [1], [2], [0, 0, 0, 1, 1, 2], [0], [0]>} : vector<1x64x64xf32>, vector<1x64x128xf32>, vector<1x64x128xf32> -> vector<1x64x128xf32>
    %cst_28 = arith.constant 0xFF800000 : f32
    "tpu.trace_stop"() : () -> ()
    %84 = vector.broadcast %cst_28 : f32 to vector<1x64x64xf32>
    %85 = arith.select %79, %84, %69 : vector<1x64x64xi1>, vector<1x64x64xf32>
    %cst_29 = arith.constant dense<0xFF800000> : vector<1x64xf32>
    %86 = vector.multi_reduction <maximumf>, %85, %cst_29 [2] : vector<1x64x64xf32> to vector<1x64xf32>
    %87 = vector.shape_cast %86 : vector<1x64xf32> to vector<1x64x1xf32>
    %88 = vector.broadcast %87 : vector<1x64x1xf32> to vector<1x64x64xf32>
    %89 = arith.cmpf oeq, %85, %88 : vector<1x64x64xf32>
    %cst_30 = arith.constant 6.400000e+01 : f32
    %90 = vector.broadcast %cst_30 : f32 to vector<1x64x64xf32>
    %91 = arith.select %89, %19, %90 : vector<1x64x64xi1>, vector<1x64x64xf32>
    %cst_31 = arith.constant dense<0x7F800000> : vector<1x64xf32>
    %92 = vector.multi_reduction <minimumf>, %91, %cst_31 [2] : vector<1x64x64xf32> to vector<1x64xf32>
    %93 = vector.shape_cast %92 : vector<1x64xf32> to vector<1x64x1xf32>
    %94 = vector.broadcast %93 : vector<1x64x1xf32> to vector<1x64x64xf32>
    %95 = arith.cmpf oeq, %19, %94 : vector<1x64x64xf32>
    %96 = arith.extui %95 : vector<1x64x64xi1> to vector<1x64x64xi32>
    %97 = arith.sitofp %96 : vector<1x64x64xi32> to vector<1x64x64xf32>
    %98 = vector.extract_strided_slice %9 {offsets = [0, 0, 128], sizes = [1, 64, 128], strides = [1, 1, 1]} : vector<1x64x384xf32> to vector<1x64x128xf32>
    "tpu.trace_start"() <{level = 10 : i32, message = "bnm,bmc->bnc"}> : () -> ()
    %cst_32 = arith.constant dense<0.000000e+00> : vector<1x64x128xf32>
    %99 = tpu.matmul %97, %98, %cst_32 {dimension_numbers = #tpu.dot_dimension_numbers<[2], [1], [1], [2], [0, 0, 0, 1, 1, 2], [0], [0]>} : vector<1x64x64xf32>, vector<1x64x128xf32>, vector<1x64x128xf32> -> vector<1x64x128xf32>
    "tpu.trace_stop"() : () -> ()
    %100 = arith.addf %83, %99 : vector<1x64x128xf32>
    %cst_33 = arith.constant 0xFF800000 : f32
    %101 = vector.broadcast %cst_33 : f32 to vector<1x64x64xf32>
    %102 = arith.select %95, %101, %85 : vector<1x64x64xi1>, vector<1x64x64xf32>
    %cst_34 = arith.constant dense<0xFF800000> : vector<1x64xf32>
    %103 = vector.multi_reduction <maximumf>, %102, %cst_34 [2] : vector<1x64x64xf32> to vector<1x64xf32>
    %104 = vector.shape_cast %103 : vector<1x64xf32> to vector<1x64x1xf32>
    %105 = vector.broadcast %104 : vector<1x64x1xf32> to vector<1x64x64xf32>
    %106 = arith.cmpf oeq, %102, %105 : vector<1x64x64xf32>
    %cst_35 = arith.constant 6.400000e+01 : f32
    %107 = vector.broadcast %cst_35 : f32 to vector<1x64x64xf32>
    %108 = arith.select %106, %19, %107 : vector<1x64x64xi1>, vector<1x64x64xf32>
    %cst_36 = arith.constant dense<0x7F800000> : vector<1x64xf32>
    %109 = vector.multi_reduction <minimumf>, %108, %cst_36 [2] : vector<1x64x64xf32> to vector<1x64xf32>
    %110 = vector.shape_cast %109 : vector<1x64xf32> to vector<1x64x1xf32>
    %111 = vector.broadcast %110 : vector<1x64x1xf32> to vector<1x64x64xf32>
    %112 = arith.cmpf oeq, %19, %111 : vector<1x64x64xf32>
    %113 = arith.extui %112 : vector<1x64x64xi1> to vector<1x64x64xi32>
    %114 = arith.sitofp %113 : vector<1x64x64xi32> to vector<1x64x64xf32>
    %115 = vector.extract_strided_slice %9 {offsets = [0, 0, 256], sizes = [1, 64, 128], strides = [1, 1, 1]} : vector<1x64x384xf32> to vector<1x64x128xf32>
    "tpu.trace_start"() <{level = 10 : i32, message = "bnm,bmc->bnc"}> : () -> ()
    %cst_37 = arith.constant dense<0.000000e+00> : vector<1x64x128xf32>
    %116 = tpu.matmul %114, %115, %cst_37 {dimension_numbers = #tpu.dot_dimension_numbers<[2], [1], [1], [2], [0, 0, 0, 1, 1, 2], [0], [0]>} : vector<1x64x64xf32>, vector<1x64x128xf32>, vector<1x64x128xf32> -> vector<1x64x128xf32>
    "tpu.trace_stop"() : () -> ()
    %117 = arith.addf %100, %116 : vector<1x64x128xf32>
    %cst_38 = arith.constant 0xFF800000 : f32
    %118 = vector.broadcast %cst_38 : f32 to vector<1x64x64xf32>
    %119 = arith.select %112, %118, %102 : vector<1x64x64xi1>, vector<1x64x64xf32>
    %cst_39 = arith.constant dense<0xFF800000> : vector<1x64xf32>
    %120 = vector.multi_reduction <maximumf>, %119, %cst_39 [2] : vector<1x64x64xf32> to vector<1x64xf32>
    %121 = vector.shape_cast %120 : vector<1x64xf32> to vector<1x64x1xf32>
    %122 = vector.broadcast %121 : vector<1x64x1xf32> to vector<1x64x64xf32>
    %123 = arith.cmpf oeq, %119, %122 : vector<1x64x64xf32>
    %cst_40 = arith.constant 6.400000e+01 : f32
    %124 = vector.broadcast %cst_40 : f32 to vector<1x64x64xf32>
    %125 = arith.select %123, %19, %124 : vector<1x64x64xi1>, vector<1x64x64xf32>
    %cst_41 = arith.constant dense<0x7F800000> : vector<1x64xf32>
    %126 = vector.multi_reduction <minimumf>, %125, %cst_41 [2] : vector<1x64x64xf32> to vector<1x64xf32>
    %127 = vector.shape_cast %126 : vector<1x64xf32> to vector<1x64x1xf32>
    %128 = vector.broadcast %127 : vector<1x64x1xf32> to vector<1x64x64xf32>
    %129 = arith.cmpf oeq, %19, %128 : vector<1x64x64xf32>
    %130 = arith.extui %129 : vector<1x64x64xi1> to vector<1x64x64xi32>
    %131 = arith.sitofp %130 : vector<1x64x64xi32> to vector<1x64x64xf32>
    %132 = vector.extract_strided_slice %9 {offsets = [0, 0, 0], sizes = [1, 64, 128], strides = [1, 1, 1]} : vector<1x64x384xf32> to vector<1x64x128xf32>
    "tpu.trace_start"() <{level = 10 : i32, message = "bnm,bmc->bnc"}> : () -> ()
    %cst_42 = arith.constant dense<0.000000e+00> : vector<1x64x128xf32>
    %133 = tpu.matmul %131, %132, %cst_42 {dimension_numbers = #tpu.dot_dimension_numbers<[2], [1], [1], [2], [0, 0, 0, 1, 1, 2], [0], [0]>} : vector<1x64x64xf32>, vector<1x64x128xf32>, vector<1x64x128xf32> -> vector<1x64x128xf32>
    %cst_43 = arith.constant 0xFF800000 : f32
    "tpu.trace_stop"() : () -> ()
    %134 = vector.broadcast %cst_43 : f32 to vector<1x64x64xf32>
    %135 = arith.select %129, %134, %119 : vector<1x64x64xi1>, vector<1x64x64xf32>
    %cst_44 = arith.constant dense<0xFF800000> : vector<1x64xf32>
    %136 = vector.multi_reduction <maximumf>, %135, %cst_44 [2] : vector<1x64x64xf32> to vector<1x64xf32>
    %137 = vector.shape_cast %136 : vector<1x64xf32> to vector<1x64x1xf32>
    %138 = vector.broadcast %137 : vector<1x64x1xf32> to vector<1x64x64xf32>
    %139 = arith.cmpf oeq, %135, %138 : vector<1x64x64xf32>
    %cst_45 = arith.constant 6.400000e+01 : f32
    %140 = vector.broadcast %cst_45 : f32 to vector<1x64x64xf32>
    %141 = arith.select %139, %19, %140 : vector<1x64x64xi1>, vector<1x64x64xf32>
    %cst_46 = arith.constant dense<0x7F800000> : vector<1x64xf32>
    %142 = vector.multi_reduction <minimumf>, %141, %cst_46 [2] : vector<1x64x64xf32> to vector<1x64xf32>
    %143 = vector.shape_cast %142 : vector<1x64xf32> to vector<1x64x1xf32>
    %144 = vector.broadcast %143 : vector<1x64x1xf32> to vector<1x64x64xf32>
    %145 = arith.cmpf oeq, %19, %144 : vector<1x64x64xf32>
    %146 = arith.extui %145 : vector<1x64x64xi1> to vector<1x64x64xi32>
    %147 = arith.sitofp %146 : vector<1x64x64xi32> to vector<1x64x64xf32>
    %148 = vector.extract_strided_slice %9 {offsets = [0, 0, 128], sizes = [1, 64, 128], strides = [1, 1, 1]} : vector<1x64x384xf32> to vector<1x64x128xf32>
    "tpu.trace_start"() <{level = 10 : i32, message = "bnm,bmc->bnc"}> : () -> ()
    %cst_47 = arith.constant dense<0.000000e+00> : vector<1x64x128xf32>
    %149 = tpu.matmul %147, %148, %cst_47 {dimension_numbers = #tpu.dot_dimension_numbers<[2], [1], [1], [2], [0, 0, 0, 1, 1, 2], [0], [0]>} : vector<1x64x64xf32>, vector<1x64x128xf32>, vector<1x64x128xf32> -> vector<1x64x128xf32>
    "tpu.trace_stop"() : () -> ()
    %150 = arith.addf %133, %149 : vector<1x64x128xf32>
    %cst_48 = arith.constant 0xFF800000 : f32
    %151 = vector.broadcast %cst_48 : f32 to vector<1x64x64xf32>
    %152 = arith.select %145, %151, %135 : vector<1x64x64xi1>, vector<1x64x64xf32>
    %cst_49 = arith.constant dense<0xFF800000> : vector<1x64xf32>
    %153 = vector.multi_reduction <maximumf>, %152, %cst_49 [2] : vector<1x64x64xf32> to vector<1x64xf32>
    %154 = vector.shape_cast %153 : vector<1x64xf32> to vector<1x64x1xf32>
    %155 = vector.broadcast %154 : vector<1x64x1xf32> to vector<1x64x64xf32>
    %156 = arith.cmpf oeq, %152, %155 : vector<1x64x64xf32>
    %cst_50 = arith.constant 6.400000e+01 : f32
    %157 = vector.broadcast %cst_50 : f32 to vector<1x64x64xf32>
    %158 = arith.select %156, %19, %157 : vector<1x64x64xi1>, vector<1x64x64xf32>
    %cst_51 = arith.constant dense<0x7F800000> : vector<1x64xf32>
    %159 = vector.multi_reduction <minimumf>, %158, %cst_51 [2] : vector<1x64x64xf32> to vector<1x64xf32>
    %160 = vector.shape_cast %159 : vector<1x64xf32> to vector<1x64x1xf32>
    %161 = vector.broadcast %160 : vector<1x64x1xf32> to vector<1x64x64xf32>
    %162 = arith.cmpf oeq, %19, %161 : vector<1x64x64xf32>
    %163 = arith.extui %162 : vector<1x64x64xi1> to vector<1x64x64xi32>
    %164 = arith.sitofp %163 : vector<1x64x64xi32> to vector<1x64x64xf32>
    %165 = vector.extract_strided_slice %9 {offsets = [0, 0, 256], sizes = [1, 64, 128], strides = [1, 1, 1]} : vector<1x64x384xf32> to vector<1x64x128xf32>
    "tpu.trace_start"() <{level = 10 : i32, message = "bnm,bmc->bnc"}> : () -> ()
    %cst_52 = arith.constant dense<0.000000e+00> : vector<1x64x128xf32>
    %166 = tpu.matmul %164, %165, %cst_52 {dimension_numbers = #tpu.dot_dimension_numbers<[2], [1], [1], [2], [0, 0, 0, 1, 1, 2], [0], [0]>} : vector<1x64x64xf32>, vector<1x64x128xf32>, vector<1x64x128xf32> -> vector<1x64x128xf32>
    "tpu.trace_stop"() : () -> ()
    %167 = arith.addf %150, %166 : vector<1x64x128xf32>
    %168 = vector.shape_cast %67 : vector<1x64x128xf32> to vector<64x128xf32>
    %169 = arith.subf %7, %168 : vector<64x128xf32>
    %cst_53 = arith.constant 0.000000e+00 : f32
    %170 = vector.broadcast %cst_53 : f32 to vector<64x128xf32>
    %171 = arith.maximumf %169, %170 : vector<64x128xf32>
    %172 = vector.shape_cast %117 : vector<1x64x128xf32> to vector<64x128xf32>
    %173 = arith.subf %7, %172 : vector<64x128xf32>
    %cst_54 = arith.constant 0.000000e+00 : f32
    %174 = vector.broadcast %cst_54 : f32 to vector<64x128xf32>
    %175 = arith.maximumf %173, %174 : vector<64x128xf32>
    %176 = vector.shape_cast %167 : vector<1x64x128xf32> to vector<64x128xf32>
    %177 = arith.subf %7, %176 : vector<64x128xf32>
    %cst_55 = arith.constant 0.000000e+00 : f32
    %178 = vector.broadcast %cst_55 : f32 to vector<64x128xf32>
    %179 = arith.maximumf %177, %178 : vector<64x128xf32>
    %180 = tpu.concatenate %171, %175, %179 in 1 : vector<64x128xf32>, vector<64x128xf32>, vector<64x128xf32> -> vector<64x384xf32>
    %c0_56 = arith.constant 0 : index
    %c0_57 = arith.constant 0 : index
    %181 = vector.load %arg4[%c0_56, %c0_57] : memref<384x128xf32, #tpu.memory_space<vmem>>, vector<384x128xf32>
    %cst_58 = arith.constant dense<0.000000e+00> : vector<64x128xf32>
    %182 = tpu.matmul %180, %181, %cst_58 {dimension_numbers = #tpu.dot_dimension_numbers<[1], [0], [0], [1], [0, 0, 1, 1], [], []>} : vector<64x384xf32>, vector<384x128xf32>, vector<64x128xf32> -> vector<64x128xf32>
    %c0_59 = arith.constant 0 : index
    %c0_60 = arith.constant 0 : index
    %183 = vector.load %arg5[%c0_59, %c0_60] : memref<1x128xf32, #tpu.memory_space<vmem>>, vector<1x128xf32>
    %184 = vector.broadcast %183 : vector<1x128xf32> to vector<64x128xf32>
    %185 = arith.addf %182, %184 : vector<64x128xf32>
    %cst_61 = arith.constant 0.000000e+00 : f32
    %186 = vector.broadcast %cst_61 : f32 to vector<64x128xf32>
    %187 = arith.maximumf %185, %186 : vector<64x128xf32>
    %188 = vector.shape_cast %187 : vector<64x128xf32> to vector<1x64x128xf32>
    %c0_62 = arith.constant 0 : index
    %c0_63 = arith.constant 0 : index
    %c0_64 = arith.constant 0 : index
    %189 = vector.load %arg6[%c0_62, %c0_63, %c0_64] : memref<1x64x128xf32, #tpu.memory_space<vmem>>, vector<1x64x128xf32>
    tpu.vector_store %arg6[%c0_62, %c0_63, %c0_64], %188 {strides = array<i32>} : memref<1x64x128xf32, #tpu.memory_space<vmem>>, vector<1x64x128xf32>,
    return
  }
  func.func @transform_0(%arg0: i32) -> (i32, i32, i32) {
    %c0_i32 = arith.constant 0 : i32
    %c0_i32_0 = arith.constant 0 : i32
    %c0_i32_1 = arith.constant 0 : i32
    return %arg0, %c0_i32, %c0_i32_0 : i32, i32, i32
  }
  func.func @transform_1(%arg0: i32) -> (i32, i32) {
    %c0_i32 = arith.constant 0 : i32
    %c0_i32_0 = arith.constant 0 : i32
    %c0_i32_1 = arith.constant 0 : i32
    return %c0_i32, %c0_i32_0 : i32, i32
  }
  func.func @transform_2(%arg0: i32) -> (i32, i32) {
    %c0_i32 = arith.constant 0 : i32
    %c0_i32_0 = arith.constant 0 : i32
    %c0_i32_1 = arith.constant 0 : i32
    return %c0_i32, %c0_i32_0 : i32, i32
  }
  func.func @transform_3(%arg0: i32) -> (i32, i32) {
    %c0_i32 = arith.constant 0 : i32
    %c0_i32_0 = arith.constant 0 : i32
    %c0_i32_1 = arith.constant 0 : i32
    return %c0_i32, %c0_i32_0 : i32, i32
  }
  func.func @transform_4(%arg0: i32) -> (i32, i32) {
    %c0_i32 = arith.constant 0 : i32
    %c0_i32_0 = arith.constant 0 : i32
    %c0_i32_1 = arith.constant 0 : i32
    return %c0_i32, %c0_i32_0 : i32, i32
  }
  func.func @transform_5(%arg0: i32) -> (i32, i32, i32) {
    %c0_i32 = arith.constant 0 : i32
    %c0_i32_0 = arith.constant 0 : i32
    %c0_i32_1 = arith.constant 0 : i32
    return %arg0, %c0_i32, %c0_i32_0 : i32, i32, i32
  }
}

</mosaic_0001>

<bundles_post_ra>
// kernel: tpu_custom_call.1
= control target key start
LH: loop header
LB: loop body
LE: loop exit
PB: predicated region body
PF: predicated region fallthrough
CT: control target
= control target key end

     0   :  { %10 = vsyncpa [#allocation3], 0  ;;  %s6205_s0 = inlined_call_operand.hbm [shape: f32[2,64,128], index: 0, kind: input, shape index: {}]   ;;  %s6206_s1 = inlined_call_operand.hbm [shape: f32[128,512], index: 1, kind: input, shape index: {}]   ;;  %s6207_s2 = inlined_call_operand.vmem [shape: f32[1,128], index: 2, kind: input, shape index: {}]   ;;  %s6208_s3 = inlined_call_operand.hbm [shape: f32[384,128], index: 3, kind: input, shape index: {}]   ;;  %s6209_s4 = inlined_call_operand.vmem [shape: f32[1,128], index: 4, kind: input, shape index: {}]   ;;  %s6210_s5 = inlined_call_operand.hbm [shape: f32[2,64,128], index: 5, kind: output, shape index: {}]  }
   0x1   :  { %12 = vsyncpa [#allocation3 + $0x1], 0 }
   0x2   :  { %13 = vsyncpa [#allocation6], 0 }
   0x3   :  { %14 = vsyncpa [#allocation4], 0 }
   0x4   :  { %16 = vsyncpa [#allocation4 + $0x1], 0  ;;  %s4623_s18 = smov 0   ;;  %s4625_s19 = smov 0  }
   0x5   :  { %s4627_s20 = smov 0   ;;  %s4629_s21 = smov 0  }
   0x6 LB: > { %s4644_s22 = sadd.s32 4294967295, %s4580_s21   ;;  %s3284_s23 = sadd.s32 4294967294, %s4580_s21   ;;  %s4580_s21 = sphi %s4629_s21, %s6230_s21   ;;  %s4576_s20 = sphi %s4627_s20, %s6229_s20   ;;  %s4572_s19 = sphi %s4625_s19, %s6228_s19   ;;  %s4568_s18 = sphi %s4623_s18, %s6227_s18  }
   0x7   : > { %p42_p0 = scmp.ne.s32.totalorder %s4572_s19, %s4568_s18  ;;  %p6211_p1 = scmp.eq.s32.totalorder %s4644_s22, 0 }
   0x8   : > { %p156_p3 = scmp.eq.s32.totalorder %s3284_s23, 1  ;;  %p3285_p5 = scmp.ge.s32.totalorder %s4580_s21, 1 }
   0x9   : > { %p4653_p4 = por %p6211_p1, %p42_p0  ;;  %p163_p7 = scmp.lt.s32.totalorder %s4580_s21, 3 }
   0xa   : > { %p4658_p6 = por %p156_p3, %p42_p0  ;;  %s4582_s27 = smov [#allocation5]  }
   0xb   : > { %s6214_s24 = scalar_select %p4653_p4, 1, 0 }
   0xc   : > { %s6215_s25 = scalar_select %p4658_p6, 1, 0 }
   0xd   : > { %p4663_p8 = pnand %p3285_p5, %p163_p7  ;;  %s175_s28 = sshll.u32 %s4582_s27, 4  ;;  %s4667_s28 = int_to_ptr.vmem [resolvable:$true] %s175_s28 }
   0xe   : > { %s4583_s30 = smov [#allocation7]   ;;  %s4424_s9 = scalar_lea.hbm %s6206_s1, 8192 }
   0xf   : > { %p4362_p9 = pneg %p4663_p8  ;;  %s191_s6 = sshll.u32 %s4583_s30, 4  ;;  %s4678_s6 = int_to_ptr.vmem [resolvable:$true] %s191_s6 }
  0x10   : > { %p4425_p12 = scmp.ne.s32.totalorder %s6206_s1, %s4424_s9  ;;  %p4431_p5 = scmp.lt.u32.totalorder %s4424_s9, %s6206_s1 }
  0x11   : > { %p4674_p11 = pnand %p4362_p9, %p6211_p1 }
  0x13   : > { %p4426_p13 = pneg %p4674_p11 }
  0x15   : > { %p4427_p0 = pnand %p4426_p13, %p4425_p12 }
  0x17   : > { %p4428_p3 = pneg %p4427_p0 }
  0x19   : > { %p4433_p7 = pnand %p4431_p5, %p4428_p3 }
  0x1b   : > { %4436 = shalt.err (!%p4433_p7)
}
  0x1c   : > { %s4437_s14 = scalar_lea.vmem %s4667_s28, 8192  ;;  %p4445_p2 = scmp.lt.s32.totalorder %s4667_s28, %s4667_s28 }
  0x1d   : > { %p4438_p9 = scmp.ne.s32.totalorder %s4667_s28, %s4437_s14  ;;  %p4446_p12 = scmp.lt.s32.totalorder %s4437_s14, %s4437_s14 }
  0x1f   : > { %p4440_p10 = pnand %p4438_p9, %p4426_p13  ;;  %p4447_p0 = por %p4446_p12, %p4445_p2 }
  0x21   : > { %p4441_p1 = pneg %p4440_p10 }
  0x23   : > { %p4448_p6 = pnand %p4447_p0, %p4441_p1 }
  0x25   : > { %4451 = shalt.err (!%p4448_p6)
}
  0x26   : > { %s4584_s15 = smov 512   ;;  %s4585_s16 = smov 32  }
  0x27   : > { %4365 = dma.hbm_to_vmem [thread:$0]  (!%p4674_p11), %s6206_s1, 8192, %s4667_s28, [#allocation6], %s4584_s15, %s4584_s15, %s4585_s16  }
  0x28   : > { %s4452_s7 = scalar_lea.hbm %s6208_s3, 6144 }
  0x29   : > { %p4453_p2 = scmp.ne.s32.totalorder %s6208_s3, %s4452_s7  ;;  %p4459_p10 = scmp.lt.u32.totalorder %s4452_s7, %s6208_s3 }
  0x2b   : > { %p4455_p1 = pnand %p4453_p2, %p4426_p13 }
  0x2d   : > { %p4456_p6 = pneg %p4455_p1 }
  0x2f   : > { %p4461_p3 = pnand %p4459_p10, %p4456_p6 }
  0x31   : > { %4464 = shalt.err (!%p4461_p3)
}
  0x32   : > { %s4465_s28 = scalar_lea.vmem %s4678_s6, 6144  ;;  %p4473_p12 = scmp.lt.s32.totalorder %s4678_s6, %s4678_s6 }
  0x33   : > { %p4466_p5 = scmp.ne.s32.totalorder %s4678_s6, %s4465_s28  ;;  %p4474_p0 = scmp.lt.s32.totalorder %s4465_s28, %s4465_s28 }
  0x35   : > { %p4468_p7 = pnand %p4466_p5, %p4426_p13  ;;  %p4475_p2 = por %p4474_p0, %p4473_p12 }
  0x37   : > { %p4469_p9 = pneg %p4468_p7 }
  0x39   : > { %p4476_p1 = pnand %p4475_p2, %p4469_p9 }
  0x3b   : > { %4479 = shalt.err (!%p4476_p1)
}
  0x3c   : > { %s4586_s12 = smov 128   ;;  %s4587_s13 = smov 8  }
  0x3d   : > { %4368 = dma.hbm_to_vmem [thread:$0]  (!%p4674_p11), %s6208_s3, 6144, %s4678_s6, [#allocation6], %s4586_s12, %s4586_s12, %s4587_s13  }
  0x3e   : > { %s4736_s16 = sadd.s32 1, %s4580_s21   ;;  %s29_s23 = sadd.s32 1, %s4576_s20 }
  0x3f   : > { %s26_s17 = ssub.s32 %s4580_s21, %s4736_s16  ;;  %p36_p6 = scmp.ne.s32.totalorder %s4576_s20, %s4572_s19 }
  0x40   : > { %p27_p13 = scmp.eq.s32.totalorder %s26_s17, 0  ;;  %p37_p10 = scmp.eq.s32.totalorder %s4580_s21, 0 }
  0x41   : > { %p6218_p5 = scmp.eq.s32.totalorder %s4644_s22, 1  ;;  %p4379_p9 = scmp.lt.s32.totalorder %s4580_s21, 2 }
  0x42   : > { %s4745_s27 = scalar_select %p27_p13, %s4576_s20, %s29_s23  }
  0x43   : > { %p38_p3 = por %p37_p10, %p36_p6  ;;  %p4749_p7 = por %p6218_p5, %p36_p6 }
  0x44   : > { %s208_s30 = sand.u32 1, %s4576_s20   ;;  %s3448_s6 = sshll.u32 %s4580_s21, 10 }
  0x45   : > { %s6219_s29 = scalar_select %p4749_p7, 1, 0 }
  0x46   : > { %s3289_s7 = sshll.u32 %s208_s30, 6  ;;  %s4759_s10 = scalar_lea.hbm %s6205_s0, %s3448_s6 }
  0x47   : > { %s212_s11 = scalar_lea.vmem [#allocation2], %s3289_s7  ;;  %p4763_p11 = pnand %p4379_p9, %p38_p3 }
  0x48   : > { %s219_s28 = sshll.u32 %s212_s11, 4  ;;  %s4767_s15 = scalar_lea.sflag [#allocation3], %s208_s30  ;;  %s4761_s28 = int_to_ptr.vmem [resolvable:$true] %s219_s28 }
  0x49   : > { %s4480_s17 = scalar_lea.hbm %s4759_s10, 1024  ;;  %p4482_p0 = pneg %p4763_p11 }
  0x4a   : > { %p4481_p12 = scmp.ne.s32.totalorder %s4759_s10, %s4480_s17  ;;  %s4485_s6 = scalar_lea.hbm %s6205_s0, 2048 }
  0x4b   : > { %p4486_p13 = scmp.lt.u32.totalorder %s4759_s10, %s6205_s0  ;;  %p4487_p6 = scmp.lt.u32.totalorder %s4485_s6, %s4480_s17 }
  0x4c   : > { %p4483_p2 = pnand %p4482_p0, %p4481_p12  ;;  %p4489_p3 = scmp.lt.u32.totalorder %s4480_s17, %s4759_s10 }
  0x4d   : > { %p4488_p10 = por %p4487_p6, %p4486_p13 }
  0x4e   : > { %p4484_p1 = pneg %p4483_p2 }
  0x4f   : > { %p4490_p5 = por %p4489_p3, %p4488_p10 }
  0x51   : > { %p4491_p9 = pnand %p4490_p5, %p4484_p1 }
  0x53   : > { %4494 = shalt.err (!%p4491_p9)
}
  0x54   : > { %s4495_s30 = scalar_lea.vmem %s4761_s28, 1024  ;;  %s4588_s11 = smov [#allocation2]  }
  0x55   : > { %p4496_p12 = scmp.ne.s32.totalorder %s4761_s28, %s4495_s30  ;;  %s4500_s23 = sshll.u32 %s4588_s11, 4  ;;  %s4501_s23 = int_to_ptr.vmem [resolvable:$false] %s4500_s23 }
  0x56   : > { %s4502_s7 = scalar_lea.vmem %s4501_s23, 2048  ;;  %p4503_p4 = scmp.lt.s32.totalorder %s4761_s28, %s4501_s23 }
  0x57   : > { %p4498_p2 = pnand %p4496_p12, %p4482_p0  ;;  %p4504_p13 = scmp.lt.s32.totalorder %s4502_s7, %s4495_s30 }
  0x59   : > { %p4499_p7 = pneg %p4498_p2  ;;  %p4505_p6 = por %p4504_p13, %p4503_p4 }
  0x5b   : > { %p4506_p10 = pnand %p4505_p6, %p4499_p7 }
  0x5d   : > { %4509 = shalt.err (!%p4506_p10)
}
  0x5e   : > { %4372 = dma.hbm_to_vmem [thread:$0]  (!%p4763_p11), %s4759_s10, 1024, %s4761_s28, %s4767_s15, %s4586_s12, %s4586_s12, %s4587_s13  }
  0x5f   : > { %231 = sbr.rel (%p4663_p8) target bundleno = 3467 (0xd8b), region = 40  ;;  %s4801_s17 = sand.u32 (!%p4663_p8), 1, %s4572_s19  }
  0x60   : > { %s3293_s6 = sshll.u32 (!%p4663_p8), %s4801_s17, 6  ;;  %s234_s8 = scalar_lea.sflag (!%p4663_p8), [#allocation3], %s4801_s17 }
  0x61   : > { %s4807_s14 = scalar_lea.vmem (!%p4663_p8), [#allocation2], %s3293_s6  ;;  %p6221_p4 = scmp.ne.s32.totalorder (!%p4663_p8), %s6214_s24, 0 }
  0x66   : > { %4555 = dma.done.wait (%p6221_p4), %s234_s8, 1024  }
  0x67   : > { %4557 = vsyncadd (%p6221_p4), %s234_s8, 4294966272  ;;  %p6222_p7 = scmp.eq.s32.totalorder %s4644_s22, 0 }
  0x69   : > { %4559 = dma.done.wait (%p6222_p7), [#allocation6], 14336   ;;  %p6223_p8 = pmov %p6222_p7 }
  0x6a   : > { %v4589_v0 = vmov 0.0   ;;  %v283_v1 = vld [vmem:[#allocation5 + $0x18] sm:$0xff]  ;;  %v282_v3 = vld [vmem:[#allocation5 + $0x10] sm:$0xff]  ;;  %v4820_v26 = vld [vmem:[%s4807_s14] sm:$0xff]  ;;  %vm741_vm0 = vcmask 130112   ;;  %vm748_vm1 = vcmask 195712  }
  0x6b   : > { %4561 = vsyncadd (%p6223_p8), [#allocation6], 4294952960  ;;  %521 = vmatprep.mubr.f32.mxu1 %v4589_v0  ;;  %408 = vmatprep.mubr.f32.mxu0 %v4589_v0  ;;  %v287_v2 = vld [vmem:[#allocation5 + $0x38] sm:$0xff]  ;;  %v286_v5 = vld [vmem:[#allocation5 + $0x30] sm:$0xff]  ;;  %v690_v30 = vmul.f32 %v4820_v26, %v4820_v26  ;;  %vm755_vm2 = vcmask 261312   ;;  %vm762_vm3 = vcmask 326912  }
  0x6c   : > { %v4046_v4 = vpack.c.bf16 %v287_v2, %v283_v1  ;;  %v291_v6 = vld [vmem:[#allocation5 + $0x58] sm:$0xff]  ;;  %v4048_v8 = vpack.c.bf16 %v286_v5, %v282_v3  ;;  %v290_v10 = vld [vmem:[#allocation5 + $0x50] sm:$0xff]  ;;  %v4828_v34 = vld [vmem:[%s4807_s14 + $0x8] sm:$0xff]  ;;  %vm769_vm4 = vcmask 392512   ;;  %vm776_vm5 = vcmask 458112   ;;  %s6140_s10 = scalar_lea.vmem [#allocation8], %s3293_s6 }
  0x6d   : > { %v295_v7 = vld [vmem:[#allocation5 + $0x78] sm:$0xff]  ;;  %v294_v11 = vld [vmem:[#allocation5 + $0x70] sm:$0xff]  ;;  %698 = vadd.xlane.f32.xlu0 %v690_v30  ;;  %v691_v38 = vmul.f32 %v4828_v34, %v4828_v34  ;;  %v281_v39 = vld [vmem:[#allocation5 + $0x8] sm:$0xff]  ;;  %vm783_vm6 = vcmask 523712   ;;  %vm807_vm7 = vcmask 523264   ;;  %s3192_s28 = sshll.u32 %s6140_s10, 4  ;;  %s6153_s28 = int_to_ptr.vmem [resolvable:$true] %s3192_s28 }
  0x6e   : > { %v4050_v9 = vpack.c.bf16 %v295_v7, %v291_v6  ;;  %v299_v12 = vld [vmem:[#allocation5 + $0x98] sm:$0xff]  ;;  %4047 = vmatprep.subr.bf16.mxu1 %v4046_v4  ;;  %v4052_v14 = vpack.c.bf16 %v294_v11, %v290_v10  ;;  %v298_v16 = vld [vmem:[#allocation5 + $0x90] sm:$0xff]  ;;  %v285_v40 = vld [vmem:[#allocation5 + $0x28] sm:$0xff]  ;;  %s3449_s15 = sshll.u32 %s4644_s22, 10  ;;  %s3179_s22 = scalar_lea.sflag [#allocation4], %s4801_s17 }
  0x6f   : > { %v303_v13 = vld [vmem:[#allocation5 + $0xb8] sm:$0xff]  ;;  %4049 = vmatpush1.bf16.msra.mxu1 %v4048_v8  ;;  %v302_v17 = vld [vmem:[#allocation5 + $0xb0] sm:$0xff]  ;;  %v280_v42 = vld [vmem:[#allocation5] sm:$0xff]  ;;  %v4014_v47 = vpack.c.bf16 %v285_v40, %v281_v39  ;;  %s6159_s11 = scalar_lea.hbm %s6210_s5, %s3449_s15  ;;  %s4510_s23 = scalar_lea.vmem %s6153_s28, 1024 }
  0x70   : > { %4051 = vmatprep.subr.bf16.mxu1 %v4050_v9  ;;  %v4054_v15 = vpack.c.bf16 %v303_v13, %v299_v12  ;;  %v307_v18 = vld [vmem:[#allocation5 + $0xd8] sm:$0xff]  ;;  %v4056_v20 = vpack.c.bf16 %v302_v17, %v298_v16  ;;  %v306_v22 = vld [vmem:[#allocation5 + $0xd0] sm:$0xff]  ;;  %v284_v43 = vld [vmem:[#allocation5 + $0x20] sm:$0xff]  ;;  %p4511_p11 = scmp.ne.s32.totalorder %s6153_s28, %s4510_s23  ;;  %p6224_p0 = scmp.ne.s32.totalorder %s6219_s29, 0 }
  0x71   : > { %v311_v19 = vld [vmem:[#allocation5 + $0xf8] sm:$0xff]  ;;  %v310_v23 = vld [vmem:[#allocation5 + $0xf0] sm:$0xff]  ;;  %v289_v44 = vld [vmem:[#allocation5 + $0x48] sm:$0xff]  ;;  %v4016_v48 = vpack.c.bf16 %v284_v43, %v280_v42  ;;  %700 = vadd.xlane.f32.xlu0 %v691_v38  ;;  %4015 = vmatprep.subr.bf16.mxu0 %v4014_v47  ;;  %s4590_s7 = smov [#allocation8]  }
  0x72   : > { %v4058_v21 = vpack.c.bf16 %v311_v19, %v307_v18  ;;  %v315_v24 = vld [vmem:[#allocation5 + $0x118] sm:$0xff]  ;;  %v314_v27 = vld [vmem:[#allocation5 + $0x110] sm:$0xff]  ;;  %v4060_v31 = vpack.c.bf16 %v310_v23, %v306_v22  ;;  %v293_v49 = vld [vmem:[#allocation5 + $0x68] sm:$0xff]  ;;  %p4512_p1 = pnand %p4511_p11, %p6224_p0  ;;  %s4514_s6 = sshll.u32 %s4590_s7, 4  ;;  %s4515_s6 = int_to_ptr.vmem [resolvable:$false] %s4514_s6 }
  0x73   : > { %4053 = vmatpush1.bf16.msra.mxu1 %v4052_v14  ;;  %v319_v25 = vld [vmem:[#allocation5 + $0x138] sm:$0xff]  ;;  %v318_v28 = vld [vmem:[#allocation5 + $0x130] sm:$0xff]  ;;  %v4840_v51 = vld [vmem:[%s4807_s14 + $0x20] sm:$0xff]  ;;  %v4018_v52 = vpack.c.bf16 %v293_v49, %v289_v44  ;;  %4017 = vmatpush1.bf16.msra.mxu0 %v4016_v48  ;;  %s4516_s8 = scalar_lea.vmem %s4515_s6, 2048  ;;  %p4517_p5 = scmp.lt.s32.totalorder %s6153_s28, %s4515_s6 }
  0x74   : > { %4055 = vmatprep.subr.bf16.mxu1 %v4054_v15  ;;  %v4823_v29 = vld [vmem:[%s4807_s14 + $0x10] sm:$0xff]  ;;  %v323_v32 = vld [vmem:[#allocation5 + $0x158] sm:$0xff]  ;;  %v4062_v36 = vpack.c.bf16 %v319_v25, %v315_v24  ;;  %v4064_v50 = vpack.c.bf16 %v318_v28, %v314_v27  ;;  %v288_v53 = vld [vmem:[#allocation5 + $0x40] sm:$0xff]  ;;  %v694_v57 = vmul.f32 %v4840_v51, %v4840_v51  ;;  %p4513_p3 = pneg %p4512_p1  ;;  %p4518_p9 = scmp.lt.s32.totalorder %s4516_s8, %s4510_s23 }
  0x75   : > { %v327_v33 = vld [vmem:[#allocation5 + $0x178] sm:$0xff]  ;;  %v692_v35 = vmul.f32 %v4823_v29, %v4823_v29  ;;  %v322_v45 = vld [vmem:[#allocation5 + $0x150] sm:$0xff]  ;;  %v292_v54 = vld [vmem:[#allocation5 + $0x60] sm:$0xff]  ;;  %4019 = vmatprep.subr.bf16.mxu0 %v4018_v52 }
  0x76   : > { %v4833_v37 = vld [vmem:[%s4807_s14 + $0x18] sm:$0xff]  ;;  %v326_v46 = vld [vmem:[#allocation5 + $0x170] sm:$0xff]  ;;  %v4066_v55 = vpack.c.bf16 %v327_v33, %v323_v32  ;;  %v4843_v56 = vld [vmem:[%s4807_s14 + $0x28] sm:$0xff]  ;;  %v4020_v2 = vpack.c.bf16 %v292_v54, %v288_v53  ;;  %706 = vadd.xlane.f32.xlu0 %v694_v57  ;;  %v4078_v33 = vpack.c.bf16 %v4828_v34, %v4820_v26  ;;  %p4519_p12 = por %p4518_p9, %p4517_p5 }
  0x77   : > { %4057 = vmatpush1.bf16.msra.mxu1 %v4056_v20  ;;  %702 = vadd.xlane.f32.xlu1 %v692_v35  ;;  %v693_v41 = vmul.f32 %v4833_v37, %v4833_v37  ;;  %v297_v58 = vld [vmem:[#allocation5 + $0x88] sm:$0xff]  ;;  %v331_v60 = vld [vmem:[#allocation5 + $0x198] sm:$0xff]  ;;  %v695_v62 = vmul.f32 %v4843_v56, %v4843_v56  ;;  %v330_v63 = vld [vmem:[#allocation5 + $0x190] sm:$0xff]  ;;  %v4068_v3 = vpack.c.bf16 %v326_v46, %v322_v45 }
  0x78   : > { %4059 = vmatprep.subr.bf16.mxu1 %v4058_v21  ;;  %v301_v59 = vld [vmem:[#allocation5 + $0xa8] sm:$0xff]  ;;  %v335_v61 = vld [vmem:[#allocation5 + $0x1b8] sm:$0xff]  ;;  %v334_v1 = vld [vmem:[#allocation5 + $0x1b0] sm:$0xff]  ;;  %4021 = vmatpush1.bf16.msra.mxu0 %v4020_v2  ;;  %v4082_v48 = vpack.c.bf16 %v4833_v37, %v4823_v29  ;;  %p4520_p2 = pnand %p4519_p12, %p4513_p3 }
  0x79   : > { %v4850_v4 = vld [vmem:[%s4807_s14 + $0x30] sm:$0xff]  ;;  %v4022_v5 = vpack.c.bf16 %v301_v59, %v297_v58  ;;  %v296_v6 = vld [vmem:[#allocation5 + $0x80] sm:$0xff]  ;;  %v4070_v8 = vpack.c.bf16 %v335_v61, %v331_v60  ;;  %v4853_v9 = vld [vmem:[%s4807_s14 + $0x38] sm:$0xff]  ;;  %v4072_v17 = vpack.c.bf16 %v334_v1, %v330_v63 }
  0x7a   : > { %v300_v7 = vld [vmem:[#allocation5 + $0xa0] sm:$0xff]  ;;  %v696_v10 = vmul.f32 %v4850_v4, %v4850_v4  ;;  %v305_v11 = vld [vmem:[#allocation5 + $0xc8] sm:$0xff]  ;;  %v339_v13 = vld [vmem:[#allocation5 + $0x1d8] sm:$0xff]  ;;  %v697_v15 = vmul.f32 %v4853_v9, %v4853_v9  ;;  %v4090_v52 = vpack.c.bf16 %v4853_v9, %v4850_v4 }
  0x7b   : > { %4061 = vmatpush1.bf16.msra.mxu1 %v4060_v31  ;;  %704 = vadd.xlane.f32.xlu1 %v693_v41  ;;  %v309_v12 = vld [vmem:[#allocation5 + $0xe8] sm:$0xff]  ;;  %v343_v14 = vld [vmem:[#allocation5 + $0x1f8] sm:$0xff]  ;;  %v4024_v16 = vpack.c.bf16 %v300_v7, %v296_v6  ;;  %v338_v18 = vld [vmem:[#allocation5 + $0x1d0] sm:$0xff] }
  0x7c   : > { %4063 = vmatprep.subr.bf16.mxu1 %v4062_v36  ;;  %4023 = vmatprep.subr.bf16.mxu0 %v4022_v5  ;;  %v4026_v19 = vpack.c.bf16 %v309_v12, %v305_v11  ;;  %v304_v20 = vld [vmem:[#allocation5 + $0xc0] sm:$0xff]  ;;  %v4074_v22 = vpack.c.bf16 %v343_v14, %v339_v13  ;;  %v342_v23 = vld [vmem:[#allocation5 + $0x1f0] sm:$0xff]  ;;  %v313_v24 = vld [vmem:[#allocation5 + $0x108] sm:$0xff] }
  0x7d   : > { %v308_v21 = vld [vmem:[#allocation5 + $0xe0] sm:$0xff]  ;;  %710 = vadd.xlane.f32.xlu0 %v696_v10  ;;  %v317_v25 = vld [vmem:[#allocation5 + $0x128] sm:$0xff]  ;;  %4025 = vmatpush1.bf16.msra.mxu0 %v4024_v16  ;;  %v4076_v28 = vpack.c.bf16 %v342_v23, %v338_v18 }
  0x7e   : > { %v4028_v27 = vpack.c.bf16 %v308_v21, %v304_v20  ;;  %4027 = vmatprep.subr.bf16.mxu0 %v4026_v19  ;;  %v4030_v30 = vpack.c.bf16 %v317_v25, %v313_v24  ;;  %v312_v31 = vld [vmem:[#allocation5 + $0x100] sm:$0xff]  ;;  %v321_v35 = vld [vmem:[#allocation5 + $0x148] sm:$0xff] }
  0x7f   : > { %4065 = vmatpush1.bf16.msra.mxu1 %v4064_v50  ;;  %708 = vadd.xlane.f32.xlu1 %v695_v62  ;;  %v316_v32 = vld [vmem:[#allocation5 + $0x120] sm:$0xff]  ;;  %v325_v36 = vld [vmem:[#allocation5 + $0x168] sm:$0xff]  ;;  %v4086_v50 = vpack.c.bf16 %v4843_v56, %v4840_v51 }
  0x80   : > { %4067 = vmatprep.subr.bf16.mxu1 %v4066_v55  ;;  %v4032_v38 = vpack.c.bf16 %v316_v32, %v312_v31  ;;  %v4034_v39 = vpack.c.bf16 %v325_v36, %v321_v35  ;;  %v320_v40 = vld [vmem:[#allocation5 + $0x140] sm:$0xff]  ;;  %v329_v42 = vld [vmem:[#allocation5 + $0x188] sm:$0xff] }
  0x81   : > { %4029 = vmatpush1.bf16.msra.mxu0 %v4028_v27  ;;  %v324_v41 = vld [vmem:[#allocation5 + $0x160] sm:$0xff]  ;;  %v333_v43 = vld [vmem:[#allocation5 + $0x1a8] sm:$0xff] }
  0x82   : > { %4031 = vmatprep.subr.bf16.mxu0 %v4030_v30  ;;  %v4036_v44 = vpack.c.bf16 %v324_v41, %v320_v40  ;;  %v4038_v45 = vpack.c.bf16 %v333_v43, %v329_v42  ;;  %v328_v46 = vld [vmem:[#allocation5 + $0x180] sm:$0xff]  ;;  %v337_v53 = vld [vmem:[#allocation5 + $0x1c8] sm:$0xff] }
  0x83   : > { %4069 = vmatpush1.bf16.msra.mxu1 %v4068_v3  ;;  %712 = vadd.xlane.f32.xlu1 %v697_v15  ;;  %v332_v47 = vld [vmem:[#allocation5 + $0x1a0] sm:$0xff]  ;;  %v341_v54 = vld [vmem:[#allocation5 + $0x1e8] sm:$0xff] }
  0x84   : > { %4071 = vmatprep.subr.bf16.mxu1 %v4070_v8  ;;  %v4040_v49 = vpack.c.bf16 %v332_v47, %v328_v46  ;;  %v4042_v55 = vpack.c.bf16 %v341_v54, %v337_v53  ;;  %v336_v57 = vld [vmem:[#allocation5 + $0x1c0] sm:$0xff] }
  0x85   : > { %4033 = vmatpush1.bf16.msra.mxu0 %v4032_v38  ;;  %v340_v58 = vld [vmem:[#allocation5 + $0x1e0] sm:$0xff] }
  0x86   : > { %4035 = vmatprep.subr.bf16.mxu0 %v4034_v39  ;;  %v4044_v59 = vpack.c.bf16 %v340_v58, %v336_v57 }
  0x87   : > { %4073 = vmatpush1.bf16.msra.mxu1 %v4072_v17 }
  0x88   : > { %4075 = vmatprep.subr.bf16.mxu1 %v4074_v22 }
  0x89   : > { %4037 = vmatpush1.bf16.msra.mxu0 %v4036_v44 }
  0x8a   : > { %4039 = vmatprep.subr.bf16.mxu0 %v4038_v45 }
  0x8b   : > { %4077 = vmatpush1.bf16.msra.mxu1 %v4076_v28 }
  0x8c   : > { %4079 = vmatprep.subr.bf16.mxu1 %v4078_v33 }
  0x8d   : > { %4041 = vmatpush1.bf16.msra.mxu0 %v4040_v49 }
  0x8e   : > { %522 = vmatmul.mubr.f32.vlgmr.msra.gmra.mrb[0].mxu1 %v4820_v26  ;;  %4043 = vmatprep.subr.bf16.mxu0 %v4042_v55 }
  0x8f   : > { %527 = vmatprep.mubr.f32.mxu1 %v4589_v0 }
  0x91   : > { %4045 = vmatpush1.bf16.msra.mxu0 %v4044_v59 }
  0x92   : > { %528 = vmatmul.mubr.f32.gmra.mrb[2].mxu1 %v4828_v34 }
  0x93   : > { %533 = vmatprep.mubr.f32.mxu1 %v4589_v0 }
  0x94   : > { %4081 = vmatpush3.bf16.xpose.msra.mxu1 %v4078_v33  ;;  %409 = vmatmul.mubr.f32.vlgmr.msra.gmra.mrb[0].mxu0 %v4820_v26 }
  0x95   : > { %4083 = vmatprep.subr.bf16.mxu1 %v4082_v48  ;;  %414 = vmatprep.mubr.f32.mxu0 %v4589_v0 }
  0x96   : > { %534 = vmatmul.mubr.f32.gmra.mrb[4].mxu1 %v4823_v29 }
  0x97   : > { %539 = vmatprep.mubr.f32.mxu1 %v4589_v0 }
  0x98   : > { %415 = vmatmul.mubr.f32.gmra.mrb[2].mxu0 %v4828_v34 }
  0x99   : > { %420 = vmatprep.mubr.f32.mxu0 %v4589_v0 }
  0x9a   : > { %540 = vmatmul.mubr.f32.gmra.mrb[6].mxu1 %v4833_v37 }
  0x9b   : > { %545 = vmatprep.mubr.f32.mxu1 %v4589_v0 }
  0x9c   : > { %4085 = vmatpush3.bf16.xpose.msra.mxu1 %v4082_v48  ;;  %421 = vmatmul.mubr.f32.gmra.mrb[4].mxu0 %v4823_v29 }
  0x9d   : > { %4087 = vmatprep.subr.bf16.mxu1 %v4086_v50  ;;  %426 = vmatprep.mubr.f32.mxu0 %v4589_v0 }
  0x9e   : > { %546 = vmatmul.mubr.f32.gmra.mrb[8].mxu1 %v4840_v51 }
  0x9f   : > { %551 = vmatprep.mubr.f32.mxu1 %v4589_v0 }
  0xa0   : > { %427 = vmatmul.mubr.f32.gmra.mrb[6].mxu0 %v4833_v37 }
  0xa1   : > { %432 = vmatprep.mubr.f32.mxu0 %v4589_v0 }
  0xa2   : > { %552 = vmatmul.mubr.f32.gmra.mrb[10].mxu1 %v4843_v56 }
  0xa3   : > { %557 = vmatprep.mubr.f32.mxu1 %v4589_v0 }
  0xa4   : > { %4089 = vmatpush3.bf16.xpose.msra.mxu1 %v4086_v50  ;;  %433 = vmatmul.mubr.f32.gmra.mrb[8].mxu0 %v4840_v51 }
  0xa5   : > { %4091 = vmatprep.subr.bf16.mxu1 %v4090_v52  ;;  %438 = vmatprep.mubr.f32.mxu0 %v4589_v0 }
  0xa6   : > { %558 = vmatmul.mubr.f32.gmra.mrb[12].mxu1 %v4850_v4 }
  0xa7   : > { %563 = vmatprep.mubr.f32.mxu1 %v4589_v0 }
  0xa8   : > { %439 = vmatmul.mubr.f32.gmra.mrb[10].mxu0 %v4843_v56 }
  0xa9   : > { %444 = vmatprep.mubr.f32.mxu0 %v4589_v0 }
  0xaa   : > { %564 = vmatmul.mubr.f32.gmra.mrb[14].mxu1 %v4853_v9 }
  0xab   : > { %3706 = vmatprep.mubr.f32.mxu1 %v4820_v26  ;;  %v730_v26 = vlaneseq }
  0xac   : > { %4093 = vmatpush3.bf16.xpose.msra.mxu1 %v4090_v52  ;;  %445 = vmatmul.mubr.f32.gmra.mrb[12].mxu0 %v4850_v4 }
  0xad   : > { %450 = vmatprep.mubr.f32.mxu0 %v4589_v0 }
  0xb0   : > { %451 = vmatmul.mubr.f32.gmra.mrb[14].mxu0 %v4853_v9 }
  0xb3   : > { %3707 = vmatmul.mubr.f32.vlgmr.msra.gmra.mrb[16].mxu1 %v4828_v34 }
  0xb4   : > { %3709 = vmatprep.mubr.f32.mxu1 %v4823_v29 }
  0xb7   : > { %3710 = vmatmul.mubr.f32.gmra.mrb[18].mxu1 %v4833_v37  ;;  %v4905_v37 = vand.u32 127, %v730_v26 }
  0xb8   : > { %3712 = vmatprep.mubr.f32.mxu1 %v4840_v51 }
  0xb9   : > { %v736_v1 = vadd.s32 4294967288, %v4905_v37  ;;  %v743_v5 = vadd.s32 4294967280, %v4905_v37  ;;  %v750_v14 = vadd.s32 4294967272, %v4905_v37  ;;  %v757_v22 = vadd.s32 4294967264, %v4905_v37 }
  0xba   : > { %v764_v31 = vadd.s32 4294967256, %v4905_v37  ;;  %v771_v43 = vadd.s32 4294967248, %v4905_v37  ;;  %v778_v50 = vadd.s32 4294967240, %v4905_v37 }
  0xbb   : > { %3713 = vmatmul.mubr.f32.gmra.mrb[20].mxu1 %v4843_v56  ;;  %v4913_v56 = vshrl.u32 %v730_v26, 7 }
  0xbc   : > { %3715 = vmatprep.mubr.f32.mxu1 %v4850_v4 }
  0xbd   : > { %v734_v7 = vsub.s32 %v4905_v37, %v4913_v56  ;;  %v746_v16 = vsub.s32 %v743_v5, %v4913_v56  ;;  %v753_v23 = vsub.s32 %v750_v14, %v4913_v56  ;;  %v760_v33 = vsub.s32 %v757_v22, %v4913_v56 }
  0xbe   : > { %v767_v44 = vsub.s32 %v764_v31, %v4913_v56  ;;  %v774_v53 = vsub.s32 %v771_v43, %v4913_v56  ;;  %v781_v26 = vsub.s32 %v778_v50, %v4913_v56 }
  0xbf   : > { %3716 = vmatmul.mubr.f32.gmra.mrb[22].mxu1 %v4853_v9  ;;  %v739_v9 = vsub.s32 %v736_v1, %v4913_v56 }
  0xfa   : > { %v699_v61 = vpop.xlane.xlu0 %698 }
  0xfb   : > { %v714_v8 = vmul.f32 0.5, %v699_v61 }
  0xfd   : > { %v735_v19 = vrot.slane %v714_v8, %v734_v7 }
  0xfe   : > { %v701_v6 = vpop.xlane.xlu0 %700 }
  0xff   : > { %v715_v10 = vmul.f32 0.5, %v701_v6 }
 0x101   : > { %v740_v20 = vrot.slane %v715_v10, %v739_v9 }
 0x103   : > { %v707_v27 = vpop.xlane.xlu0 %706  ;;  %v742_v30 = vsel %vm741_vm0, %v740_v20, %v735_v19 }
 0x104   : > { %v703_v3 = vpop.xlane.xlu1 %702  ;;  %v718_v35 = vmul.f32 0.5, %v707_v27 }
 0x105   : > { %v716_v17 = vmul.f32 0.5, %v703_v3 }
 0x106   : > { %v761_v47 = vrot.slane %v718_v35, %v760_v33 }
 0x107   : > { %v747_v28 = vrot.slane %v716_v17, %v746_v16 }
 0x108   : > { %v705_v18 = vpop.xlane.xlu1 %704 }
 0x109   : > { %v717_v24 = vmul.f32 0.5, %v705_v18  ;;  %v749_v41 = vsel %vm748_vm1, %v747_v28, %v742_v30 }
 0x10a   : > { %v711_v46 = vpop.xlane.xlu0 %710 }
 0x10b   : > { %v754_v38 = vrot.slane %v717_v24, %v753_v23  ;;  %v720_v54 = vmul.f32 0.5, %v711_v46 }
 0x10c   : > { %v709_v36 = vpop.xlane.xlu1 %708 }
 0x10d   : > { %v719_v45 = vmul.f32 0.5, %v709_v36  ;;  %v756_v49 = vsel %vm755_vm2, %v754_v38, %v749_v41  ;;  %v775_v61 = vrot.slane %v720_v54, %v774_v53 }
 0x10e   : > { %v763_v58 = vsel %vm762_vm3, %v761_v47, %v756_v49 }
 0x10f   : > { %v768_v57 = vrot.slane %v719_v45, %v767_v44 }
 0x110   : > { %v713_v55 = vpop.xlane.xlu1 %712 }
 0x111   : > { %v770_v1 = vsel %vm769_vm4, %v768_v57, %v763_v58 }
 0x112   : > { %v777_v3 = vsel %vm776_vm5, %v775_v61, %v770_v1 }
 0x161   : > { %v523_v29 = vpop.f32.mrb[0].mxu1 }
 0x162   : > { %v525_v34 = vpop.f32.mrb[1].mxu1 }
 0x165   : > { %v529_v60 = vpop.f32.mrb[2].mxu1 }
 0x166   : > { %v4907_v51 = vpack.c.bf16 %v529_v60, %v523_v29  ;;  %v531_v62 = vpop.f32.mrb[3].mxu1  ;;  %v721_v29 = vmul.f32 0.5, %v713_v55 }
 0x167   : > { %v4909_v63 = vpack.c.bf16 %v531_v62, %v525_v34 }
 0x168   : > { %4095 = vmatprep.subr.bf16.mxu1 %v4907_v51  ;;  %4143 = vmatprep.subr.bf16.mxu0 %v4907_v51 }
 0x169   : > { %4097 = vmatpush3.bf16.msra.mxu1 %v4907_v51  ;;  %4145 = vmatpush3.bf16.msra.mxu0 %v4907_v51  ;;  %v535_v2 = vpop.f32.mrb[4].mxu1 }
 0x16a   : > { %v537_v4 = vpop.f32.mrb[5].mxu1 }
 0x16d   : > { %v541_v11 = vpop.f32.mrb[6].mxu1 }
 0x16e   : > { %v4922_v12 = vpack.c.bf16 %v541_v11, %v535_v2  ;;  %v543_v13 = vpop.f32.mrb[7].mxu1  ;;  %v782_v2 = vrot.slane %v721_v29, %v781_v26 }
 0x16f   : > { %v4925_v15 = vpack.c.bf16 %v543_v13, %v537_v4 }
 0x170   : > { %4099 = vmatprep.subr.bf16.mxu1 %v4922_v12  ;;  %4147 = vmatprep.subr.bf16.mxu0 %v4922_v12  ;;  %v784_v56 = vsel %vm783_vm6, %v782_v2, %v777_v3 }
 0x171   : > { %4101 = vmatpush3.bf16.msra.mxu1 %v4922_v12  ;;  %4149 = vmatpush3.bf16.msra.mxu0 %v4922_v12  ;;  %v547_v21 = vpop.f32.mrb[8].mxu1 }
 0x172   : > { %v549_v25 = vpop.f32.mrb[9].mxu1 }
 0x175   : > { %v553_v32 = vpop.f32.mrb[10].mxu1 }
 0x176   : > { %v4936_v39 = vpack.c.bf16 %v553_v32, %v547_v21  ;;  %v555_v40 = vpop.f32.mrb[11].mxu1  ;;  %v4990_v32 = vcvt.s32.f32 %v4905_v37 }
 0x177   : > { %v4938_v42 = vpack.c.bf16 %v555_v40, %v549_v25 }
 0x178   : > { %4103 = vmatprep.subr.bf16.mxu1 %v4936_v39  ;;  %4151 = vmatprep.subr.bf16.mxu0 %v4936_v39 }
 0x179   : > { %4105 = vmatpush3.bf16.msra.mxu1 %v4936_v39  ;;  %4153 = vmatpush3.bf16.msra.mxu0 %v4936_v39  ;;  %v559_v48 = vpop.f32.mrb[12].mxu1 }
 0x17a   : > { %v561_v52 = vpop.f32.mrb[13].mxu1 }
 0x17d   : > { %v565_v59 = vpop.f32.mrb[14].mxu1 }
 0x17e   : > { %v4949_v34 = vpack.c.bf16 %v565_v59, %v559_v48  ;;  %v567_v60 = vpop.f32.mrb[15].mxu1 }
 0x17f   : > { %v4951_v62 = vpack.c.bf16 %v567_v60, %v561_v52 }
 0x180   : > { %4107 = vmatprep.subr.bf16.mxu1 %v4949_v34  ;;  %4155 = vmatprep.subr.bf16.mxu0 %v4949_v34 }
 0x181   : > { %4109 = vmatpush3.bf16.msra.mxu1 %v4949_v34  ;;  %4157 = vmatpush3.bf16.msra.mxu0 %v4949_v34 }
 0x186   : > { %v3708_v4 = vpop.f32.mrb[16].mxu1 }
 0x187   : > { %v4957_v5 = vsub.f32 %v3708_v4, %v784_v56  ;;  %v651_v6 = vpop.f32.mrb[17].mxu1 }
 0x188   : > { %v4959_v7 = vsub.f32 %v651_v6, %v784_v56 }
 0x189   : > { %v811_v8 = vsel %vm807_vm7, %v4957_v5, -inf }
 0x18a   : > { %812 = vmax.xlane.f32.xlu1 %v811_v8  ;;  %v3711_v9 = vpop.f32.mrb[18].mxu1  ;;  %v808_v10 = vsel %vm807_vm7, %v4959_v7, -inf }
 0x18b   : > { %v4965_v11 = vsub.f32 %v3711_v9, %v784_v56  ;;  %809 = vmax.xlane.f32.xlu0 %v808_v10  ;;  %v661_v13 = vpop.f32.mrb[19].mxu1 }
 0x18c   : > { %v4967_v14 = vsub.f32 %v661_v13, %v784_v56 }
 0x18d   : > { %v817_v16 = vsel %vm807_vm7, %v4965_v11, -inf }
 0x18e   : > { %818 = vmax.xlane.f32.xlu1 %v817_v16  ;;  %v3714_v17 = vpop.f32.mrb[20].mxu1  ;;  %v814_v18 = vsel %vm807_vm7, %v4967_v14, -inf }
 0x18f   : > { %v4973_v19 = vsub.f32 %v3714_v17, %v784_v56  ;;  %815 = vmax.xlane.f32.xlu0 %v814_v18  ;;  %v671_v20 = vpop.f32.mrb[21].mxu1 }
 0x190   : > { %v4975_v21 = vsub.f32 %v671_v20, %v784_v56 }
 0x191   : > { %v823_v22 = vsel %vm807_vm7, %v4973_v19, -inf }
 0x192   : > { %824 = vmax.xlane.f32.xlu1 %v823_v22  ;;  %v3717_v23 = vpop.f32.mrb[22].mxu1  ;;  %v820_v24 = vsel %vm807_vm7, %v4975_v21, -inf }
 0x193   : > { %v4981_v25 = vsub.f32 %v3717_v23, %v784_v56  ;;  %821 = vmax.xlane.f32.xlu0 %v820_v24  ;;  %v681_v27 = vpop.f32.mrb[23].mxu1  ;;  %v5112_v24 = vpop.f32.mrb[0].mxu0 }
 0x194   : > { %v4983_v28 = vsub.f32 %v681_v27, %v784_v56  ;;  %v412_v27 = vpop.f32.mrb[1].mxu0 }
 0x195   : > { %v829_v30 = vsel %vm807_vm7, %v4981_v25, -inf }
 0x196   : > { %830 = vmax.xlane.f32.xlu1 %v829_v30  ;;  %v826_v31 = vsel %vm807_vm7, %v4983_v28, -inf }
 0x197   : > { %827 = vmax.xlane.f32.xlu0 %v826_v31 }
 0x217   : > { %v813_v33 = vpop.xlane.xlu1 %812 }
 0x218   : > { %vm833_vm8 = vcmp.eq.f32.partialorder %v4957_v5, %v813_v33  ;;  %v810_v35 = vpop.xlane.xlu0 %809 }
 0x219   : > { %vm832_vm9 = vcmp.eq.f32.partialorder %v4959_v7, %v810_v35  ;;  %v841_v36 = vsel %vm833_vm8, %v4990_v32, 64.0 }
 0x21a   : > { %v851_v38 = vsel %vm807_vm7, %v841_v36, inf  ;;  %v840_v40 = vsel %vm832_vm9, %v4990_v32, 64.0 }
 0x21b   : > { %v819_v41 = vpop.xlane.xlu1 %818  ;;  %852 = vmin.xlane.f32.xlu1 %v851_v38  ;;  %v848_v43 = vsel %vm807_vm7, %v840_v40, inf }
 0x21c   : > { %vm835_vm10 = vcmp.eq.f32.partialorder %v4965_v11, %v819_v41  ;;  %v816_v37 = vpop.xlane.xlu0 %815  ;;  %849 = vmin.xlane.f32.xlu0 %v848_v43 }
 0x21d   : > { %vm834_vm11 = vcmp.eq.f32.partialorder %v4967_v14, %v816_v37  ;;  %v843_v44 = vsel %vm835_vm10, %v4990_v32, 64.0 }
 0x21e   : > { %v857_v45 = vsel %vm807_vm7, %v843_v44, inf  ;;  %v842_v46 = vsel %vm834_vm11, %v4990_v32, 64.0 }
 0x21f   : > { %v825_v47 = vpop.xlane.xlu1 %824  ;;  %858 = vmin.xlane.f32.xlu1 %v857_v45  ;;  %v854_v48 = vsel %vm807_vm7, %v842_v46, inf }
 0x220   : > { %vm837_vm12 = vcmp.eq.f32.partialorder %v4973_v19, %v825_v47  ;;  %v822_v49 = vpop.xlane.xlu0 %821  ;;  %855 = vmin.xlane.f32.xlu0 %v854_v48 }
 0x221   : > { %vm836_vm13 = vcmp.eq.f32.partialorder %v4975_v21, %v822_v49  ;;  %v845_v50 = vsel %vm837_vm12, %v4990_v32, 64.0 }
 0x222   : > { %v863_v52 = vsel %vm807_vm7, %v845_v50, inf  ;;  %v844_v53 = vsel %vm836_vm13, %v4990_v32, 64.0 }
 0x223   : > { %864 = vmin.xlane.f32.xlu1 %v863_v52  ;;  %v831_v54 = vpop.xlane.xlu1 %830  ;;  %v860_v55 = vsel %vm807_vm7, %v844_v53, inf }
 0x224   : > { %vm839_vm14 = vcmp.eq.f32.partialorder %v4981_v25, %v831_v54  ;;  %861 = vmin.xlane.f32.xlu0 %v860_v55  ;;  %v828_v57 = vpop.xlane.xlu0 %827 }
 0x225   : > { %vm838_vm15 = vcmp.eq.f32.partialorder %v4983_v28, %v828_v57  ;;  %v847_v58 = vsel %vm839_vm14, %v4990_v32, 64.0 }
 0x226   : > { %v869_v59 = vsel %vm807_vm7, %v847_v58, inf  ;;  %v846_v26 = vsel %vm838_vm15, %v4990_v32, 64.0  ;;  %v5138_v58 = vpop.f32.mrb[2].mxu0 }
 0x227   : > { %870 = vmin.xlane.f32.xlu1 %v869_v59  ;;  %v866_v29 = vsel %vm807_vm7, %v846_v26, inf  ;;  %v418_v59 = vpop.f32.mrb[3].mxu0 }
 0x228   : > { %867 = vmin.xlane.f32.xlu0 %v866_v29  ;;  %v5140_v26 = vpack.c.bf16 %v418_v59, %v412_v27  ;;  %v5142_v29 = vpop.f32.mrb[4].mxu0 }
 0x22a   : > { %4111 = vmatprep.subr.bf16.mxu1 %v5140_v26  ;;  %4159 = vmatprep.subr.bf16.mxu0 %v5140_v26 }
 0x2a8   : > { %v5016_v60 = vpop.xlane.xlu1 %852 }
 0x2a9   : > { %vm873_vm0 = vcmp.eq.f32.partialorder %v4990_v32, %v5016_v60  ;;  %v5020_v61 = vpop.xlane.xlu0 %849 }
 0x2aa   : > { %vm872_vm1 = vcmp.eq.f32.partialorder %v4990_v32, %v5020_v61  ;;  %v5028_v1 = vsel %vm873_vm0, -inf, %v4957_v5 }
 0x2ab   : > { %v907_v2 = vsel %vm807_vm7, %v5028_v1, -inf  ;;  %v5036_v3 = vsel %vm872_vm1, -inf, %v4959_v7 }
 0x2ac   : > { %908 = vmax.xlane.f32.xlu1 %v907_v2  ;;  %v5038_v56 = vpop.xlane.xlu1 %858  ;;  %v904_v4 = vsel %vm807_vm7, %v5036_v3, -inf  ;;  %v424_v2 = vpop.f32.mrb[5].mxu0 }
 0x2ad   : > { %vm875_vm2 = vcmp.eq.f32.partialorder %v4990_v32, %v5038_v56  ;;  %905 = vmax.xlane.f32.xlu0 %v904_v4  ;;  %v5044_v5 = vpop.xlane.xlu0 %855  ;;  %v5144_v4 = vpop.f32.mrb[6].mxu0 }
 0x2ae   : > { %vm874_vm3 = vcmp.eq.f32.partialorder %v4990_v32, %v5044_v5  ;;  %v5052_v6 = vsel %vm875_vm2, -inf, %v4965_v11 }
 0x2af   : > { %v913_v7 = vsel %vm807_vm7, %v5052_v6, -inf  ;;  %v5060_v8 = vsel %vm874_vm3, -inf, %v4967_v14  ;;  %v3300_v61 = vsel %vm874_vm3, 1.0, %v4589_v0 }
 0x2b0   : > { %914 = vmax.xlane.f32.xlu1 %v913_v7  ;;  %v5062_v9 = vpop.xlane.xlu1 %864  ;;  %v910_v10 = vsel %vm807_vm7, %v5060_v8, -inf  ;;  %v430_v7 = vpop.f32.mrb[7].mxu0 }
 0x2b1   : > { %vm877_vm4 = vcmp.eq.f32.partialorder %v4990_v32, %v5062_v9  ;;  %911 = vmax.xlane.f32.xlu0 %v910_v10  ;;  %v5068_v11 = vpop.xlane.xlu0 %861  ;;  %v5148_v10 = vpack.c.bf16 %v430_v7, %v424_v2 }
 0x2b2   : > { %vm876_vm5 = vcmp.eq.f32.partialorder %v4990_v32, %v5068_v11  ;;  %v5076_v13 = vsel %vm877_vm4, -inf, %v4973_v19  ;;  %v3303_v5 = vsel %vm877_vm4, 1.0, %v4589_v0 }
 0x2b3   : > { %v919_v14 = vsel %vm807_vm7, %v5076_v13, -inf  ;;  %v5084_v16 = vsel %vm876_vm5, -inf, %v4975_v21  ;;  %v3302_v60 = vsel %vm876_vm5, 1.0, %v4589_v0 }
 0x2b4   : > { %920 = vmax.xlane.f32.xlu1 %v919_v14  ;;  %v5086_v17 = vpop.xlane.xlu1 %870  ;;  %v916_v18 = vsel %vm807_vm7, %v5084_v16, -inf  ;;  %v5150_v14 = vpop.f32.mrb[8].mxu0 }
 0x2b5   : > { %vm879_vm6 = vcmp.eq.f32.partialorder %v4990_v32, %v5086_v17  ;;  %917 = vmax.xlane.f32.xlu0 %v916_v18  ;;  %v5092_v19 = vpop.xlane.xlu0 %867  ;;  %v436_v18 = vpop.f32.mrb[9].mxu0 }
 0x2b6   : > { %vm878_vm8 = vcmp.eq.f32.partialorder %v4990_v32, %v5092_v19  ;;  %v5100_v20 = vsel %vm879_vm6, -inf, %v4981_v25  ;;  %v3305_v11 = vsel %vm879_vm6, 1.0, %v4589_v0 }
 0x2b7   : > { %v925_v21 = vsel %vm807_vm7, %v5100_v20, -inf  ;;  %v5108_v22 = vsel %vm878_vm8, -inf, %v4983_v28  ;;  %v3304_v56 = vsel %vm878_vm8, 1.0, %v4589_v0 }
 0x2b8   : > { %926 = vmax.xlane.f32.xlu1 %v925_v21  ;;  %v922_v23 = vsel %vm807_vm7, %v5108_v22, -inf  ;;  %v5152_v21 = vpop.f32.mrb[10].mxu0 }
 0x2b9   : > { %923 = vmax.xlane.f32.xlu0 %v922_v23  ;;  %v442_v23 = vpop.f32.mrb[11].mxu0 }
 0x2ba   : > { %v5154_v27 = vpack.c.bf16 %v442_v23, %v436_v18 }
 0x339   : > { %v909_v30 = vpop.xlane.xlu1 %908 }
 0x33a   : > { %vm929_vm9 = vcmp.eq.f32.partialorder %v5028_v1, %v909_v30  ;;  %v906_v25 = vpop.xlane.xlu0 %905  ;;  %v5156_v30 = vpop.f32.mrb[12].mxu0 }
 0x33b   : > { %vm928_vm10 = vcmp.eq.f32.partialorder %v5036_v3, %v906_v25  ;;  %v937_v31 = vsel %vm929_vm9, %v4990_v32, 64.0  ;;  %v448_v25 = vpop.f32.mrb[13].mxu0 }
 0x33c   : > { %v947_v33 = vsel %vm807_vm7, %v937_v31, inf  ;;  %v936_v28 = vsel %vm928_vm10, %v4990_v32, 64.0  ;;  %v5158_v31 = vpop.f32.mrb[14].mxu0 }
 0x33d   : > { %948 = vmin.xlane.f32.xlu1 %v947_v33  ;;  %v915_v35 = vpop.xlane.xlu1 %914  ;;  %v944_v36 = vsel %vm807_vm7, %v936_v28, inf  ;;  %v454_v33 = vpop.f32.mrb[15].mxu0 }
 0x33e   : > { %vm931_vm11 = vcmp.eq.f32.partialorder %v5052_v6, %v915_v35  ;;  %945 = vmin.xlane.f32.xlu0 %v944_v36  ;;  %v912_v38 = vpop.xlane.xlu0 %911  ;;  %v5160_v28 = vpack.c.bf16 %v454_v33, %v448_v25 }
 0x33f   : > { %vm930_vm12 = vcmp.eq.f32.partialorder %v5060_v8, %v912_v38  ;;  %v939_v40 = vsel %vm931_vm11, %v4990_v32, 64.0 }
 0x340   : > { %v953_v41 = vsel %vm807_vm7, %v939_v40, inf  ;;  %v938_v43 = vsel %vm930_vm12, %v4990_v32, 64.0 }
 0x341   : > { %954 = vmin.xlane.f32.xlu1 %v953_v41  ;;  %v921_v37 = vpop.xlane.xlu1 %920  ;;  %v950_v44 = vsel %vm807_vm7, %v938_v43, inf }
 0x342   : > { %vm933_vm13 = vcmp.eq.f32.partialorder %v5076_v13, %v921_v37  ;;  %951 = vmin.xlane.f32.xlu0 %v950_v44  ;;  %v918_v45 = vpop.xlane.xlu0 %917 }
 0x343   : > { %vm932_vm14 = vcmp.eq.f32.partialorder %v5084_v16, %v918_v45  ;;  %v941_v46 = vsel %vm933_vm13, %v4990_v32, 64.0 }
 0x344   : > { %v959_v47 = vsel %vm807_vm7, %v941_v46, inf  ;;  %v940_v48 = vsel %vm932_vm14, %v4990_v32, 64.0 }
 0x345   : > { %960 = vmin.xlane.f32.xlu1 %v959_v47  ;;  %v927_v49 = vpop.xlane.xlu1 %926  ;;  %v956_v50 = vsel %vm807_vm7, %v940_v48, inf }
 0x346   : > { %vm935_vm15 = vcmp.eq.f32.partialorder %v5100_v20, %v927_v49  ;;  %957 = vmin.xlane.f32.xlu0 %v956_v50  ;;  %v924_v52 = vpop.xlane.xlu0 %923 }
 0x347   : > { %vm934_vm9 = vcmp.eq.f32.partialorder %v5108_v22, %v924_v52  ;;  %v943_v53 = vsel %vm935_vm15, %v4990_v32, 64.0 }
 0x348   : > { %v965_v54 = vsel %vm807_vm7, %v943_v53, inf  ;;  %v942_v55 = vsel %vm934_vm9, %v4990_v32, 64.0 }
 0x349   : > { %966 = vmin.xlane.f32.xlu1 %v965_v54  ;;  %v962_v57 = vsel %vm807_vm7, %v942_v55, inf }
 0x34a   : > { %963 = vmin.xlane.f32.xlu0 %v962_v57 }
 0x3ca   : > { %v949_v35 = vpop.xlane.xlu1 %948 }
 0x3cb   : > { %vm969_vm10 = vcmp.eq.f32.partialorder %v4990_v32, %v949_v35  ;;  %v946_v36 = vpop.xlane.xlu0 %945  ;;  %v3301_v35 = vsel %vm875_vm2, 1.0, %v4589_v0 }
 0x3cc   : > { %vm968_vm11 = vcmp.eq.f32.partialorder %v4990_v32, %v946_v36  ;;  %v5165_v38 = vsel %vm969_vm10, -inf, %v5028_v1  ;;  %v3307_v37 = vsel %vm969_vm10, 1.0, %v4589_v0 }
 0x3cd   : > { %v3306_v40 = vsel %vm968_vm11, 1.0, %v4589_v0  ;;  %v1261_v41 = vsel %vm807_vm7, %v5165_v38, -inf  ;;  %v5171_v43 = vsel %vm968_vm11, -inf, %v5036_v3 }
 0x3ce   : > { %1262 = vmax.xlane.f32.xlu1 %v1261_v41  ;;  %v955_v44 = vpop.xlane.xlu1 %954  ;;  %3734 = vmatprep.mubr.msk.f32.mxu1 %vm807_vm7, %v3306_v40  ;;  %v1258_v45 = vsel %vm807_vm7, %v5171_v43, -inf }
 0x3cf   : > { %vm971_vm12 = vcmp.eq.f32.partialorder %v4990_v32, %v955_v44  ;;  %1259 = vmax.xlane.f32.xlu0 %v1258_v45  ;;  %3735 = vmatmul.mubr.msk.f32.vlgmr.msra.gmra.mrb[24].mxu1 %vm807_vm7, %v3307_v37  ;;  %v952_v1 = vpop.xlane.xlu0 %951 }
 0x3d0   : > { %vm970_vm13 = vcmp.eq.f32.partialorder %v4990_v32, %v952_v1  ;;  %4113 = vmatpush3.bf16.msra.mxu1 %v5140_v26  ;;  %v5182_v3 = vsel %vm971_vm12, -inf, %v5052_v6  ;;  %v3309_v49 = vsel %vm971_vm12, 1.0, %v4589_v0 }
 0x3d1   : > { %v3308_v46 = vsel %vm970_vm13, 1.0, %v4589_v0  ;;  %v1267_v47 = vsel %vm807_vm7, %v5182_v3, -inf  ;;  %4115 = vmatprep.subr.bf16.mxu1 %v5148_v10  ;;  %v5189_v48 = vsel %vm970_vm13, -inf, %v5060_v8 }
 0x3d2   : > { %1268 = vmax.xlane.f32.xlu1 %v1267_v47  ;;  %v961_v50 = vpop.xlane.xlu1 %960  ;;  %3737 = vmatprep.mubr.msk.f32.mxu1 %vm807_vm7, %v3308_v46  ;;  %v1264_v6 = vsel %vm807_vm7, %v5189_v48, -inf }
 0x3d3   : > { %vm973_vm14 = vcmp.eq.f32.partialorder %v4990_v32, %v961_v50  ;;  %1265 = vmax.xlane.f32.xlu0 %v1264_v6  ;;  %3738 = vmatmul.mubr.msk.f32.gmra.mrb[26].mxu1 %vm807_vm7, %v3309_v49  ;;  %v958_v52 = vpop.xlane.xlu0 %957 }
 0x3d4   : > { %vm972_vm15 = vcmp.eq.f32.partialorder %v4990_v32, %v958_v52  ;;  %4117 = vmatpush3.bf16.msra.mxu1 %v5148_v10  ;;  %v5200_v8 = vsel %vm973_vm14, -inf, %v5076_v13  ;;  %v3311_v57 = vsel %vm973_vm14, 1.0, %v4589_v0 }
 0x3d5   : > { %v3310_v53 = vsel %vm972_vm15, 1.0, %v4589_v0  ;;  %v1273_v54 = vsel %vm807_vm7, %v5200_v8, -inf  ;;  %4119 = vmatprep.subr.bf16.mxu1 %v5154_v27  ;;  %v5207_v55 = vsel %vm972_vm15, -inf, %v5084_v16 }
 0x3d6   : > { %1274 = vmax.xlane.f32.xlu1 %v1273_v54  ;;  %v967_v59 = vpop.xlane.xlu1 %966  ;;  %3740 = vmatprep.mubr.msk.f32.mxu1 %vm807_vm7, %v3310_v53  ;;  %v1270_v13 = vsel %vm807_vm7, %v5207_v55, -inf }
 0x3d7   : > { %vm975_vm9 = vcmp.eq.f32.partialorder %v4990_v32, %v967_v59  ;;  %1271 = vmax.xlane.f32.xlu0 %v1270_v13  ;;  %3741 = vmatmul.mubr.msk.f32.gmra.mrb[28].mxu1 %vm807_vm7, %v3311_v57  ;;  %v964_v2 = vpop.xlane.xlu0 %963 }
 0x3d8   : > { %vm974_vm10 = vcmp.eq.f32.partialorder %v4990_v32, %v964_v2  ;;  %4121 = vmatpush3.bf16.msra.mxu1 %v5154_v27  ;;  %v5218_v16 = vsel %vm975_vm9, -inf, %v5100_v20  ;;  %v3313_v25 = vsel %vm975_vm9, 1.0, %v4589_v0  ;;  %v3298_v20 = vsel %vm872_vm1, 1.0, %v4589_v0 }
 0x3d9   : > { %v3312_v7 = vsel %vm974_vm10, 1.0, %v4589_v0  ;;  %v1279_v18 = vsel %vm807_vm7, %v5218_v16, -inf  ;;  %4123 = vmatprep.subr.bf16.mxu1 %v5160_v28  ;;  %v5225_v23 = vsel %vm974_vm10, -inf, %v5108_v22  ;;  %v3299_v22 = vsel %vm873_vm0, 1.0, %v4589_v0 }
 0x3da   : > { %1280 = vmax.xlane.f32.xlu1 %v1279_v18  ;;  %3743 = vmatprep.mubr.msk.f32.mxu1 %vm807_vm7, %v3312_v7  ;;  %v1276_v33 = vsel %vm807_vm7, %v5225_v23, -inf }
 0x3db   : > { %1277 = vmax.xlane.f32.xlu0 %v1276_v33  ;;  %3744 = vmatmul.mubr.msk.f32.gmra.mrb[30].mxu1 %vm807_vm7, %v3313_v25 }
 0x3dc   : > { %4125 = vmatpush3.bf16.msra.mxu1 %v5160_v28  ;;  %3762 = vmatprep.mubr.msk.f32.mxu1 %vm807_vm7, %v3298_v20 }
 0x3dd   : > { %4127 = vmatprep.subr.bf16.mxu1 %v4909_v63 }
 0x3df   : > { %3763 = vmatmul.mubr.msk.f32.vlgmr.msra.gmra.mrb[24].mxu1 %vm807_vm7, %v3299_v22 }
 0x3e0   : > { %4129 = vmatpush3.bf16.msra.mxu1 %v4909_v63  ;;  %3765 = vmatprep.mubr.msk.f32.mxu1 %vm807_vm7, %v3300_v61 }
 0x3e1   : > { %4131 = vmatprep.subr.bf16.mxu1 %v4925_v15 }
 0x3e3   : > { %3766 = vmatmul.mubr.msk.f32.gmra.mrb[26].mxu1 %vm807_vm7, %v3301_v35 }
 0x3e4   : > { %4133 = vmatpush3.bf16.msra.mxu1 %v4925_v15  ;;  %3768 = vmatprep.mubr.msk.f32.mxu1 %vm807_vm7, %v3302_v60 }
 0x3e5   : > { %4135 = vmatprep.subr.bf16.mxu1 %v4938_v42 }
 0x3e7   : > { %3769 = vmatmul.mubr.msk.f32.gmra.mrb[28].mxu1 %vm807_vm7, %v3303_v5 }
 0x3e8   : > { %4137 = vmatpush3.bf16.msra.mxu1 %v4938_v42  ;;  %3771 = vmatprep.mubr.msk.f32.mxu1 %vm807_vm7, %v3304_v56 }
 0x3e9   : > { %4139 = vmatprep.subr.bf16.mxu1 %v4951_v62 }
 0x3eb   : > { %3772 = vmatmul.mubr.msk.f32.gmra.mrb[30].mxu1 %vm807_vm7, %v3305_v11 }
 0x3ec   : > { %4141 = vmatpush3.bf16.msra.mxu1 %v4951_v62 }
 0x3ed   : > { %4191 = vmatprep.subr.bf16.mxu1 %v4907_v51 }
 0x45b   : > { %v1263_v9 = vpop.xlane.xlu1 %1262 }
 0x45c   : > { %vm1283_vm0 = vcmp.eq.f32.partialorder %v5165_v38, %v1263_v9  ;;  %v1260_v19 = vpop.xlane.xlu0 %1259 }
 0x45d   : > { %vm1282_vm1 = vcmp.eq.f32.partialorder %v5171_v43, %v1260_v19  ;;  %v1291_v36 = vsel %vm1283_vm0, %v4990_v32, 64.0 }
 0x45e   : > { %v1301_v40 = vsel %vm807_vm7, %v1291_v36, inf  ;;  %v1290_v41 = vsel %vm1282_vm1, %v4990_v32, 64.0 }
 0x45f   : > { %1302 = vmin.xlane.f32.xlu1 %v1301_v40  ;;  %v1269_v17 = vpop.xlane.xlu1 %1268  ;;  %v1298_v37 = vsel %vm807_vm7, %v1290_v41, inf }
 0x460   : > { %vm1285_vm2 = vcmp.eq.f32.partialorder %v5182_v3, %v1269_v17  ;;  %1299 = vmin.xlane.f32.xlu0 %v1298_v37  ;;  %v1266_v44 = vpop.xlane.xlu0 %1265 }
 0x461   : > { %vm1284_vm3 = vcmp.eq.f32.partialorder %v5189_v48, %v1266_v44  ;;  %v1293_v45 = vsel %vm1285_vm2, %v4990_v32, 64.0 }
 0x462   : > { %v1307_v1 = vsel %vm807_vm7, %v1293_v45, inf  ;;  %v1292_v46 = vsel %vm1284_vm3, %v4990_v32, 64.0 }
 0x463   : > { %1308 = vmin.xlane.f32.xlu1 %v1307_v1  ;;  %v1275_v47 = vpop.xlane.xlu1 %1274  ;;  %v1304_v49 = vsel %vm807_vm7, %v1292_v46, inf }
 0x464   : > { %vm1287_vm4 = vcmp.eq.f32.partialorder %v5200_v8, %v1275_v47  ;;  %1305 = vmin.xlane.f32.xlu0 %v1304_v49  ;;  %v1272_v50 = vpop.xlane.xlu0 %1271 }
 0x465   : > { %vm1286_vm5 = vcmp.eq.f32.partialorder %v5207_v55, %v1272_v50  ;;  %v1295_v6 = vsel %vm1287_vm4, %v4990_v32, 64.0 }
 0x466   : > { %v1313_v52 = vsel %vm807_vm7, %v1295_v6, inf  ;;  %v1294_v53 = vsel %vm1286_vm5, %v4990_v32, 64.0 }
 0x467   : > { %1314 = vmin.xlane.f32.xlu1 %v1313_v52  ;;  %v1281_v54 = vpop.xlane.xlu1 %1280  ;;  %v1310_v57 = vsel %vm807_vm7, %v1294_v53, inf }
 0x468   : > { %vm1289_vm6 = vcmp.eq.f32.partialorder %v5218_v16, %v1281_v54  ;;  %1311 = vmin.xlane.f32.xlu0 %v1310_v57  ;;  %v1278_v59 = vpop.xlane.xlu0 %1277 }
 0x469   : > { %vm1288_vm8 = vcmp.eq.f32.partialorder %v5225_v23, %v1278_v59  ;;  %v1297_v13 = vsel %vm1289_vm6, %v4990_v32, 64.0 }
 0x46a   : > { %v1319_v2 = vsel %vm807_vm7, %v1297_v13, inf  ;;  %v1296_v7 = vsel %vm1288_vm8, %v4990_v32, 64.0 }
 0x46b   : > { %1320 = vmin.xlane.f32.xlu1 %v1319_v2  ;;  %v1316_v18 = vsel %vm807_vm7, %v1296_v7, inf }
 0x46c   : > { %1317 = vmin.xlane.f32.xlu0 %v1316_v18 }
 0x4ec   : > { %v1303_v25 = vpop.xlane.xlu1 %1302 }
 0x4ed   : > { %vm1323_vm11 = vcmp.eq.f32.partialorder %v4990_v32, %v1303_v25  ;;  %v1300_v33 = vpop.xlane.xlu0 %1299 }
 0x4ee   : > { %vm1322_vm12 = vcmp.eq.f32.partialorder %v4990_v32, %v1300_v33  ;;  %v5309_v20 = vsel %vm1323_vm11, -inf, %v5165_v38  ;;  %v3331_v60 = vsel %vm1323_vm11, 1.0, %v4589_v0 }
 0x4ef   : > { %v3330_v22 = vsel %vm1322_vm12, 1.0, %v4589_v0  ;;  %v1494_v61 = vsel %vm807_vm7, %v5309_v20, -inf  ;;  %v5315_v35 = vsel %vm1322_vm12, -inf, %v5171_v43 }
 0x4f0   : > { %1495 = vmax.xlane.f32.xlu1 %v1494_v61  ;;  %v1309_v5 = vpop.xlane.xlu1 %1308  ;;  %3790 = vmatprep.mubr.msk.f32.mxu1 %vm807_vm7, %v3330_v22  ;;  %v1491_v56 = vsel %vm807_vm7, %v5315_v35, -inf }
 0x4f1   : > { %vm1325_vm13 = vcmp.eq.f32.partialorder %v4990_v32, %v1309_v5  ;;  %1492 = vmax.xlane.f32.xlu0 %v1491_v56  ;;  %v1306_v38 = vpop.xlane.xlu0 %1305  ;;  %3791 = vmatmul.mubr.msk.f32.vlgmr.msra.gmra.mrb[24].mxu1 %vm807_vm7, %v3331_v60 }
 0x4f2   : > { %vm1324_vm14 = vcmp.eq.f32.partialorder %v4990_v32, %v1306_v38  ;;  %4193 = vmatpush3.bf16.msra.mxu1 %v4907_v51  ;;  %v5326_v43 = vsel %vm1325_vm13, -inf, %v5182_v3  ;;  %v3333_v36 = vsel %vm1325_vm13, 1.0, %v4589_v0 }
 0x4f3   : > { %v3332_v11 = vsel %vm1324_vm14, 1.0, %v4589_v0  ;;  %4195 = vmatprep.subr.bf16.mxu1 %v4922_v12  ;;  %v1500_v9 = vsel %vm807_vm7, %v5326_v43, -inf  ;;  %v5333_v19 = vsel %vm1324_vm14, -inf, %v5189_v48 }
 0x4f4   : > { %1501 = vmax.xlane.f32.xlu1 %v1500_v9  ;;  %v1315_v40 = vpop.xlane.xlu1 %1314  ;;  %3793 = vmatprep.mubr.msk.f32.mxu1 %vm807_vm7, %v3332_v11  ;;  %v1497_v51 = vsel %vm807_vm7, %v5333_v19, -inf }
 0x4f5   : > { %vm1327_vm15 = vcmp.eq.f32.partialorder %v4990_v32, %v1315_v40  ;;  %1498 = vmax.xlane.f32.xlu0 %v1497_v51  ;;  %v1312_v3 = vpop.xlane.xlu0 %1311  ;;  %3794 = vmatmul.mubr.msk.f32.gmra.mrb[26].mxu1 %vm807_vm7, %v3333_v36 }
 0x4f6   : > { %vm1326_vm9 = vcmp.eq.f32.partialorder %v4990_v32, %v1312_v3  ;;  %4197 = vmatpush3.bf16.msra.mxu1 %v4922_v12  ;;  %v5344_v48 = vsel %vm1327_vm15, -inf, %v5200_v8  ;;  %v3335_v44 = vsel %vm1327_vm15, 1.0, %v4589_v0 }
 0x4f7   : > { %v3334_v41 = vsel %vm1326_vm9, 1.0, %v4589_v0  ;;  %4199 = vmatprep.subr.bf16.mxu1 %v4936_v39  ;;  %v1506_v17 = vsel %vm807_vm7, %v5344_v48, -inf  ;;  %v5351_v37 = vsel %vm1326_vm9, -inf, %v5207_v55 }
 0x4f8   : > { %1507 = vmax.xlane.f32.xlu1 %v1506_v17  ;;  %v1321_v45 = vpop.xlane.xlu1 %1320  ;;  %3796 = vmatprep.mubr.msk.f32.mxu1 %vm807_vm7, %v3334_v41  ;;  %v1503_v12 = vsel %vm807_vm7, %v5351_v37, -inf }
 0x4f9   : > { %vm1329_vm10 = vcmp.eq.f32.partialorder %v4990_v32, %v1321_v45  ;;  %1504 = vmax.xlane.f32.xlu0 %v1503_v12  ;;  %v1318_v8 = vpop.xlane.xlu0 %1317  ;;  %3797 = vmatmul.mubr.msk.f32.gmra.mrb[28].mxu1 %vm807_vm7, %v3335_v44 }
 0x4fa   : > { %v5360_v1 = vsel %vm1329_vm10, -inf, %v5218_v16  ;;  %vm1328_vm0 = vcmp.eq.f32.partialorder %v4990_v32, %v1318_v8  ;;  %4201 = vmatpush3.bf16.msra.mxu1 %v4936_v39  ;;  %v3337_v49 = vsel %vm1329_vm10, 1.0, %v4589_v0 }
 0x4fb   : > { %v3336_v55 = vsel %vm1328_vm0, 1.0, %v4589_v0  ;;  %v5366_v46 = vsel %vm1328_vm0, -inf, %v5225_v23  ;;  %4203 = vmatprep.subr.bf16.mxu1 %v4949_v34  ;;  %v1512_v47 = vsel %vm807_vm7, %v5360_v1, -inf }
 0x4fc   : > { %1513 = vmax.xlane.f32.xlu1 %v1512_v47  ;;  %3799 = vmatprep.mubr.msk.f32.mxu1 %vm807_vm7, %v3336_v55  ;;  %v1509_v16 = vsel %vm807_vm7, %v5366_v46, -inf }
 0x4fd   : > { %1510 = vmax.xlane.f32.xlu0 %v1509_v16  ;;  %3800 = vmatmul.mubr.msk.f32.gmra.mrb[30].mxu1 %vm807_vm7, %v3337_v49 }
 0x4fe   : > { %4205 = vmatpush3.bf16.msra.mxu1 %v4949_v34 }
 0x4ff   : > { %4207 = vmatprep.subr.bf16.mxu1 %v5140_v26 }
 0x57d   : > { %v1496_v39 = vpop.xlane.xlu1 %1495 }
 0x57e   : > { %vm1516_vm1 = vcmp.eq.f32.partialorder %v5309_v20, %v1496_v39  ;;  %v1493_v23 = vpop.xlane.xlu0 %1492 }
 0x57f   : > { %vm1515_vm2 = vcmp.eq.f32.partialorder %v5315_v35, %v1493_v23  ;;  %v1524_v50 = vsel %vm1516_vm1, %v4990_v32, 64.0 }
 0x580   : > { %v1534_v6 = vsel %vm807_vm7, %v1524_v50, inf  ;;  %v1523_v52 = vsel %vm1515_vm2, %v4990_v32, 64.0 }
 0x581   : > { %1535 = vmin.xlane.f32.xlu1 %v1534_v6  ;;  %v1502_v53 = vpop.xlane.xlu1 %1501  ;;  %v1531_v54 = vsel %vm807_vm7, %v1523_v52, inf }
 0x582   : > { %vm1518_vm3 = vcmp.eq.f32.partialorder %v5326_v43, %v1502_v53  ;;  %1532 = vmin.xlane.f32.xlu0 %v1531_v54  ;;  %v1499_v34 = vpop.xlane.xlu0 %1498 }
 0x583   : > { %vm1517_vm4 = vcmp.eq.f32.partialorder %v5333_v19, %v1499_v34  ;;  %v1526_v57 = vsel %vm1518_vm3, %v4990_v32, 64.0 }
 0x584   : > { %v1540_v59 = vsel %vm807_vm7, %v1526_v57, inf  ;;  %v1525_v13 = vsel %vm1517_vm4, %v4990_v32, 64.0 }
 0x585   : > { %1541 = vmin.xlane.f32.xlu1 %v1540_v59  ;;  %v1508_v2 = vpop.xlane.xlu1 %1507  ;;  %v1537_v7 = vsel %vm807_vm7, %v1525_v13, inf }
 0x586   : > { %vm1520_vm5 = vcmp.eq.f32.partialorder %v5344_v48, %v1508_v2  ;;  %1538 = vmin.xlane.f32.xlu0 %v1537_v7  ;;  %v1505_v18 = vpop.xlane.xlu0 %1504 }
 0x587   : > { %vm1519_vm6 = vcmp.eq.f32.partialorder %v5351_v37, %v1505_v18  ;;  %v1528_v25 = vsel %vm1520_vm5, %v4990_v32, 64.0 }
 0x588   : > { %v1546_v33 = vsel %vm807_vm7, %v1528_v25, inf  ;;  %v1527_v22 = vsel %vm1519_vm6, %v4990_v32, 64.0 }
 0x589   : > { %1547 = vmin.xlane.f32.xlu1 %v1546_v33  ;;  %v1514_v61 = vpop.xlane.xlu1 %1513  ;;  %v1543_v60 = vsel %vm807_vm7, %v1527_v22, inf }
 0x58a   : > { %vm1522_vm8 = vcmp.eq.f32.partialorder %v5360_v1, %v1514_v61  ;;  %1544 = vmin.xlane.f32.xlu0 %v1543_v60  ;;  %v1511_v5 = vpop.xlane.xlu0 %1510 }
 0x58b   : > { %vm1521_vm11 = vcmp.eq.f32.partialorder %v5366_v46, %v1511_v5  ;;  %v1530_v56 = vsel %vm1522_vm8, %v4990_v32, 64.0 }
 0x58c   : > { %v1552_v38 = vsel %vm807_vm7, %v1530_v56, inf  ;;  %v1529_v11 = vsel %vm1521_vm11, %v4990_v32, 64.0 }
 0x58d   : > { %1553 = vmin.xlane.f32.xlu1 %v1552_v38  ;;  %v1549_v9 = vsel %vm807_vm7, %v1529_v11, inf }
 0x58e   : > { %1550 = vmin.xlane.f32.xlu0 %v1549_v9 }
 0x5c4   : > { %v5402_v36 = vpop.f32.mrb[24].mxu1 }
 0x5c5   : > { %v5404_v40 = vpop.f32.mrb[25].mxu1 }
 0x5c8   : > { %v5406_v51 = vpop.f32.mrb[26].mxu1 }
 0x5c9   : > { %v5408_v3 = vpop.f32.mrb[27].mxu1 }
 0x5cc   : > { %v5410_v41 = vpop.f32.mrb[28].mxu1 }
 0x5cd   : > { %v5412_v17 = vpop.f32.mrb[29].mxu1 }
 0x5d0   : > { %v5414_v44 = vpop.f32.mrb[30].mxu1 }
 0x5d1   : > { %v5416_v45 = vpop.f32.mrb[31].mxu1 }
 0x60e   : > { %v5418_v12 = vpop.xlane.xlu1 %1535 }
 0x60f   : > { %vm1556_vm12 = vcmp.eq.f32.partialorder %v4990_v32, %v5418_v12  ;;  %v5422_v8 = vpop.xlane.xlu0 %1532 }
 0x610   : > { %v5428_v55 = vsel %vm1556_vm12, -inf, %v5309_v20  ;;  %vm1555_vm13 = vcmp.eq.f32.partialorder %v4990_v32, %v5422_v8 }
 0x611   : > { %v5436_v47 = vsel %vm1555_vm13, -inf, %v5315_v35  ;;  %v1590_v49 = vsel %vm807_vm7, %v5428_v55, -inf }
 0x612   : > { %1591 = vmax.xlane.f32.xlu1 %v1590_v49  ;;  %v5440_v16 = vpop.xlane.xlu1 %1541  ;;  %v1587_v39 = vsel %vm807_vm7, %v5436_v47, -inf }
 0x613   : > { %vm1558_vm14 = vcmp.eq.f32.partialorder %v4990_v32, %v5440_v16  ;;  %1588 = vmax.xlane.f32.xlu0 %v1587_v39  ;;  %v5446_v20 = vpop.xlane.xlu0 %1538 }
 0x614   : > { %v5452_v35 = vsel %vm1558_vm14, -inf, %v5326_v43  ;;  %vm1557_vm15 = vcmp.eq.f32.partialorder %v4990_v32, %v5446_v20 }
 0x615   : > { %v5460_v23 = vsel %vm1557_vm15, -inf, %v5333_v19  ;;  %v1596_v50 = vsel %vm807_vm7, %v5452_v35, -inf  ;;  %v3348_v8 = vsel %vm1557_vm15, 1.0, %v4589_v0 }
 0x616   : > { %1597 = vmax.xlane.f32.xlu1 %v1596_v50  ;;  %v5464_v6 = vpop.xlane.xlu1 %1547  ;;  %v1593_v52 = vsel %vm807_vm7, %v5460_v23, -inf }
 0x617   : > { %vm1560_vm9 = vcmp.eq.f32.partialorder %v4990_v32, %v5464_v6  ;;  %1594 = vmax.xlane.f32.xlu0 %v1593_v52  ;;  %v5470_v43 = vpop.xlane.xlu0 %1544 }
 0x618   : > { %v5476_v19 = vsel %vm1560_vm9, -inf, %v5344_v48  ;;  %vm1559_vm10 = vcmp.eq.f32.partialorder %v4990_v32, %v5470_v43  ;;  %v3351_v20 = vsel %vm1560_vm9, 1.0, %v4589_v0 }
 0x619   : > { %v5484_v53 = vsel %vm1559_vm10, -inf, %v5351_v37  ;;  %v1602_v54 = vsel %vm807_vm7, %v5476_v19, -inf  ;;  %v3350_v12 = vsel %vm1559_vm10, 1.0, %v4589_v0 }
 0x61a   : > { %1603 = vmax.xlane.f32.xlu1 %v1602_v54  ;;  %v5488_v34 = vpop.xlane.xlu1 %1553  ;;  %v1599_v57 = vsel %vm807_vm7, %v5484_v53, -inf }
 0x61b   : > { %vm1562_vm0 = vcmp.eq.f32.partialorder %v4990_v32, %v5488_v34  ;;  %1600 = vmax.xlane.f32.xlu0 %v1599_v57  ;;  %v5494_v48 = vpop.xlane.xlu0 %1550 }
 0x61c   : > { %v5500_v37 = vsel %vm1562_vm0, -inf, %v5360_v1  ;;  %vm1561_vm1 = vcmp.eq.f32.partialorder %v4990_v32, %v5494_v48  ;;  %v3353_v43 = vsel %vm1562_vm0, 1.0, %v4589_v0 }
 0x61d   : > { %v5508_v59 = vsel %vm1561_vm1, -inf, %v5366_v46  ;;  %v1608_v13 = vsel %vm807_vm7, %v5500_v37, -inf  ;;  %v3352_v16 = vsel %vm1561_vm1, 1.0, %v4589_v0 }
 0x61e   : > { %1609 = vmax.xlane.f32.xlu1 %v1608_v13  ;;  %v1605_v2 = vsel %vm807_vm7, %v5508_v59, -inf }
 0x61f   : > { %1606 = vmax.xlane.f32.xlu0 %v1605_v2 }
 0x69f   : > { %v1592_v7 = vpop.xlane.xlu1 %1591 }
 0x6a0   : > { %vm1612_vm2 = vcmp.eq.f32.partialorder %v5428_v55, %v1592_v7  ;;  %v1589_v1 = vpop.xlane.xlu0 %1588 }
 0x6a1   : > { %vm1611_vm3 = vcmp.eq.f32.partialorder %v5436_v47, %v1589_v1  ;;  %v1620_v18 = vsel %vm1612_vm2, %v4990_v32, 64.0 }
 0x6a2   : > { %v1630_v25 = vsel %vm807_vm7, %v1620_v18, inf  ;;  %v1619_v46 = vsel %vm1611_vm3, %v4990_v32, 64.0 }
 0x6a3   : > { %1631 = vmin.xlane.f32.xlu1 %v1630_v25  ;;  %v1598_v33 = vpop.xlane.xlu1 %1597  ;;  %v1627_v22 = vsel %vm807_vm7, %v1619_v46, inf }
 0x6a4   : > { %vm1614_vm4 = vcmp.eq.f32.partialorder %v5452_v35, %v1598_v33  ;;  %1628 = vmin.xlane.f32.xlu0 %v1627_v22  ;;  %v1595_v61 = vpop.xlane.xlu0 %1594 }
 0x6a5   : > { %vm1613_vm5 = vcmp.eq.f32.partialorder %v5460_v23, %v1595_v61  ;;  %v1622_v60 = vsel %vm1614_vm4, %v4990_v32, 64.0 }
 0x6a6   : > { %v1636_v5 = vsel %vm807_vm7, %v1622_v60, inf  ;;  %v1621_v56 = vsel %vm1613_vm5, %v4990_v32, 64.0 }
 0x6a7   : > { %1637 = vmin.xlane.f32.xlu1 %v1636_v5  ;;  %v1604_v38 = vpop.xlane.xlu1 %1603  ;;  %v1633_v11 = vsel %vm807_vm7, %v1621_v56, inf }
 0x6a8   : > { %vm1616_vm6 = vcmp.eq.f32.partialorder %v5476_v19, %v1604_v38  ;;  %1634 = vmin.xlane.f32.xlu0 %v1633_v11  ;;  %v1601_v9 = vpop.xlane.xlu0 %1600 }
 0x6a9   : > { %vm1615_vm8 = vcmp.eq.f32.partialorder %v5484_v53, %v1601_v9  ;;  %v1624_v49 = vsel %vm1616_vm6, %v4990_v32, 64.0 }
 0x6aa   : > { %v1642_v39 = vsel %vm807_vm7, %v1624_v49, inf  ;;  %v1623_v50 = vsel %vm1615_vm8, %v4990_v32, 64.0 }
 0x6ab   : > { %1643 = vmin.xlane.f32.xlu1 %v1642_v39  ;;  %v1610_v52 = vpop.xlane.xlu1 %1609  ;;  %v1639_v54 = vsel %vm807_vm7, %v1623_v50, inf }
 0x6ac   : > { %vm1618_vm11 = vcmp.eq.f32.partialorder %v5500_v37, %v1610_v52  ;;  %1640 = vmin.xlane.f32.xlu0 %v1639_v54  ;;  %v1607_v57 = vpop.xlane.xlu0 %1606 }
 0x6ad   : > { %vm1617_vm2 = vcmp.eq.f32.partialorder %v5508_v59, %v1607_v57  ;;  %v1626_v13 = vsel %vm1618_vm11, %v4990_v32, 64.0 }
 0x6ae   : > { %v1648_v2 = vsel %vm807_vm7, %v1626_v13, inf  ;;  %v1625_v7 = vsel %vm1617_vm2, %v4990_v32, 64.0 }
 0x6af   : > { %1649 = vmin.xlane.f32.xlu1 %v1648_v2  ;;  %v1645_v1 = vsel %vm807_vm7, %v1625_v7, inf }
 0x6b0   : > { %1646 = vmin.xlane.f32.xlu0 %v1645_v1 }
 0x730   : > { %v1632_v18 = vpop.xlane.xlu1 %1631 }
 0x731   : > { %vm1652_vm3 = vcmp.eq.f32.partialorder %v4990_v32, %v1632_v18  ;;  %v1629_v25 = vpop.xlane.xlu0 %1628 }
 0x732   : > { %v5540_v46 = vsel %vm1652_vm3, -inf, %v5428_v55  ;;  %vm1651_vm4 = vcmp.eq.f32.partialorder %v4990_v32, %v1629_v25  ;;  %v3355_v60 = vsel %vm1652_vm3, 1.0, %v4589_v0 }
 0x733   : > { %v3354_v33 = vsel %vm1651_vm4, 1.0, %v4589_v0  ;;  %v5545_v22 = vsel %vm1651_vm4, -inf, %v5436_v47  ;;  %v1944_v61 = vsel %vm807_vm7, %v5540_v46, -inf }
 0x734   : > { %1945 = vmax.xlane.f32.xlu1 %v1944_v61  ;;  %v1638_v5 = vpop.xlane.xlu1 %1637  ;;  %3818 = vmatprep.mubr.msk.f32.mxu0 %vm807_vm7, %v3354_v33  ;;  %v1941_v55 = vsel %vm807_vm7, %v5545_v22, -inf  ;;  %v3346_v61 = vsel %vm1555_vm13, 1.0, %v4589_v0 }
 0x735   : > { %vm1654_vm5 = vcmp.eq.f32.partialorder %v4990_v32, %v1638_v5  ;;  %1942 = vmax.xlane.f32.xlu0 %v1941_v55  ;;  %v1635_v56 = vpop.xlane.xlu0 %1634  ;;  %3819 = vmatmul.mubr.msk.f32.vlgmr.msra.gmra.mrb[16].mxu0 %vm807_vm7, %v3355_v60  ;;  %v3349_v60 = vsel %vm1558_vm14, 1.0, %v4589_v0 }
 0x736   : > { %v5556_v47 = vsel %vm1654_vm5, -inf, %v5452_v35  ;;  %vm1653_vm6 = vcmp.eq.f32.partialorder %v4990_v32, %v1635_v56  ;;  %4161 = vmatpush3.bf16.msra.mxu0 %v5140_v26  ;;  %v3357_v49 = vsel %vm1654_vm5, 1.0, %v4589_v0 }
 0x737   : > { %v3356_v38 = vsel %vm1653_vm6, 1.0, %v4589_v0  ;;  %v5562_v11 = vsel %vm1653_vm6, -inf, %v5460_v23  ;;  %v1950_v9 = vsel %vm807_vm7, %v5556_v47, -inf  ;;  %4163 = vmatprep.subr.bf16.mxu0 %v5148_v10 }
 0x738   : > { %1951 = vmax.xlane.f32.xlu1 %v1950_v9  ;;  %v1644_v39 = vpop.xlane.xlu1 %1643  ;;  %3821 = vmatprep.mubr.msk.f32.mxu0 %vm807_vm7, %v3356_v38  ;;  %v1947_v35 = vsel %vm807_vm7, %v5562_v11, -inf }
 0x739   : > { %vm1656_vm8 = vcmp.eq.f32.partialorder %v4990_v32, %v1644_v39  ;;  %1948 = vmax.xlane.f32.xlu0 %v1947_v35  ;;  %v1641_v50 = vpop.xlane.xlu0 %1640  ;;  %3822 = vmatmul.mubr.msk.f32.gmra.mrb[18].mxu0 %vm807_vm7, %v3357_v49 }
 0x73a   : > { %v5574_v23 = vsel %vm1656_vm8, -inf, %v5476_v19  ;;  %vm1655_vm11 = vcmp.eq.f32.partialorder %v4990_v32, %v1641_v50  ;;  %4165 = vmatpush3.bf16.msra.mxu0 %v5148_v10  ;;  %v3359_v13 = vsel %vm1656_vm8, 1.0, %v4589_v0 }
 0x73b   : > { %v3358_v52 = vsel %vm1655_vm11, 1.0, %v4589_v0  ;;  %v5580_v54 = vsel %vm1655_vm11, -inf, %v5484_v53  ;;  %v1956_v57 = vsel %vm807_vm7, %v5574_v23, -inf  ;;  %4167 = vmatprep.subr.bf16.mxu0 %v5154_v27 }
 0x73c   : > { %1957 = vmax.xlane.f32.xlu1 %v1956_v57  ;;  %v1650_v2 = vpop.xlane.xlu1 %1649  ;;  %3824 = vmatprep.mubr.msk.f32.mxu0 %vm807_vm7, %v3358_v52  ;;  %v1953_v19 = vsel %vm807_vm7, %v5580_v54, -inf }
 0x73d   : > { %vm1658_vm2 = vcmp.eq.f32.partialorder %v4990_v32, %v1650_v2  ;;  %1954 = vmax.xlane.f32.xlu0 %v1953_v19  ;;  %v1647_v7 = vpop.xlane.xlu0 %1646  ;;  %3825 = vmatmul.mubr.msk.f32.gmra.mrb[20].mxu0 %vm807_vm7, %v3359_v13 }
 0x73e   : > { %v5592_v53 = vsel %vm1658_vm2, -inf, %v5500_v37  ;;  %vm1657_vm3 = vcmp.eq.f32.partialorder %v4990_v32, %v1647_v7  ;;  %4169 = vmatpush3.bf16.msra.mxu0 %v5154_v27  ;;  %v3361_v33 = vsel %vm1658_vm2, 1.0, %v4589_v0 }
 0x73f   : > { %v3360_v1 = vsel %vm1657_vm3, 1.0, %v4589_v0  ;;  %v5598_v18 = vsel %vm1657_vm3, -inf, %v5508_v59  ;;  %v1962_v25 = vsel %vm807_vm7, %v5592_v53, -inf  ;;  %4171 = vmatprep.subr.bf16.mxu0 %v5160_v28  ;;  %v3347_v59 = vsel %vm1556_vm12, 1.0, %v4589_v0 }
 0x740   : > { %1963 = vmax.xlane.f32.xlu1 %v1962_v25  ;;  %3827 = vmatprep.mubr.msk.f32.mxu0 %vm807_vm7, %v3360_v1  ;;  %v1959_v37 = vsel %vm807_vm7, %v5598_v18, -inf }
 0x741   : > { %1960 = vmax.xlane.f32.xlu0 %v1959_v37  ;;  %3828 = vmatmul.mubr.msk.f32.gmra.mrb[22].mxu0 %vm807_vm7, %v3361_v33 }
 0x742   : > { %4173 = vmatpush3.bf16.msra.mxu0 %v5160_v28  ;;  %3846 = vmatprep.mubr.msk.f32.mxu0 %vm807_vm7, %v3346_v61 }
 0x743   : > { %4175 = vmatprep.subr.bf16.mxu0 %v4909_v63 }
 0x745   : > { %3847 = vmatmul.mubr.msk.f32.vlgmr.msra.gmra.mrb[16].mxu0 %vm807_vm7, %v3347_v59 }
 0x746   : > { %4177 = vmatpush3.bf16.msra.mxu0 %v4909_v63  ;;  %3849 = vmatprep.mubr.msk.f32.mxu0 %vm807_vm7, %v3348_v8 }
 0x747   : > { %4179 = vmatprep.subr.bf16.mxu0 %v4925_v15 }
 0x749   : > { %3850 = vmatmul.mubr.msk.f32.gmra.mrb[18].mxu0 %vm807_vm7, %v3349_v60 }
 0x74a   : > { %4181 = vmatpush3.bf16.msra.mxu0 %v4925_v15  ;;  %3852 = vmatprep.mubr.msk.f32.mxu0 %vm807_vm7, %v3350_v12 }
 0x74b   : > { %4183 = vmatprep.subr.bf16.mxu0 %v4938_v42 }
 0x74d   : > { %3853 = vmatmul.mubr.msk.f32.gmra.mrb[20].mxu0 %vm807_vm7, %v3351_v20 }
 0x74e   : > { %4185 = vmatpush3.bf16.msra.mxu0 %v4938_v42  ;;  %3855 = vmatprep.mubr.msk.f32.mxu0 %vm807_vm7, %v3352_v16 }
 0x74f   : > { %4187 = vmatprep.subr.bf16.mxu0 %v4951_v62 }
 0x751   : > { %3856 = vmatmul.mubr.msk.f32.gmra.mrb[22].mxu0 %vm807_vm7, %v3353_v43 }
 0x752   : > { %4189 = vmatpush3.bf16.msra.mxu0 %v4951_v62 }
 0x7c1   : > { %v1946_v6 = vpop.xlane.xlu1 %1945 }
 0x7c2   : > { %vm1966_vm12 = vcmp.eq.f32.partialorder %v5540_v46, %v1946_v6  ;;  %v1943_v48 = vpop.xlane.xlu0 %1942 }
 0x7c3   : > { %vm1965_vm13 = vcmp.eq.f32.partialorder %v5545_v22, %v1943_v48  ;;  %v1974_v5 = vsel %vm1966_vm12, %v4990_v32, 64.0 }
 0x7c4   : > { %v1984_v55 = vsel %vm807_vm7, %v1974_v5, inf  ;;  %v1973_v56 = vsel %vm1965_vm13, %v4990_v32, 64.0 }
 0x7c5   : > { %1985 = vmin.xlane.f32.xlu1 %v1984_v55  ;;  %v1952_v38 = vpop.xlane.xlu1 %1951  ;;  %v1981_v34 = vsel %vm807_vm7, %v1973_v56, inf }
 0x7c6   : > { %vm1968_vm14 = vcmp.eq.f32.partialorder %v5556_v47, %v1952_v38  ;;  %1982 = vmin.xlane.f32.xlu0 %v1981_v34  ;;  %v1949_v9 = vpop.xlane.xlu0 %1948 }
 0x7c7   : > { %v1976_v49 = vsel %vm1968_vm14, %v4990_v32, 64.0  ;;  %vm1967_vm15 = vcmp.eq.f32.partialorder %v5562_v11, %v1949_v9 }
 0x7c8   : > { %v1975_v39 = vsel %vm1967_vm15, %v4990_v32, 64.0  ;;  %v1990_v35 = vsel %vm807_vm7, %v1976_v49, inf }
 0x7c9   : > { %1991 = vmin.xlane.f32.xlu1 %v1990_v35  ;;  %v1958_v50 = vpop.xlane.xlu1 %1957  ;;  %v1987_v52 = vsel %vm807_vm7, %v1975_v39, inf }
 0x7ca   : > { %vm1970_vm9 = vcmp.eq.f32.partialorder %v5574_v23, %v1958_v50  ;;  %1988 = vmin.xlane.f32.xlu0 %v1987_v52  ;;  %v1955_v57 = vpop.xlane.xlu0 %1954 }
 0x7cb   : > { %v1978_v13 = vsel %vm1970_vm9, %v4990_v32, 64.0  ;;  %vm1969_vm10 = vcmp.eq.f32.partialorder %v5580_v54, %v1955_v57 }
 0x7cc   : > { %v1977_v2 = vsel %vm1969_vm10, %v4990_v32, 64.0  ;;  %v1996_v19 = vsel %vm807_vm7, %v1978_v13, inf }
 0x7cd   : > { %1997 = vmin.xlane.f32.xlu1 %v1996_v19  ;;  %v1964_v7 = vpop.xlane.xlu1 %1963  ;;  %v1993_v1 = vsel %vm807_vm7, %v1977_v2, inf }
 0x7ce   : > { %vm1972_vm0 = vcmp.eq.f32.partialorder %v5592_v53, %v1964_v7  ;;  %1994 = vmin.xlane.f32.xlu0 %v1993_v1  ;;  %v1961_v25 = vpop.xlane.xlu0 %1960 }
 0x7cf   : > { %v1980_v33 = vsel %vm1972_vm0, %v4990_v32, 64.0  ;;  %vm1971_vm1 = vcmp.eq.f32.partialorder %v5598_v18, %v1961_v25 }
 0x7d0   : > { %v1979_v37 = vsel %vm1971_vm1, %v4990_v32, 64.0  ;;  %v2002_v61 = vsel %vm807_vm7, %v1980_v33, inf  ;;  %v2914_v33 = vld [vmem:[#allocation7 + $0x88] sm:$0xff] }
 0x7d1   : > { %2003 = vmin.xlane.f32.xlu1 %v2002_v61  ;;  %v1999_v59 = vsel %vm807_vm7, %v1979_v37, inf  ;;  %v2897_v37 = vld [vmem:[#allocation7] sm:$0xff] }
 0x7d2   : > { %2000 = vmin.xlane.f32.xlu0 %v1999_v59  ;;  %v2915_v59 = vld [vmem:[#allocation7 + $0x90] sm:$0xff] }
 0x852   : > { %v1986_v8 = vpop.xlane.xlu1 %1985 }
 0x853   : > { %vm2006_vm4 = vcmp.eq.f32.partialorder %v4990_v32, %v1986_v8  ;;  %v1983_v60 = vpop.xlane.xlu0 %1982  ;;  %v2916_v8 = vld [vmem:[#allocation7 + $0x98] sm:$0xff] }
 0x854   : > { %v5683_v12 = vsel %vm2006_vm4, -inf, %v5540_v46  ;;  %vm2005_vm5 = vcmp.eq.f32.partialorder %v4990_v32, %v1983_v60  ;;  %v3379_v6 = vsel %vm2006_vm4, 1.0, %v4589_v0 }
 0x855   : > { %v3378_v20 = vsel %vm2005_vm5, 1.0, %v4589_v0  ;;  %v5688_v16 = vsel %vm2005_vm5, -inf, %v5545_v22  ;;  %v2177_v43 = vsel %vm807_vm7, %v5683_v12, -inf }
 0x856   : > { %2178 = vmax.xlane.f32.xlu1 %v2177_v43  ;;  %v1992_v48 = vpop.xlane.xlu1 %1991  ;;  %3874 = vmatprep.mubr.msk.f32.mxu0 %vm807_vm7, %v3378_v20  ;;  %v2174_v46 = vsel %vm807_vm7, %v5688_v16, -inf  ;;  %v4242_v20 = vpack.c.bf16 %v2916_v8, %v2915_v59  ;;  %v2899_v43 = vld [vmem:[#allocation7 + $0x10] sm:$0xff]  ;;  %v2925_v59 = vld [vmem:[#allocation7 + $0xe0] sm:$0xff]  ;;  %v2926_v8 = vld [vmem:[#allocation7 + $0xe8] sm:$0xff] }
 0x857   : > { %vm2008_vm6 = vcmp.eq.f32.partialorder %v4990_v32, %v1992_v48  ;;  %2175 = vmax.xlane.f32.xlu0 %v2174_v46  ;;  %v1989_v5 = vpop.xlane.xlu0 %1988  ;;  %3875 = vmatmul.mubr.msk.f32.vlgmr.msra.gmra.mrb[16].mxu0 %vm807_vm7, %v3379_v6  ;;  %v2900_v6 = vld [vmem:[#allocation7 + $0x18] sm:$0xff]  ;;  %v2917_v48 = vld [vmem:[#allocation7 + $0xa0] sm:$0xff]  ;;  %v2918_v46 = vld [vmem:[#allocation7 + $0xa8] sm:$0xff] }
 0x858   : > { %v5699_v22 = vsel %vm2008_vm6, -inf, %v5556_v47  ;;  %vm2007_vm8 = vcmp.eq.f32.partialorder %v4990_v32, %v1989_v5  ;;  %v3381_v34 = vsel %vm2008_vm6, 1.0, %v4589_v0  ;;  %v4244_v5 = vpack.c.bf16 %v2900_v6, %v2899_v43  ;;  %v2909_v43 = vld [vmem:[#allocation7 + $0x60] sm:$0xff]  ;;  %v2910_v6 = vld [vmem:[#allocation7 + $0x68] sm:$0xff] }
 0x859   : > { %v3380_v55 = vsel %vm2007_vm8, 1.0, %v4589_v0  ;;  %v5704_v56 = vsel %vm2007_vm8, -inf, %v5562_v11  ;;  %v2183_v38 = vsel %vm807_vm7, %v5699_v22, -inf }
 0x85a   : > { %2184 = vmax.xlane.f32.xlu1 %v2183_v38  ;;  %v1998_v9 = vpop.xlane.xlu1 %1997  ;;  %3877 = vmatprep.mubr.msk.f32.mxu0 %vm807_vm7, %v3380_v55  ;;  %v2180_v47 = vsel %vm807_vm7, %v5704_v56, -inf  ;;  %v4246_v55 = vpack.c.bf16 %v2918_v46, %v2917_v48  ;;  %v2901_v38 = vld [vmem:[#allocation7 + $0x20] sm:$0xff]  ;;  %v4264_v48 = vpack.c.bf16 %v2910_v6, %v2909_v43  ;;  %v2927_v46 = vld [vmem:[#allocation7 + $0xf0] sm:$0xff] }
 0x85b   : > { %vm2010_vm11 = vcmp.eq.f32.partialorder %v4990_v32, %v1998_v9  ;;  %2181 = vmax.xlane.f32.xlu0 %v2180_v47  ;;  %v1995_v49 = vpop.xlane.xlu0 %1994  ;;  %3878 = vmatmul.mubr.msk.f32.gmra.mrb[18].mxu0 %vm807_vm7, %v3381_v34  ;;  %v2902_v34 = vld [vmem:[#allocation7 + $0x28] sm:$0xff]  ;;  %v2919_v9 = vld [vmem:[#allocation7 + $0xb0] sm:$0xff]  ;;  %v2920_v47 = vld [vmem:[#allocation7 + $0xb8] sm:$0xff] }
 0x85c   : > { %v5715_v11 = vsel %vm2010_vm11, -inf, %v5574_v23  ;;  %vm2009_vm2 = vcmp.eq.f32.partialorder %v4990_v32, %v1995_v49  ;;  %v3383_v52 = vsel %vm2010_vm11, 1.0, %v4589_v0  ;;  %v4248_v49 = vpack.c.bf16 %v2902_v34, %v2901_v38  ;;  %v2911_v38 = vld [vmem:[#allocation7 + $0x70] sm:$0xff]  ;;  %v2912_v34 = vld [vmem:[#allocation7 + $0x78] sm:$0xff] }
 0x85d   : > { %v3382_v39 = vsel %vm2009_vm2, 1.0, %v4589_v0  ;;  %v5720_v35 = vsel %vm2009_vm2, -inf, %v5580_v54  ;;  %v2189_v50 = vsel %vm807_vm7, %v5715_v11, -inf }
 0x85e   : > { %2190 = vmax.xlane.f32.xlu1 %v2189_v50  ;;  %v2004_v57 = vpop.xlane.xlu1 %2003  ;;  %3880 = vmatprep.mubr.msk.f32.mxu0 %vm807_vm7, %v3382_v39  ;;  %v2186_v23 = vsel %vm807_vm7, %v5720_v35, -inf  ;;  %v4250_v39 = vpack.c.bf16 %v2920_v47, %v2919_v9  ;;  %v2903_v50 = vld [vmem:[#allocation7 + $0x30] sm:$0xff]  ;;  %v4268_v9 = vpack.c.bf16 %v2912_v34, %v2911_v38 }
 0x85f   : > { %vm2012_vm3 = vcmp.eq.f32.partialorder %v4990_v32, %v2004_v57  ;;  %2187 = vmax.xlane.f32.xlu0 %v2186_v23  ;;  %v2001_v13 = vpop.xlane.xlu0 %2000  ;;  %3881 = vmatmul.mubr.msk.f32.gmra.mrb[20].mxu0 %vm807_vm7, %v3383_v52  ;;  %v2904_v52 = vld [vmem:[#allocation7 + $0x38] sm:$0xff]  ;;  %v2921_v57 = vld [vmem:[#allocation7 + $0xc0] sm:$0xff]  ;;  %v2922_v23 = vld [vmem:[#allocation7 + $0xc8] sm:$0xff] }
 0x860   : > { %v5731_v54 = vsel %vm2012_vm3, -inf, %v5592_v53  ;;  %vm2011_vm12 = vcmp.eq.f32.partialorder %v4990_v32, %v2001_v13  ;;  %v3385_v1 = vsel %vm2012_vm3, 1.0, %v4589_v0  ;;  %v2913_v53 = vld [vmem:[#allocation7 + $0x80] sm:$0xff]  ;;  %v4252_v13 = vpack.c.bf16 %v2904_v52, %v2903_v50 }
 0x861   : > { %v3384_v2 = vsel %vm2011_vm12, 1.0, %v4589_v0  ;;  %v5736_v19 = vsel %vm2011_vm12, -inf, %v5598_v18  ;;  %v2195_v7 = vsel %vm807_vm7, %v5731_v54, -inf  ;;  %v4238_v61 = vpack.c.bf16 %v2914_v33, %v2913_v53  ;;  %v2898_v18 = vld [vmem:[#allocation7 + $0x8] sm:$0xff]  ;;  %v2924_v53 = vld [vmem:[#allocation7 + $0xd8] sm:$0xff] }
 0x862   : > { %2196 = vmax.xlane.f32.xlu1 %v2195_v7  ;;  %3883 = vmatprep.mubr.msk.f32.mxu0 %vm807_vm7, %v3384_v2  ;;  %v2192_v25 = vsel %vm807_vm7, %v5736_v19, -inf  ;;  %v4240_v60 = vpack.c.bf16 %v2898_v18, %v2897_v37  ;;  %v4254_v2 = vpack.c.bf16 %v2922_v23, %v2921_v57  ;;  %v2905_v7 = vld [vmem:[#allocation7 + $0x40] sm:$0xff]  ;;  %v2908_v18 = vld [vmem:[#allocation7 + $0x58] sm:$0xff] }
 0x863   : > { %2193 = vmax.xlane.f32.xlu0 %v2192_v25  ;;  %3884 = vmatmul.mubr.msk.f32.gmra.mrb[22].mxu0 %vm807_vm7, %v3385_v1  ;;  %v2906_v1 = vld [vmem:[#allocation7 + $0x48] sm:$0xff]  ;;  %v2923_v25 = vld [vmem:[#allocation7 + $0xd0] sm:$0xff] }
 0x864   : > { %4239 = vmatprep.subr.bf16.mxu0 %v4238_v61  ;;  %v4256_v33 = vpack.c.bf16 %v2906_v1, %v2905_v7  ;;  %v4258_v37 = vpack.c.bf16 %v2924_v53, %v2923_v25  ;;  %v2907_v61 = vld [vmem:[#allocation7 + $0x50] sm:$0xff] }
 0x865   : > { %4241 = vmatpush3.bf16.msra.mxu0 %v4240_v60  ;;  %v4260_v60 = vpack.c.bf16 %v2908_v18, %v2907_v61 }
 0x866   : > { %4243 = vmatprep.subr.bf16.mxu0 %v4242_v20  ;;  %v4262_v20 = vpack.c.bf16 %v2926_v8, %v2925_v59 }
 0x869   : > { %4245 = vmatpush3.bf16.msra.mxu0 %v4244_v5  ;;  %v2928_v5 = vld [vmem:[#allocation7 + $0xf8] sm:$0xff] }
 0x86a   : > { %4247 = vmatprep.subr.bf16.mxu0 %v4246_v55  ;;  %v4266_v55 = vpack.c.bf16 %v2928_v5, %v2927_v46  ;;  %v3297_v46 = vld [vmem:[%s6207_s2] ss:$0 sm:$0xff] }
 0x86b   : > { %v5773_v5 = vadd.f32 %v3297_v46, %v5112_v24 }
 0x86d   : > { %4249 = vmatpush3.bf16.msra.mxu0 %v4248_v49  ;;  %v2849_v34 = vsub.f32 %v5773_v5, %v5404_v40  ;;  %v5789_v40 = vadd.f32 %v3297_v46, %v5144_v4 }
 0x86e   : > { %4251 = vmatprep.subr.bf16.mxu0 %v4250_v39 }
 0x86f   : > { %v2852_v4 = vsub.f32 %v5789_v40, %v5406_v51  ;;  %v5807_v51 = vadd.f32 %v3297_v46, %v5156_v30 }
 0x871   : > { %4253 = vmatpush3.bf16.msra.mxu0 %v4252_v13 }
 0x872   : > { %4255 = vmatprep.subr.bf16.mxu0 %v4254_v2 }
 0x875   : > { %4257 = vmatpush3.bf16.msra.mxu0 %v4256_v33 }
 0x876   : > { %4259 = vmatprep.subr.bf16.mxu0 %v4258_v37 }
 0x879   : > { %4261 = vmatpush3.bf16.msra.mxu0 %v4260_v60 }
 0x87a   : > { %4263 = vmatprep.subr.bf16.mxu0 %v4262_v20 }
 0x87d   : > { %4265 = vmatpush3.bf16.msra.mxu0 %v4264_v48 }
 0x87e   : > { %4267 = vmatprep.subr.bf16.mxu0 %v4266_v55  ;;  %v5776_v55 = vadd.f32 %v3297_v46, %v5138_v58 }
 0x880   : > { %v2850_v24 = vsub.f32 %v5776_v55, %v5402_v36 }
 0x881   : > { %4269 = vmatpush3.bf16.msra.mxu0 %v4268_v9 }
 0x8e3   : > { %v2179_v47 = vpop.xlane.xlu1 %2178 }
 0x8e4   : > { %vm2199_vm13 = vcmp.eq.f32.partialorder %v5683_v12, %v2179_v47  ;;  %v2176_v49 = vpop.xlane.xlu0 %2175 }
 0x8e5   : > { %v2207_v39 = vsel %vm2199_vm13, %v4990_v32, 64.0  ;;  %vm2198_vm14 = vcmp.eq.f32.partialorder %v5688_v16, %v2176_v49 }
 0x8e6   : > { %v2206_v50 = vsel %vm2198_vm14, %v4990_v32, 64.0  ;;  %v2217_v52 = vsel %vm807_vm7, %v2207_v39, inf  ;;  %v5783_v39 = vadd.f32 %v3297_v46, %v5142_v29 }
 0x8e7   : > { %2218 = vmin.xlane.f32.xlu1 %v2217_v52  ;;  %v2185_v57 = vpop.xlane.xlu1 %2184  ;;  %v2214_v23 = vsel %vm807_vm7, %v2206_v50, inf }
 0x8e8   : > { %vm2201_vm15 = vcmp.eq.f32.partialorder %v5699_v22, %v2185_v57  ;;  %2215 = vmin.xlane.f32.xlu0 %v2214_v23  ;;  %v2182_v13 = vpop.xlane.xlu0 %2181  ;;  %v2857_v57 = vmax.f32 %v2849_v34, 0.0  ;;  %v2851_v29 = vsub.f32 %v5783_v39, %v5408_v3  ;;  %v5801_v3 = vadd.f32 %v3297_v46, %v5152_v21 }
 0x8e9   : > { %v2209_v2 = vsel %vm2201_vm15, %v4990_v32, 64.0  ;;  %vm2200_vm9 = vcmp.eq.f32.partialorder %v5704_v56, %v2182_v13  ;;  %v2855_v34 = vsub.f32 %v5807_v51, %v5416_v45 }
 0x8ea   : > { %v2208_v7 = vsel %vm2200_vm9, %v4990_v32, 64.0  ;;  %v2223_v1 = vsel %vm807_vm7, %v2209_v2, inf }
 0x8eb   : > { %2224 = vmin.xlane.f32.xlu1 %v2223_v1  ;;  %v2191_v25 = vpop.xlane.xlu1 %2190  ;;  %v2220_v53 = vsel %vm807_vm7, %v2208_v7, inf  ;;  %v2858_v7 = vmax.f32 %v2850_v24, 0.0 }
 0x8ec   : > { %vm2203_vm10 = vcmp.eq.f32.partialorder %v5715_v11, %v2191_v25  ;;  %2221 = vmin.xlane.f32.xlu0 %v2220_v53  ;;  %v2188_v33 = vpop.xlane.xlu0 %2187  ;;  %v5795_v53 = vadd.f32 %v3297_v46, %v5150_v14 }
 0x8ed   : > { %v2211_v37 = vsel %vm2203_vm10, %v4990_v32, 64.0  ;;  %vm2202_vm0 = vcmp.eq.f32.partialorder %v5720_v35, %v2188_v33 }
 0x8ee   : > { %v2210_v61 = vsel %vm2202_vm0, %v4990_v32, 64.0  ;;  %v2229_v18 = vsel %vm807_vm7, %v2211_v37, inf  ;;  %v2859_v37 = vmax.f32 %v2851_v29, 0.0  ;;  %v2853_v14 = vsub.f32 %v5795_v53, %v5412_v17 }
 0x8ef   : > { %2230 = vmin.xlane.f32.xlu1 %v2229_v18  ;;  %v2197_v59 = vpop.xlane.xlu1 %2196  ;;  %v2226_v8 = vsel %vm807_vm7, %v2210_v61, inf }
 0x8f0   : > { %vm2205_vm1 = vcmp.eq.f32.partialorder %v5731_v54, %v2197_v59  ;;  %2227 = vmin.xlane.f32.xlu0 %v2226_v8  ;;  %v2194_v60 = vpop.xlane.xlu0 %2193  ;;  %v2860_v8 = vmax.f32 %v2852_v4, 0.0 }
 0x8f1   : > { %v2213_v20 = vsel %vm2205_vm1, %v4990_v32, 64.0  ;;  %vm2204_vm4 = vcmp.eq.f32.partialorder %v5736_v19, %v2194_v60 }
 0x8f2   : > { %v2212_v43 = vsel %vm2204_vm4, %v4990_v32, 64.0  ;;  %v2235_v6 = vsel %vm807_vm7, %v2213_v20, inf }
 0x8f3   : > { %2236 = vmin.xlane.f32.xlu1 %v2235_v6  ;;  %v2232_v48 = vsel %vm807_vm7, %v2212_v43, inf  ;;  %v2854_v43 = vsub.f32 %v5801_v3, %v5410_v41  ;;  %v2861_v6 = vmax.f32 %v2853_v14, 0.0 }
 0x8f4   : > { %2233 = vmin.xlane.f32.xlu0 %v2232_v48 }
 0x8f5   : > { %v2862_v17 = vmax.f32 %v2854_v43, 0.0 }
 0x92a   : > { %v3876_v38 = vpop.f32.mrb[16].mxu0 }
 0x92b   : > { %v2119_v9 = vpop.f32.mrb[17].mxu0  ;;  %v2866_v47 = vsub.f32 %v5776_v55, %v3876_v38  ;;  %v5813_v38 = vadd.f32 %v3297_v46, %v5158_v31 }
 0x92c   : > { %v2865_v49 = vsub.f32 %v5773_v5, %v2119_v9 }
 0x92d   : > { %v2874_v23 = vmax.f32 %v2866_v47, 0.0  ;;  %v2856_v41 = vsub.f32 %v5813_v38, %v5414_v44  ;;  %v2863_v47 = vmax.f32 %v2855_v34, 0.0 }
 0x92e   : > { %v2873_v50 = vmax.f32 %v2865_v49, 0.0  ;;  %v3879_v52 = vpop.f32.mrb[18].mxu0 }
 0x92f   : > { %v2129_v58 = vpop.f32.mrb[19].mxu0  ;;  %v2868_v25 = vsub.f32 %v5789_v40, %v3879_v52 }
 0x930   : > { %v2867_v13 = vsub.f32 %v5783_v39, %v2129_v58  ;;  %3016 = vmatprep.mubr.f32.mxu0 %v2873_v50  ;;  %v2864_v50 = vmax.f32 %v2856_v41, 0.0 }
 0x931   : > { %3017 = vmatmul.mubr.f32.vlgmr.msra.gmra.mrb[24].mxu0 %v2857_v57  ;;  %v2876_v18 = vmax.f32 %v2868_v25, 0.0 }
 0x932   : > { %v3882_v2 = vpop.f32.mrb[20].mxu0  ;;  %3021 = vmatprep.mubr.f32.mxu0 %v2874_v23  ;;  %v2875_v36 = vmax.f32 %v2867_v13, 0.0 }
 0x933   : > { %v2139_v1 = vpop.f32.mrb[21].mxu0  ;;  %v2870_v60 = vsub.f32 %v5801_v3, %v3882_v2 }
 0x934   : > { %v2869_v59 = vsub.f32 %v5795_v53, %v2139_v1 }
 0x935   : > { %3022 = vmatmul.mubr.f32.gmra.mrb[26].mxu0 %v2858_v7  ;;  %v2878_v48 = vmax.f32 %v2870_v60, 0.0 }
 0x936   : > { %v3885_v33 = vpop.f32.mrb[22].mxu0  ;;  %3026 = vmatprep.mubr.f32.mxu0 %v2875_v36  ;;  %v2877_v20 = vmax.f32 %v2869_v59, 0.0 }
 0x937   : > { %v2149_v61 = vpop.f32.mrb[23].mxu0  ;;  %v2872_v30 = vsub.f32 %v5813_v38, %v3885_v33 }
 0x938   : > { %v2871_v21 = vsub.f32 %v5807_v51, %v2149_v61 }
 0x939   : > { %3027 = vmatmul.mubr.f32.gmra.mrb[28].mxu0 %v2859_v37  ;;  %v2880_v49 = vmax.f32 %v2872_v30, 0.0 }
 0x93a   : > { %3031 = vmatprep.mubr.f32.mxu0 %v2876_v18  ;;  %v2879_v9 = vmax.f32 %v2871_v21, 0.0 }
 0x93d   : > { %3032 = vmatmul.mubr.f32.gmra.mrb[30].mxu0 %v2860_v8 }
 0x93e   : > { %3036 = vmatprep.mubr.f32.mxu0 %v2877_v20 }
 0x941   : > { %3037 = vmatmul.mubr.f32.gmra.mrb[32].mxu0 %v2861_v6 }
 0x942   : > { %3041 = vmatprep.mubr.f32.mxu0 %v2878_v48 }
 0x945   : > { %3042 = vmatmul.mubr.f32.gmra.mrb[34].mxu0 %v2862_v17 }
 0x946   : > { %3046 = vmatprep.mubr.f32.mxu0 %v2879_v9 }
 0x949   : > { %3047 = vmatmul.mubr.f32.gmra.mrb[36].mxu0 %v2863_v47 }
 0x94a   : > { %3051 = vmatprep.mubr.f32.mxu0 %v2880_v49 }
 0x94d   : > { %3052 = vmatmul.mubr.f32.gmra.mrb[38].mxu0 %v2864_v50 }
 0x974   : > { %v5820_v31 = vpop.xlane.xlu1 %2218 }
 0x975   : > { %vm2239_vm5 = vcmp.eq.f32.partialorder %v4990_v32, %v5820_v31  ;;  %v5824_v45 = vpop.xlane.xlu0 %2215 }
 0x976   : > { %v5830_v46 = vsel %vm2239_vm5, -inf, %v5683_v12  ;;  %vm2238_vm6 = vcmp.eq.f32.partialorder %v4990_v32, %v5824_v45 }
 0x977   : > { %v5838_v44 = vsel %vm2238_vm6, -inf, %v5688_v16  ;;  %v2273_v52 = vsel %vm807_vm7, %v5830_v46, -inf }
 0x978   : > { %2274 = vmax.xlane.f32.xlu1 %v2273_v52  ;;  %v5842_v24 = vpop.xlane.xlu1 %2224  ;;  %v2270_v57 = vsel %vm807_vm7, %v5838_v44, -inf }
 0x979   : > { %vm2241_vm8 = vcmp.eq.f32.partialorder %v4990_v32, %v5842_v24  ;;  %2271 = vmax.xlane.f32.xlu0 %v2270_v57  ;;  %v5848_v12 = vpop.xlane.xlu0 %2221 }
 0x97a   : > { %v5854_v16 = vsel %vm2241_vm8, -inf, %v5699_v22  ;;  %vm2240_vm11 = vcmp.eq.f32.partialorder %v4990_v32, %v5848_v12 }
 0x97b   : > { %v5862_v58 = vsel %vm2240_vm11, -inf, %v5704_v56  ;;  %v2279_v23 = vsel %vm807_vm7, %v5854_v16, -inf  ;;  %v3396_v45 = vsel %vm2240_vm11, 1.0, %v4589_v0 }
 0x97c   : > { %2280 = vmax.xlane.f32.xlu1 %v2279_v23  ;;  %v5866_v13 = vpop.xlane.xlu1 %2230  ;;  %v2276_v2 = vsel %vm807_vm7, %v5862_v58, -inf }
 0x97d   : > { %vm2243_vm2 = vcmp.eq.f32.partialorder %v4990_v32, %v5866_v13  ;;  %2277 = vmax.xlane.f32.xlu0 %v2276_v2  ;;  %v5872_v22 = vpop.xlane.xlu0 %2227 }
 0x97e   : > { %v5878_v56 = vsel %vm2243_vm2, -inf, %v5715_v11  ;;  %vm2242_vm3 = vcmp.eq.f32.partialorder %v4990_v32, %v5872_v22 }
 0x97f   : > { %v5886_v7 = vsel %vm2242_vm3, -inf, %v5720_v35  ;;  %v2285_v29 = vsel %vm807_vm7, %v5878_v56, -inf  ;;  %v3398_v31 = vsel %vm2242_vm3, 1.0, %v4589_v0 }
 0x980   : > { %2286 = vmax.xlane.f32.xlu1 %v2285_v29  ;;  %v5890_v1 = vpop.xlane.xlu1 %2236  ;;  %v2282_v25 = vsel %vm807_vm7, %v5886_v7, -inf }
 0x981   : > { %vm2245_vm12 = vcmp.eq.f32.partialorder %v4990_v32, %v5890_v1  ;;  %2283 = vmax.xlane.f32.xlu0 %v2282_v25  ;;  %v5896_v11 = vpop.xlane.xlu0 %2233 }
 0x982   : > { %v5902_v35 = vsel %vm2245_vm12, -inf, %v5731_v54  ;;  %vm2244_vm13 = vcmp.eq.f32.partialorder %v4990_v32, %v5896_v11 }
 0x983   : > { %v5910_v36 = vsel %vm2244_vm13, -inf, %v5736_v19  ;;  %v2291_v33 = vsel %vm807_vm7, %v5902_v35, -inf  ;;  %v3400_v24 = vsel %vm2244_vm13, 1.0, %v4589_v0 }
 0x984   : > { %2292 = vmax.xlane.f32.xlu1 %v2291_v33  ;;  %v2288_v4 = vsel %vm807_vm7, %v5910_v36, -inf }
 0x985   : > { %2289 = vmax.xlane.f32.xlu0 %v2288_v4 }
 0xa04   : > { %v3642_v37 = vpop.f32.mrb[24].mxu0 }
 0xa05   : > { %v2275_v54 = vpop.xlane.xlu1 %2274  ;;  %v3643_v61 = vpop.f32.mrb[25].mxu0 }
 0xa06   : > { %vm2295_vm14 = vcmp.eq.f32.partialorder %v5830_v46, %v2275_v54  ;;  %v5917_v18 = vadd.f32 %v3643_v61, %v3642_v37  ;;  %v2272_v59 = vpop.xlane.xlu0 %2271 }
 0xa07   : > { %v2303_v8 = vsel %vm2295_vm14, %v4990_v32, 64.0  ;;  %vm2294_vm15 = vcmp.eq.f32.partialorder %v5838_v44, %v2272_v59 }
 0xa08   : > { %v2302_v19 = vsel %vm2294_vm15, %v4990_v32, 64.0  ;;  %v3645_v14 = vpop.f32.mrb[26].mxu0  ;;  %v2313_v60 = vsel %vm807_vm7, %v2303_v8, inf }
 0xa09   : > { %2314 = vmin.xlane.f32.xlu1 %v2313_v60  ;;  %v2281_v20 = vpop.xlane.xlu1 %2280  ;;  %v3646_v43 = vpop.f32.mrb[27].mxu0  ;;  %v2310_v6 = vsel %vm807_vm7, %v2302_v19, inf }
 0xa0a   : > { %vm2297_vm9 = vcmp.eq.f32.partialorder %v5854_v16, %v2281_v20  ;;  %v5925_v48 = vadd.f32 %v3646_v43, %v3645_v14  ;;  %2311 = vmin.xlane.f32.xlu0 %v2310_v6  ;;  %v2278_v21 = vpop.xlane.xlu0 %2277 }
 0xa0b   : > { %v2305_v17 = vsel %vm2297_vm9, %v4990_v32, 64.0  ;;  %vm2296_vm10 = vcmp.eq.f32.partialorder %v5862_v58, %v2278_v21 }
 0xa0c   : > { %v2304_v34 = vsel %vm2296_vm10, %v4990_v32, 64.0  ;;  %v3648_v30 = vpop.f32.mrb[28].mxu0  ;;  %v2319_v9 = vsel %vm807_vm7, %v2305_v17, inf }
 0xa0d   : > { %2320 = vmin.xlane.f32.xlu1 %v2319_v9  ;;  %v2287_v41 = vpop.xlane.xlu1 %2286  ;;  %v3649_v47 = vpop.f32.mrb[29].mxu0  ;;  %v2316_v49 = vsel %vm807_vm7, %v2304_v34, inf }
 0xa0e   : > { %vm2299_vm0 = vcmp.eq.f32.partialorder %v5878_v56, %v2287_v41  ;;  %v5933_v50 = vadd.f32 %v3649_v47, %v3648_v30  ;;  %2317 = vmin.xlane.f32.xlu0 %v2316_v49  ;;  %v2284_v52 = vpop.xlane.xlu0 %2283 }
 0xa0f   : > { %v2307_v57 = vsel %vm2299_vm0, %v4990_v32, 64.0  ;;  %vm2298_vm1 = vcmp.eq.f32.partialorder %v5886_v7, %v2284_v52 }
 0xa10   : > { %v2306_v23 = vsel %vm2298_vm1, %v4990_v32, 64.0  ;;  %v3651_v2 = vpop.f32.mrb[30].mxu0  ;;  %v2325_v29 = vsel %vm807_vm7, %v2307_v57, inf }
 0xa11   : > { %2326 = vmin.xlane.f32.xlu1 %v2325_v29  ;;  %v2293_v25 = vpop.xlane.xlu1 %2292  ;;  %v3652_v33 = vpop.f32.mrb[31].mxu0  ;;  %v2322_v4 = vsel %vm807_vm7, %v2306_v23, inf }
 0xa12   : > { %vm2301_vm4 = vcmp.eq.f32.partialorder %v5902_v35, %v2293_v25  ;;  %v5941_v37 = vadd.f32 %v3652_v33, %v3651_v2  ;;  %2323 = vmin.xlane.f32.xlu0 %v2322_v4  ;;  %v2290_v54 = vpop.xlane.xlu0 %2289 }
 0xa13   : > { %v2309_v61 = vsel %vm2301_vm4, %v4990_v32, 64.0  ;;  %vm2300_vm14 = vcmp.eq.f32.partialorder %v5910_v36, %v2290_v54 }
 0xa14   : > { %v2308_v59 = vsel %vm2300_vm14, %v4990_v32, 64.0  ;;  %v3654_v8 = vpop.f32.mrb[32].mxu0  ;;  %v2331_v19 = vsel %vm807_vm7, %v2309_v61, inf }
 0xa15   : > { %2332 = vmin.xlane.f32.xlu1 %v2331_v19  ;;  %v3655_v14 = vpop.f32.mrb[33].mxu0  ;;  %v2328_v60 = vsel %vm807_vm7, %v2308_v59, inf }
 0xa16   : > { %v5948_v20 = vadd.f32 %v3655_v14, %v3654_v8  ;;  %2329 = vmin.xlane.f32.xlu0 %v2328_v60 }
 0xa18   : > { %v3657_v43 = vpop.f32.mrb[34].mxu0 }
 0xa19   : > { %v3658_v6 = vpop.f32.mrb[35].mxu0 }
 0xa1a   : > { %v5950_v21 = vadd.f32 %v3658_v6, %v3657_v43 }
 0xa1c   : > { %v3660_v17 = vpop.f32.mrb[36].mxu0 }
 0xa1d   : > { %v3661_v34 = vpop.f32.mrb[37].mxu0 }
 0xa1e   : > { %v5952_v30 = vadd.f32 %v3661_v34, %v3660_v17 }
 0xa20   : > { %v3663_v9 = vpop.f32.mrb[38].mxu0 }
 0xa21   : > { %v3664_v41 = vpop.f32.mrb[39].mxu0 }
 0xa22   : > { %v5954_v47 = vadd.f32 %v3664_v41, %v3663_v9 }
 0xa96   : > { %v2315_v49 = vpop.xlane.xlu1 %2314 }
 0xa97   : > { %vm2335_vm15 = vcmp.eq.f32.partialorder %v4990_v32, %v2315_v49  ;;  %v2312_v52 = vpop.xlane.xlu0 %2311 }
 0xa98   : > { %v5958_v57 = vsel %vm2335_vm15, -inf, %v5830_v46  ;;  %vm2334_vm9 = vcmp.eq.f32.partialorder %v4990_v32, %v2312_v52  ;;  %v3403_v25 = vsel %vm2335_vm15, 1.0, %v4589_v0 }
 0xa99   : > { %v3402_v23 = vsel %vm2334_vm9, 1.0, %v4589_v0  ;;  %v5963_v2 = vsel %vm2334_vm9, -inf, %v5838_v44  ;;  %v2627_v29 = vsel %vm807_vm7, %v5958_v57, -inf }
 0xa9a   : > { %2628 = vmax.xlane.f32.xlu1 %v2627_v29  ;;  %v2321_v33 = vpop.xlane.xlu1 %2320  ;;  %3902 = vmatprep.mubr.msk.f32.mxu1 %vm807_vm7, %v3402_v23  ;;  %v2624_v46 = vsel %vm807_vm7, %v5963_v2, -inf }
 0xa9b   : > { %vm2337_vm10 = vcmp.eq.f32.partialorder %v4990_v32, %v2321_v33  ;;  %2625 = vmax.xlane.f32.xlu0 %v2624_v46  ;;  %v2318_v4 = vpop.xlane.xlu0 %2317  ;;  %3903 = vmatmul.mubr.msk.f32.vlgmr.msra.gmra.mrb[32].mxu1 %vm807_vm7, %v3403_v25 }
 0xa9c   : > { %v5974_v44 = vsel %vm2337_vm10, -inf, %v5854_v16  ;;  %vm2336_vm0 = vcmp.eq.f32.partialorder %v4990_v32, %v2318_v4  ;;  %4209 = vmatpush3.bf16.msra.mxu1 %v5140_v26  ;;  %v3405_v8 = vsel %vm2337_vm10, 1.0, %v4589_v0 }
 0xa9d   : > { %v3404_v54 = vsel %vm2336_vm0, 1.0, %v4589_v0  ;;  %v5980_v61 = vsel %vm2336_vm0, -inf, %v5862_v58  ;;  %v2633_v59 = vsel %vm807_vm7, %v5974_v44, -inf  ;;  %4211 = vmatprep.subr.bf16.mxu1 %v5148_v10 }
 0xa9e   : > { %2634 = vmax.xlane.f32.xlu1 %v2633_v59  ;;  %v2327_v19 = vpop.xlane.xlu1 %2326  ;;  %3905 = vmatprep.mubr.msk.f32.mxu1 %vm807_vm7, %v3404_v54  ;;  %v2630_v16 = vsel %vm807_vm7, %v5980_v61, -inf }
 0xa9f   : > { %vm2339_vm1 = vcmp.eq.f32.partialorder %v4990_v32, %v2327_v19  ;;  %2631 = vmax.xlane.f32.xlu0 %v2630_v16  ;;  %v2324_v26 = vpop.xlane.xlu0 %2323  ;;  %3906 = vmatmul.mubr.msk.f32.gmra.mrb[34].mxu1 %vm807_vm7, %v3405_v8 }
 0xaa0   : > { %v5992_v58 = vsel %vm2339_vm1, -inf, %v5878_v56  ;;  %vm2338_vm4 = vcmp.eq.f32.partialorder %v4990_v32, %v2324_v26  ;;  %4213 = vmatpush3.bf16.msra.mxu1 %v5148_v10  ;;  %v3407_v6 = vsel %vm2339_vm1, 1.0, %v4589_v0 }
 0xaa1   : > { %v3406_v14 = vsel %vm2338_vm4, 1.0, %v4589_v0  ;;  %v5998_v60 = vsel %vm2338_vm4, -inf, %v5886_v7  ;;  %v2639_v43 = vsel %vm807_vm7, %v5992_v58, -inf  ;;  %4215 = vmatprep.subr.bf16.mxu1 %v5154_v27 }
 0xaa2   : > { %2640 = vmax.xlane.f32.xlu1 %v2639_v43  ;;  %v2333_v17 = vpop.xlane.xlu1 %2332  ;;  %3908 = vmatprep.mubr.msk.f32.mxu1 %vm807_vm7, %v3406_v14  ;;  %v2636_v56 = vsel %vm807_vm7, %v5998_v60, -inf  ;;  %v2930_v14 = vld [vmem:[#allocation7 + $0x108] sm:$0xff] }
 0xaa3   : > { %vm2341_vm14 = vcmp.eq.f32.partialorder %v4990_v32, %v2333_v17  ;;  %2637 = vmax.xlane.f32.xlu0 %v2636_v56  ;;  %v2330_v10 = vpop.xlane.xlu0 %2329  ;;  %3909 = vmatmul.mubr.msk.f32.gmra.mrb[36].mxu1 %vm807_vm7, %v3407_v6  ;;  %v2932_v6 = vld [vmem:[#allocation7 + $0x118] sm:$0xff]  ;;  %v2933_v56 = vld [vmem:[#allocation7 + $0x120] sm:$0xff] }
 0xaa4   : > { %v6010_v7 = vsel %vm2341_vm14, -inf, %v5902_v35  ;;  %vm2340_vm15 = vcmp.eq.f32.partialorder %v4990_v32, %v2330_v10  ;;  %4217 = vmatpush3.bf16.msra.mxu1 %v5154_v27  ;;  %v3409_v49 = vsel %vm2341_vm14, 1.0, %v4589_v0  ;;  %v3394_v27 = vsel %vm2238_vm6, 1.0, %v4589_v0  ;;  %v2934_v10 = vld [vmem:[#allocation7 + $0x128] sm:$0xff] }
 0xaa5   : > { %v3408_v34 = vsel %vm2340_vm15, 1.0, %v4589_v0  ;;  %v6016_v9 = vsel %vm2340_vm15, -inf, %v5910_v36  ;;  %v2645_v41 = vsel %vm807_vm7, %v6010_v7, -inf  ;;  %4219 = vmatprep.subr.bf16.mxu1 %v5160_v28  ;;  %v3395_v36 = vsel %vm2239_vm5, 1.0, %v4589_v0 }
 0xaa6   : > { %2646 = vmax.xlane.f32.xlu1 %v2645_v41  ;;  %3911 = vmatprep.mubr.msk.f32.mxu1 %vm807_vm7, %v3408_v34  ;;  %v2642_v35 = vsel %vm807_vm7, %v6016_v9, -inf  ;;  %v2935_v34 = vld [vmem:[#allocation7 + $0x130] sm:$0xff] }
 0xaa7   : > { %2643 = vmax.xlane.f32.xlu0 %v2642_v35  ;;  %3912 = vmatmul.mubr.msk.f32.gmra.mrb[38].mxu1 %vm807_vm7, %v3409_v49  ;;  %v2937_v49 = vld [vmem:[#allocation7 + $0x140] sm:$0xff]  ;;  %v2938_v35 = vld [vmem:[#allocation7 + $0x148] sm:$0xff] }
 0xaa8   : > { %4221 = vmatpush3.bf16.msra.mxu1 %v5160_v28  ;;  %3930 = vmatprep.mubr.msk.f32.mxu1 %vm807_vm7, %v3394_v27  ;;  %v3397_v28 = vsel %vm2241_vm8, 1.0, %v4589_v0  ;;  %v4286_v27 = vpack.c.bf16 %v2938_v35, %v2937_v49 }
 0xaa9   : > { %4223 = vmatprep.subr.bf16.mxu1 %v4909_v63 }
 0xaab   : > { %3931 = vmatmul.mubr.msk.f32.vlgmr.msra.gmra.mrb[32].mxu1 %vm807_vm7, %v3395_v36  ;;  %v2939_v36 = vld [vmem:[#allocation7 + $0x150] sm:$0xff] }
 0xaac   : > { %4225 = vmatpush3.bf16.msra.mxu1 %v4909_v63  ;;  %3933 = vmatprep.mubr.msk.f32.mxu1 %vm807_vm7, %v3396_v45  ;;  %v3399_v63 = vsel %vm2243_vm2, 1.0, %v4589_v0  ;;  %v2940_v45 = vld [vmem:[#allocation7 + $0x158] sm:$0xff] }
 0xaad   : > { %4227 = vmatprep.subr.bf16.mxu1 %v4925_v15 }
 0xaaf   : > { %3934 = vmatmul.mubr.msk.f32.gmra.mrb[34].mxu1 %vm807_vm7, %v3397_v28  ;;  %v4290_v28 = vpack.c.bf16 %v2940_v45, %v2939_v36 }
 0xab0   : > { %4229 = vmatpush3.bf16.msra.mxu1 %v4925_v15  ;;  %3936 = vmatprep.mubr.msk.f32.mxu1 %vm807_vm7, %v3398_v31  ;;  %v3401_v15 = vsel %vm2245_vm12, 1.0, %v4589_v0  ;;  %v2941_v31 = vld [vmem:[#allocation7 + $0x160] sm:$0xff] }
 0xab1   : > { %4231 = vmatprep.subr.bf16.mxu1 %v4938_v42 }
 0xab3   : > { %3937 = vmatmul.mubr.msk.f32.gmra.mrb[36].mxu1 %vm807_vm7, %v3399_v63  ;;  %v2942_v63 = vld [vmem:[#allocation7 + $0x168] sm:$0xff] }
 0xab4   : > { %4233 = vmatpush3.bf16.msra.mxu1 %v4938_v42  ;;  %3939 = vmatprep.mubr.msk.f32.mxu1 %vm807_vm7, %v3400_v24  ;;  %v4294_v24 = vpack.c.bf16 %v2942_v63, %v2941_v31 }
 0xab5   : > { %4235 = vmatprep.subr.bf16.mxu1 %v4951_v62 }
 0xab7   : > { %3940 = vmatmul.mubr.msk.f32.gmra.mrb[38].mxu1 %vm807_vm7, %v3401_v15 }
 0xab8   : > { %4237 = vmatpush3.bf16.msra.mxu1 %v4951_v62 }
 0xb27   : > { %v2629_v12 = vpop.xlane.xlu1 %2628 }
 0xb28   : > { %vm2649_vm5 = vcmp.eq.f32.partialorder %v5958_v57, %v2629_v12  ;;  %v2626_v13 = vpop.xlane.xlu0 %2625 }
 0xb29   : > { %v2657_v22 = vsel %vm2649_vm5, %v4990_v32, 64.0  ;;  %vm2648_vm6 = vcmp.eq.f32.partialorder %v5963_v2, %v2626_v13 }
 0xb2a   : > { %v2656_v42 = vsel %vm2648_vm6, %v4990_v32, 64.0  ;;  %v2667_v11 = vsel %vm807_vm7, %v2657_v22, inf }
 0xb2b   : > { %2668 = vmin.xlane.f32.xlu1 %v2667_v11  ;;  %v2635_v52 = vpop.xlane.xlu1 %2634  ;;  %v2664_v1 = vsel %vm807_vm7, %v2656_v42, inf }
 0xb2c   : > { %vm2651_vm8 = vcmp.eq.f32.partialorder %v5974_v44, %v2635_v52  ;;  %2665 = vmin.xlane.f32.xlu0 %v2664_v1  ;;  %v2632_v62 = vpop.xlane.xlu0 %2631 }
 0xb2d   : > { %v2659_v23 = vsel %vm2651_vm8, %v4990_v32, 64.0  ;;  %vm2650_vm11 = vcmp.eq.f32.partialorder %v5980_v61, %v2632_v62 }
 0xb2e   : > { %v2658_v57 = vsel %vm2650_vm11, %v4990_v32, 64.0  ;;  %v2673_v2 = vsel %vm807_vm7, %v2659_v23, inf }
 0xb2f   : > { %2674 = vmin.xlane.f32.xlu1 %v2673_v2  ;;  %v2641_v29 = vpop.xlane.xlu1 %2640  ;;  %v2670_v25 = vsel %vm807_vm7, %v2658_v57, inf }
 0xb30   : > { %vm2653_vm2 = vcmp.eq.f32.partialorder %v5992_v58, %v2641_v29  ;;  %2671 = vmin.xlane.f32.xlu0 %v2670_v25  ;;  %v2638_v33 = vpop.xlane.xlu0 %2637  ;;  %v2929_v58 = vld [vmem:[#allocation7 + $0x100] sm:$0xff] }
 0xb31   : > { %v2661_v46 = vsel %vm2653_vm2, %v4990_v32, 64.0  ;;  %vm2652_vm3 = vcmp.eq.f32.partialorder %v5998_v60, %v2638_v33  ;;  %v2931_v60 = vld [vmem:[#allocation7 + $0x110] sm:$0xff]  ;;  %v4270_v43 = vpack.c.bf16 %v2930_v14, %v2929_v58 }
 0xb32   : > { %v2660_v4 = vsel %vm2652_vm3, %v4990_v32, 64.0  ;;  %v2679_v44 = vsel %vm807_vm7, %v2661_v46, inf  ;;  %v4274_v17 = vpack.c.bf16 %v2932_v6, %v2931_v60 }
 0xb33   : > { %2680 = vmin.xlane.f32.xlu1 %v2679_v44  ;;  %v2647_v54 = vpop.xlane.xlu1 %2646  ;;  %v2676_v61 = vsel %vm807_vm7, %v2660_v4, inf  ;;  %4271 = vmatprep.subr.bf16.mxu0 %v4270_v43  ;;  %v2943_v4 = vld [vmem:[#allocation7 + $0x170] sm:$0xff]  ;;  %v2944_v44 = vld [vmem:[#allocation7 + $0x178] sm:$0xff] }
 0xb34   : > { %vm2655_vm12 = vcmp.eq.f32.partialorder %v6010_v7, %v2647_v54  ;;  %2677 = vmin.xlane.f32.xlu0 %v2676_v61  ;;  %v2644_v59 = vpop.xlane.xlu0 %2643  ;;  %4273 = vmatpush3.bf16.msra.mxu0 %v4270_v43  ;;  %v4278_v7 = vpack.c.bf16 %v2934_v10, %v2933_v56  ;;  %v4298_v54 = vpack.c.bf16 %v2944_v44, %v2943_v4 }
 0xb35   : > { %v2663_v8 = vsel %vm2655_vm12, %v4990_v32, 64.0  ;;  %vm2654_vm13 = vcmp.eq.f32.partialorder %v6016_v9, %v2644_v59  ;;  %4275 = vmatprep.subr.bf16.mxu0 %v4274_v17  ;;  %v2936_v9 = vld [vmem:[#allocation7 + $0x138] sm:$0xff] }
 0xb36   : > { %v2662_v19 = vsel %vm2654_vm13, %v4990_v32, 64.0  ;;  %v2685_v16 = vsel %vm807_vm7, %v2663_v8, inf  ;;  %v4282_v41 = vpack.c.bf16 %v2936_v9, %v2935_v34 }
 0xb37   : > { %2686 = vmin.xlane.f32.xlu1 %v2685_v16  ;;  %v2682_v26 = vsel %vm807_vm7, %v2662_v19, inf }
 0xb38   : > { %2683 = vmin.xlane.f32.xlu0 %v2682_v26  ;;  %4277 = vmatpush3.bf16.msra.mxu0 %v4274_v17 }
 0xb39   : > { %4279 = vmatprep.subr.bf16.mxu0 %v4278_v7 }
 0xb3c   : > { %4281 = vmatpush3.bf16.msra.mxu0 %v4278_v7 }
 0xb3d   : > { %4283 = vmatprep.subr.bf16.mxu0 %v4282_v41 }
 0xb40   : > { %4285 = vmatpush3.bf16.msra.mxu0 %v4282_v41 }
 0xb41   : > { %4287 = vmatprep.subr.bf16.mxu0 %v4286_v27 }
 0xb44   : > { %4289 = vmatpush3.bf16.msra.mxu0 %v4286_v27 }
 0xb45   : > { %4291 = vmatprep.subr.bf16.mxu0 %v4290_v28 }
 0xb48   : > { %4293 = vmatpush3.bf16.msra.mxu0 %v4290_v28 }
 0xb49   : > { %4295 = vmatprep.subr.bf16.mxu0 %v4294_v24 }
 0xb4c   : > { %4297 = vmatpush3.bf16.msra.mxu0 %v4294_v24 }
 0xb4d   : > { %4299 = vmatprep.subr.bf16.mxu0 %v4298_v54 }
 0xb50   : > { %4301 = vmatpush3.bf16.msra.mxu0 %v4298_v54 }
 0xbb8   : > { %v2669_v15 = vpop.xlane.xlu1 %2668 }
 0xbb9   : > { %vm2689_vm9 = vcmp.eq.f32.partialorder %v4990_v32, %v2669_v15  ;;  %v2666_v12 = vpop.xlane.xlu0 %2665 }
 0xbba   : > { %vm2688_vm10 = vcmp.eq.f32.partialorder %v4990_v32, %v2666_v12  ;;  %v3427_v22 = vsel %vm2689_vm9, 1.0, %v4589_v0 }
 0xbbb   : > { %v3426_v13 = vsel %vm2688_vm10, 1.0, %v4589_v0 }
 0xbbc   : > { %v2675_v42 = vpop.xlane.xlu1 %2674  ;;  %3958 = vmatprep.mubr.msk.f32.mxu1 %vm807_vm7, %v3426_v13 }
 0xbbd   : > { %vm2691_vm0 = vcmp.eq.f32.partialorder %v4990_v32, %v2675_v42  ;;  %v2672_v11 = vpop.xlane.xlu0 %2671  ;;  %3959 = vmatmul.mubr.msk.f32.vlgmr.msra.gmra.mrb[32].mxu1 %vm807_vm7, %v3427_v22 }
 0xbbe   : > { %vm2690_vm1 = vcmp.eq.f32.partialorder %v4990_v32, %v2672_v11  ;;  %v3429_v1 = vsel %vm2691_vm0, 1.0, %v4589_v0 }
 0xbbf   : > { %v3428_v52 = vsel %vm2690_vm1, 1.0, %v4589_v0 }
 0xbc0   : > { %v2681_v62 = vpop.xlane.xlu1 %2680  ;;  %3961 = vmatprep.mubr.msk.f32.mxu1 %vm807_vm7, %v3428_v52 }
 0xbc1   : > { %vm2693_vm4 = vcmp.eq.f32.partialorder %v4990_v32, %v2681_v62  ;;  %v2678_v23 = vpop.xlane.xlu0 %2677  ;;  %3962 = vmatmul.mubr.msk.f32.gmra.mrb[34].mxu1 %vm807_vm7, %v3429_v1 }
 0xbc2   : > { %vm2692_vm14 = vcmp.eq.f32.partialorder %v4990_v32, %v2678_v23  ;;  %v3431_v2 = vsel %vm2693_vm4, 1.0, %v4589_v0 }
 0xbc3   : > { %v3430_v57 = vsel %vm2692_vm14, 1.0, %v4589_v0 }
 0xbc4   : > { %v2687_v29 = vpop.xlane.xlu1 %2686  ;;  %3964 = vmatprep.mubr.msk.f32.mxu1 %vm807_vm7, %v3430_v57 }
 0xbc5   : > { %vm2695_vm15 = vcmp.eq.f32.partialorder %v4990_v32, %v2687_v29  ;;  %v2684_v25 = vpop.xlane.xlu0 %2683  ;;  %3965 = vmatmul.mubr.msk.f32.gmra.mrb[36].mxu1 %vm807_vm7, %v3431_v2 }
 0xbc6   : > { %vm2694_vm5 = vcmp.eq.f32.partialorder %v4990_v32, %v2684_v25  ;;  %v3433_v46 = vsel %vm2695_vm15, 1.0, %v4589_v0 }
 0xbc7   : > { %v3432_v33 = vsel %vm2694_vm5, 1.0, %v4589_v0 }
 0xbc8   : > { %3967 = vmatprep.mubr.msk.f32.mxu1 %vm807_vm7, %v3432_v33 }
 0xbc9   : > { %3968 = vmatmul.mubr.msk.f32.gmra.mrb[38].mxu1 %vm807_vm7, %v3433_v46 }
 0xc90   : > { %v3960_v61 = vpop.f32.mrb[32].mxu1 }
 0xc91   : > { %v2882_v59 = vsub.f32 %v5776_v55, %v3960_v61  ;;  %v2802_v8 = vpop.f32.mrb[33].mxu1 }
 0xc92   : > { %v2881_v19 = vsub.f32 %v5773_v5, %v2802_v8 }
 0xc93   : > { %v2890_v26 = vmax.f32 %v2882_v59, 0.0 }
 0xc94   : > { %v2889_v32 = vmax.f32 %v2881_v19, 0.0  ;;  %v3963_v16 = vpop.f32.mrb[34].mxu1 }
 0xc95   : > { %v2884_v0 = vsub.f32 %v5789_v40, %v3963_v16  ;;  %v2812_v58 = vpop.f32.mrb[35].mxu1 }
 0xc96   : > { %v2883_v14 = vsub.f32 %v5783_v39, %v2812_v58  ;;  %4002 = vmatprep.mubr.f32.mxu0 %v2889_v32 }
 0xc97   : > { %4003 = vmatmul.mubr.f32.vlgmr.msra.gmra.mrb[40].mxu0 %v2890_v26  ;;  %v2892_v6 = vmax.f32 %v2884_v0, 0.0 }
 0xc98   : > { %v2891_v60 = vmax.f32 %v2883_v14, 0.0  ;;  %v3966_v43 = vpop.f32.mrb[36].mxu1 }
 0xc99   : > { %v2886_v17 = vsub.f32 %v5801_v3, %v3966_v43  ;;  %v2822_v56 = vpop.f32.mrb[37].mxu1 }
 0xc9a   : > { %v2885_v55 = vsub.f32 %v5795_v53, %v2822_v56  ;;  %4005 = vmatprep.mubr.f32.mxu0 %v2891_v60  ;;  %v3442_v53 = vld [vmem:[%s6209_s4] ss:$0 sm:$0xff] }
 0xc9b   : > { %4006 = vmatmul.mubr.f32.gmra.mrb[42].mxu0 %v2892_v6  ;;  %v2894_v7 = vmax.f32 %v2886_v17, 0.0  ;;  %v3024_v3 = vadd.f32 %v5925_v48, %v3442_v53  ;;  %v3019_v35 = vadd.f32 %v5917_v18, %v3442_v53  ;;  %v3034_v45 = vadd.f32 %v5941_v37, %v3442_v53 }
 0xc9c   : > { %v2893_v5 = vmax.f32 %v2885_v55, 0.0  ;;  %v3969_v10 = vpop.f32.mrb[38].mxu1  ;;  %v3029_v63 = vadd.f32 %v5933_v50, %v3442_v53  ;;  %v3044_v37 = vadd.f32 %v5950_v21, %v3442_v53  ;;  %v3039_v13 = vadd.f32 %v5948_v20, %v3442_v53 }
 0xc9d   : > { %v2888_v40 = vsub.f32 %v5813_v38, %v3969_v10  ;;  %v2832_v34 = vpop.f32.mrb[39].mxu1  ;;  %v3054_v1 = vadd.f32 %v5954_v47, %v3442_v53  ;;  %v3049_v23 = vadd.f32 %v5952_v30, %v3442_v53 }
 0xc9e   : > { %v2887_v39 = vsub.f32 %v5807_v51, %v2832_v34  ;;  %4008 = vmatprep.mubr.f32.mxu0 %v2893_v5 }
 0xc9f   : > { %4009 = vmatmul.mubr.f32.gmra.mrb[44].mxu0 %v2894_v7  ;;  %v2896_v41 = vmax.f32 %v2888_v40, 0.0 }
 0xca0   : > { %v2895_v9 = vmax.f32 %v2887_v39, 0.0 }
 0xca2   : > { %4011 = vmatprep.mubr.f32.mxu0 %v2895_v9 }
 0xca3   : > { %4012 = vmatmul.mubr.f32.gmra.mrb[46].mxu0 %v2896_v41 }
 0xd6a   : > { %v4004_v49 = vpop.f32.mrb[40].mxu0 }
 0xd6b   : > { %v3129_v38 = vadd.f32 %v4004_v49, %v3024_v3  ;;  %v3123_v27 = vpop.f32.mrb[41].mxu0 }
 0xd6c   : > { %v3124_v36 = vadd.f32 %v3123_v27, %v3019_v35 }
 0xd6d   : > { %v3163_v51 = vmax.f32 %v3129_v38, 0.0 }
 0xd6e   : > { %v3162_v28 = vmax.f32 %v3124_v36, 0.0  ;;  %v4007_v31 = vpop.f32.mrb[42].mxu0 }
 0xd6f   : > { %3171 = vst [vmem:[%s6140_s10 + $0x8] sm:$0xff] %v3163_v51  ;;  %v3139_v18 = vadd.f32 %v4007_v31, %v3034_v45  ;;  %v3133_v48 = vpop.f32.mrb[43].mxu0 }
 0xd70   : > { %3170 = vst [vmem:[%s6140_s10] sm:$0xff] %v3162_v28  ;;  %v3134_v24 = vadd.f32 %v3133_v48, %v3029_v63 }
 0xd71   : > { %v3165_v15 = vmax.f32 %v3139_v18, 0.0 }
 0xd72   : > { %v3164_v12 = vmax.f32 %v3134_v24, 0.0  ;;  %v4010_v50 = vpop.f32.mrb[44].mxu0 }
 0xd73   : > { %3173 = vst [vmem:[%s6140_s10 + $0x18] sm:$0xff] %v3165_v15  ;;  %v3149_v22 = vadd.f32 %v4010_v50, %v3044_v37  ;;  %v3143_v42 = vpop.f32.mrb[45].mxu0 }
 0xd74   : > { %3172 = vst [vmem:[%s6140_s10 + $0x10] sm:$0xff] %v3164_v12  ;;  %v3144_v11 = vadd.f32 %v3143_v42, %v3039_v13 }
 0xd75   : > { %v3167_v52 = vmax.f32 %v3149_v22, 0.0 }
 0xd76   : > { %v3166_v62 = vmax.f32 %v3144_v11, 0.0  ;;  %v4013_v21 = vpop.f32.mrb[46].mxu0 }
 0xd77   : > { %3175 = vst [vmem:[%s6140_s10 + $0x28] sm:$0xff] %v3167_v52  ;;  %v3159_v20 = vadd.f32 %v4013_v21, %v3054_v1  ;;  %v3153_v57 = vpop.f32.mrb[47].mxu0 }
 0xd78   : > { %3174 = vst [vmem:[%s6140_s10 + $0x20] sm:$0xff] %v3166_v62  ;;  %v3154_v2 = vadd.f32 %v3153_v57, %v3049_v23 }
 0xd79   : > { %v3169_v29 = vmax.f32 %v3159_v20, 0.0 }
 0xd7a   : > { %v3168_v47 = vmax.f32 %v3154_v2, 0.0 }
 0xd7b   : > { %3177 = vst [vmem:[%s6140_s10 + $0x38] sm:$0xff] %v3169_v29 }
 0xd7c   : > { %3176 = vst [vmem:[%s6140_s10 + $0x30] sm:$0xff] %v3168_v47 }
 0xd7d   : > { %4523 = shalt.err (!%p4520_p2)
}
 0xd7e   : > { %s4524_s14 = scalar_lea.hbm %s6159_s11, 1024  ;;  %s4528_s12 = scalar_lea.hbm %s6210_s5, 2048 }
 0xd7f   : > { %p4525_p13 = scmp.ne.s32.totalorder %s6159_s11, %s4524_s14  ;;  %p4529_p4 = scmp.lt.u32.totalorder %s6159_s11, %s6210_s5 }
 0xd80   : > { %p4530_p7 = scmp.lt.u32.totalorder %s4528_s12, %s4524_s14  ;;  %p4532_p11 = scmp.lt.u32.totalorder %s4524_s14, %s6159_s11 }
 0xd81   : > { %p4526_p6 = pnand %p4525_p13, %p6224_p0 }
 0xd82   : > { %p4531_p8 = por %p4530_p7, %p4529_p4 }
 0xd83   : > { %p4527_p10 = pneg %p4526_p6 }
 0xd84   : > { %p4533_p1 = por %p4532_p11, %p4531_p8 }
 0xd86   : > { %p4534_p3 = pnand %p4533_p1, %p4527_p10 }
 0xd88   : > { %4537 = shalt.err (!%p4534_p3)
}
 0xd89   : > { %s4591_s15 = smov 128   ;;  %s4592_s9 = smov 8  }
 0xd8a   : > { %4360 = dma.vmem_to_hbm [thread:$0]  (%p6224_p0), %s6153_s28, 1024, %s6159_s11, %s3179_s22, %s4591_s15, %s4591_s15, %s4592_s9  }
 0xd8b PF: > { %s3207_s30 = sand.u32 1, %s4568_s18   ;;  %p6225_p5 = scmp.ne.s32.totalorder %s6215_s25, 0 }
 0xd8c   : > { %p6226_p9 = scmp.ge.s32.totalorder %s4580_s21, 2  ;;  %s3208_s23 = scalar_lea.sflag [#allocation4], %s3207_s30 }
 0xd8e   : > { %p4374_p12 = pnand %p6226_p9, %p6225_p5 }
 0xd90   : > { %4563 = dma.done.wait (!%p4374_p12), %s3208_s23, 1024  }
 0xd91   : > { %4565 = vsyncadd (!%p4374_p12), %s3208_s23, 4294966272  ;;  %p19_p2 = scmp.ge.s32.totalorder %s4736_s16, 4   ;;  %s6227_s18 = smov %s4572_s19 }
 0xd92   : > { %s6228_s19 = smov %s4576_s20  ;;  %s6229_s20 = smov %s4745_s27 }
 0xd93   : > { %s6230_s21 = smov %s4736_s16  ;;  %21 = sbr.rel (!%p19_p2) target bundleno = 6 (0x6), region = 93 }
 0xd9a   :  { %3213 = vsyncpa [#allocation3], 1 }
 0xd9b   :  { %3215 = vsyncpa [#allocation3 + $0x1], 1 }
 0xd9c   :  { %3216 = vsyncpa [#allocation6], 1 }
 0xd9d   :  { %3217 = vsyncpa [#allocation4], 1 }
 0xd9e   :  { %3219 = vsyncpa [#allocation4 + $0x1], 1 }

</bundles_post_ra>
